<compile_context>
chip_gen: v5e
topology: v5e:2x2
jax: 0.10.0
libtpu: 0.0.40
codegen_flags: <defaults>
</compile_context>

<pallas_src>
import functools
import math

import jax
import jax.numpy as jnp
from jax.experimental import pallas as pl
from jax.experimental.pallas import tpu as pltpu

NB = 8  # board rows = attention "batch" size (fixed by the model)


def _sections(sects):
    out, off = {}, 0
    for name, size in sects:
        out[name] = slice(off, off + size)
        off += size
    return out


# Row sections of the packed (rows, 8) weight stack (pre-transposed, so the
# kernel computes x @ W^T as x @ stack[rows]).
_W8_SECTS = (('board_fc1', 8), ('conv_m1', 8), ('conv_0', 8), ('conv_p1', 8),
             ('battn_o', 8), ('board_fc3', 8), ('main_fc1', 8), ('main_fc2', 8),
             ('lm_fc2', 21))
# Row sections of the packed (rows, 21) weight stack.
_W21_SECTS = (('lm_fc1', 54), ('mattn_o', 21))
# Lane sections of the packed (1, total) bias row.
_BIAS_SECTS = (('board_fc1', 8), ('conv', 8), ('battn_qkv', 24), ('battn_o', 8),
               ('board_fc3', 8), ('lm_fc1', 21), ('mattn_qkv', 63),
               ('mattn_o', 21), ('lm_fc2', 8), ('main_fc1', 8), ('main_fc2', 8),
               ('main_fc3', 64))

_W8_SL = _sections(_W8_SECTS)
_W21_SL = _sections(_W21_SECTS)
_BIAS_SL = _sections(_BIAS_SECTS)


def _relu(x):
    return jnp.maximum(x, 0.0)


def _shift_board_rows(x, dn, batch):
    """out[n*B + b] = x[(n+dn)*B + b], zero where n+dn is off the board."""
    pad = jnp.zeros((batch, x.shape[1]), x.dtype)
    if dn < 0:
        return jnp.concatenate([pad, x[:x.shape[0] - batch, :]], axis=0)
    return jnp.concatenate([x[batch:, :], pad], axis=0)


def _mha(x2d, w_qkv_t, b_qkv, w_o_t, b_o, *, seq, heads, head_dim):
    """nn.MultiheadAttention(E, heads) on x2d of shape (NB*seq, E), rows n*seq+b.

    Attention batch = NB board rows, sequence = `seq` (the original batch dim,
    matching PyTorch's batch_first=False).  Returns (NB*seq, E) post out-proj.
    """
    f32 = jnp.float32
    e = heads * head_dim
    scale = 1.0 / math.sqrt(head_dim)

    qkv = jnp.dot(x2d, w_qkv_t, preferred_element_type=f32) + b_qkv  # (NB*seq, 3E)
    qkv3 = jnp.stack([qkv[n * seq:(n + 1) * seq, :] for n in range(NB)], axis=0)
    q3 = qkv3[:, :, :e] * scale                                      # (NB, seq, E)
    k3 = qkv3[:, :, e:2 * e]
    v3 = qkv3[:, :, 2 * e:]

    head_outs = []
    for h in range(heads):
        hs = slice(h * head_dim, (h + 1) * head_dim)
        s = jnp.einsum('nqd,nkd->nqk', q3[:, :, hs], k3[:, :, hs],
                       preferred_element_type=f32)                   # (NB, seq, seq)
        s_max = jnp.max(s, axis=-1, keepdims=True)
        prob = jnp.exp(s - s_max)
        prob = prob * pl.reciprocal(jnp.sum(prob, axis=-1, keepdims=True),
                                    approx=True)
        head_outs.append(jnp.einsum('nqk,nkd->nqd', prob, v3[:, :, hs],
                                    preferred_element_type=f32))     # (NB, seq, hd)
    o3 = jnp.concatenate(head_outs, axis=-1)                         # (NB, seq, E)
    o2 = jnp.concatenate([o3[n] for n in range(NB)], axis=0)         # (NB*seq, E)
    return jnp.dot(o2, w_o_t, preferred_element_type=f32) + b_o


def start_square_kernel(yf_ref, zf_ref, w8_ref, w21_ref, wqkv_b_ref, wqkv_m_ref,
                        w3_ref, bias_ref, o_ref, *, batch):
    """Full StartSquareModel forward.  Output: softmax probabilities (B, 64)."""
    f32 = jnp.float32
    B = batch

    def w8(name):
        return w8_ref[_W8_SL[name], :]

    def w21(name):
        return w21_ref[_W21_SL[name], :]

    def bias(name):
        return bias_ref[:, _BIAS_SL[name]]

    yf = yf_ref[...].astype(f32)                                     # (8B, 8)
    zf = zf_ref[...].astype(f32)                                     # (8B, 54)

    # ---- board branch ------------------------------------------------------
    y1 = _relu(jnp.dot(yf, w8('board_fc1'), preferred_element_type=f32)
               + bias('board_fc1'))

    # 3x3 conv (1 channel, padding=1) with board_fc2 folded in:
    #   conv2 = sum_dn shift_dn(y1) @ (A_dn^T W2^T) + (cb*1 W2^T + b2)
    y_nm1 = _shift_board_rows(y1, -1, B)
    y_np1 = _shift_board_rows(y1, +1, B)
    conv2 = (jnp.dot(y_nm1, w8('conv_m1'), preferred_element_type=f32)
             + jnp.dot(y1, w8('conv_0'), preferred_element_type=f32)
             + jnp.dot(y_np1, w8('conv_p1'), preferred_element_type=f32)
             + bias('conv'))

    battn = _mha(y1, wqkv_b_ref[...], bias('battn_qkv'),
                 w8('battn_o'), bias('battn_o'), seq=B, heads=4, head_dim=2)
    yb = _relu(jnp.dot(_relu(battn + conv2), w8('board_fc3'),
                       preferred_element_type=f32) + bias('board_fc3'))

    # ---- legal-moves branch --------------------------------------------------
    z1 = _relu(jnp.dot(zf, w21('lm_fc1'), preferred_element_type=f32)
               + bias('lm_fc1'))
    mattn = _mha(z1, wqkv_m_ref[...], bias('mattn_qkv'),
                 w21('mattn_o'), bias('mattn_o'), seq=B, heads=3, head_dim=7)
    zb = _relu(jnp.dot(_relu(mattn + z1), w8('lm_fc2'),
                       preferred_element_type=f32) + bias('lm_fc2'))

    # ---- merge + main head ---------------------------------------------------
    x = _relu(yb * zb)
    x = _relu(jnp.dot(x, w8('main_fc1'), preferred_element_type=f32)
              + bias('main_fc1'))
    x = _relu(jnp.dot(x, w8('main_fc2'), preferred_element_type=f32)
              + bias('main_fc2'))                                    # (8B, 8)

    # nn.Flatten(): (B, 8, 8) -> (B, 64).  Row block n*B:(n+1)*B holds board
    # row n for every batch element, so it becomes lane block n*8:(n+1)*8.
    x64 = jnp.concatenate([x[n * B:(n + 1) * B, :] for n in range(NB)], axis=1)
    logits = (jnp.dot(x64, w3_ref[...], preferred_element_type=f32)
              + bias('main_fc3'))
    m = jnp.max(logits, axis=-1, keepdims=True)
    ex = jnp.exp(logits - m)
    o_ref[...] = ex / jnp.sum(ex, axis=-1, keepdims=True)


# ---------------------------------------------------------------------------
# Parameter construction (deterministic, synthetic) and one-time packing
# ---------------------------------------------------------------------------
def init_params(key):
    keys = iter(jax.random.split(key, 64))

    def lin(out_f, in_f):
        bound = 1.0 / math.sqrt(in_f)
        w = jax.random.uniform(next(keys), (out_f, in_f), jnp.float32, -bound, bound)
        b = jax.random.uniform(next(keys), (out_f,), jnp.float32, -bound, bound)
        return w, b

    p = {}
    p['board_fc1_w'], p['board_fc1_b'] = lin(8, 8)
    p['board_fc2_w'], p['board_fc2_b'] = lin(8, 8)
    p['board_fc3_w'], p['board_fc3_b'] = lin(8, 8)
    cb = 1.0 / 3.0  # fan_in = 1*3*3
    p['conv_w'] = jax.random.uniform(next(keys), (3, 3), jnp.float32, -cb, cb)
    p['conv_b'] = jax.random.uniform(next(keys), (1, 1), jnp.float32, -cb, cb)
    p['lm_fc1_w'], p['lm_fc1_b'] = lin(21, 54)
    p['lm_fc2_w'], p['lm_fc2_b'] = lin(8, 21)
    for name, e in (('battn', 8), ('mattn', 21)):
        for proj in ('q', 'k', 'v', 'o'):
            w, b = lin(e, e)
            p[f'{name}_{proj}_w'] = w
            p[f'{name}_{proj}_b'] = b
    p['main_fc1_w'], p['main_fc1_b'] = lin(8, 8)
    p['main_fc2_w'], p['main_fc2_b'] = lin(8, 8)
    p['main_fc3_w'], p['main_fc3_b'] = lin(64, 64)
    return p


def prepare_params(params):
    """One-time derivation of packed, pre-transposed kernel operands."""
    f32 = jnp.float32
    t = lambda w: jnp.transpose(w).astype(f32)

    def band(conv_w, dn):
        # A_dn[c, c'] = w[dn+1, c'-c+1] for |c'-c| <= 1 else 0
        c = jnp.arange(8)[:, None]
        cp = jnp.arange(8)[None, :]
        diff = cp - c
        vals = conv_w[dn + 1, jnp.clip(diff + 1, 0, 2)]
        return jnp.where(jnp.abs(diff) <= 1, vals, 0.0).astype(f32)

    w2 = params['board_fc2_w'].astype(f32)
    a2 = {dn: band(params['conv_w'], dn).T @ w2.T for dn in (-1, 0, 1)}
    conv_bias2 = (params['conv_b'].reshape(()) * jnp.sum(w2, axis=1)
                  + params['board_fc2_b']).astype(f32)

    def qkv_cat(prefix):
        w = jnp.concatenate([params[f'{prefix}_{proj}_w'] for proj in 'qkv'], axis=0)
        b = jnp.concatenate([params[f'{prefix}_{proj}_b'] for proj in 'qkv'], axis=0)
        return t(w), b.astype(f32)

    wqkv_b, bqkv_b = qkv_cat('battn')     # (8, 24), (24,)
    wqkv_m, bqkv_m = qkv_cat('mattn')     # (21, 63), (63,)

    w8 = jnp.concatenate([
        t(params['board_fc1_w']), a2[-1], a2[0], a2[1],
        t(params['battn_o_w']), t(params['board_fc3_w']),
        t(params['main_fc1_w']), t(params['main_fc2_w']),
        t(params['lm_fc2_w']),
    ], axis=0)                            # (85, 8)

    w21 = jnp.concatenate([t(params['lm_fc1_w']), t(params['mattn_o_w'])],
                          axis=0)         # (75, 21)

    biases = jnp.concatenate([
        params['board_fc1_b'], conv_bias2, bqkv_b, params['battn_o_b'],
        params['board_fc3_b'], params['lm_fc1_b'], bqkv_m, params['mattn_o_b'],
        params['lm_fc2_b'], params['main_fc1_b'], params['main_fc2_b'],
        params['main_fc3_b'],
    ]).astype(f32)[None, :]               # (1, 259)

    return dict(w8=w8, w21=w21, wqkv_b=wqkv_b, wqkv_m=wqkv_m,
                w3=t(params['main_fc3_w']), bias=biases)


# ---------------------------------------------------------------------------
# Wrapper
# ---------------------------------------------------------------------------
@jax.jit
def chess_ai_forward(board, legal_moves, kparams):
    B = board.shape[0]
    # Kernel row layout r = n*B + b: n = board row (attention batch), b = the
    # original batch element (attention sequence, per batch_first=False).
    yf = jnp.transpose(board, (1, 0, 2)).reshape(NB * B, 8).astype(jnp.float32)
    zf = jnp.transpose(legal_moves, (1, 0, 2)).reshape(NB * B, 54).astype(jnp.float32)

    vmem = pl.BlockSpec(memory_space=pltpu.MemorySpace.VMEM)
    start_square = pl.pallas_call(
        functools.partial(start_square_kernel, batch=B),
        out_shape=jax.ShapeDtypeStruct((B, 64), jnp.float32),
        in_specs=[vmem] * 8,
        out_specs=vmem,
    )(yf, zf, kparams['w8'], kparams['w21'], kparams['wqkv_b'],
      kparams['wqkv_m'], kparams['w3'], kparams['bias'])

    # TODO(synk): ChessAIModel.forward builds `Tensor([x, start_square])` (invalid
    # tensor construction) and feeds EndSquareModel whose forward is `pass`
    # (returns None); only the well-defined StartSquareModel path is implemented,
    # and its softmax output is returned here.
    return start_square


if __name__ == "__main__":
    key = jax.random.PRNGKey(0)
    kp_key, kb, km = jax.random.split(key, 3)
    params = init_params(kp_key)
    kernel_params = prepare_params(params)

    B = 2
    board = jax.random.normal(kb, (B, 8, 8), jnp.float32)          # x[0]
    legal_moves = jax.random.normal(km, (B, 8, 54), jnp.float32)   # x[1]

    out = chess_ai_forward(board, legal_moves, kernel_params)
    out = jax.block_until_ready(out)

    assert out.shape == (B, 64)
    row_sums = jnp.sum(out, axis=1)                                # softmax rows sum to 1
    assert bool(jnp.all(jnp.abs(row_sums - 1.0) < 1e-4))
    print("KERNEL_OK")
</pallas_src>

<mosaic_0001>
module attributes {stable_mosaic.version = 11 : i64} {
  func.func @start_square_kernel(%arg0: memref<16x8xf32, #tpu.memory_space<vmem>>, %arg1: memref<16x54xf32, #tpu.memory_space<vmem>>, %arg2: memref<85x8xf32, #tpu.memory_space<vmem>>, %arg3: memref<75x21xf32, #tpu.memory_space<vmem>>, %arg4: memref<8x24xf32, #tpu.memory_space<vmem>>, %arg5: memref<21x63xf32, #tpu.memory_space<vmem>>, %arg6: memref<64x64xf32, #tpu.memory_space<vmem>>, %arg7: memref<1x249xf32, #tpu.memory_space<vmem>>, %arg8: memref<2x64xf32, #tpu.memory_space<vmem>>) attributes {dimension_semantics = [], scalar_prefetch = 0 : i64, scratch_operands = 0 : i64, tpu.core_type = #tpu.core_type<tc>} {
    %c0 = arith.constant 0 : index
    %c0_0 = arith.constant 0 : index
    %0 = vector.load %arg0[%c0, %c0_0] : memref<16x8xf32, #tpu.memory_space<vmem>>, vector<16x8xf32>
    %c0_1 = arith.constant 0 : index
    %c0_2 = arith.constant 0 : index
    %1 = vector.load %arg1[%c0_1, %c0_2] : memref<16x54xf32, #tpu.memory_space<vmem>>, vector<16x54xf32>
    %c0_3 = arith.constant 0 : index
    %c0_4 = arith.constant 0 : index
    %2 = vector.load %arg2[%c0_3, %c0_4] : memref<85x8xf32, #tpu.memory_space<vmem>>, vector<8x8xf32>
    %cst = arith.constant dense<0.000000e+00> : vector<16x8xf32>
    %3 = tpu.matmul %0, %2, %cst {dimension_numbers = #tpu.dot_dimension_numbers<[1], [0], [0], [1], [0, 0, 1, 1], [], []>} : vector<16x8xf32>, vector<8x8xf32>, vector<16x8xf32> -> vector<16x8xf32>
    %c0_5 = arith.constant 0 : index
    %c0_6 = arith.constant 0 : index
    %4 = vector.load %arg7[%c0_5, %c0_6] : memref<1x249xf32, #tpu.memory_space<vmem>>, vector<1x8xf32>
    %5 = vector.broadcast %4 : vector<1x8xf32> to vector<16x8xf32>
    %6 = arith.addf %3, %5 : vector<16x8xf32>
    %cst_7 = arith.constant 0.000000e+00 : f32
    %7 = vector.broadcast %cst_7 : f32 to vector<16x8xf32>
    %8 = arith.maximumf %6, %7 : vector<16x8xf32>
    %cst_8 = arith.constant 0.000000e+00 : f32
    %9 = vector.broadcast %cst_8 : f32 to vector<2x8xf32>
    %10 = vector.extract_strided_slice %8 {offsets = [0, 0], sizes = [14, 8], strides = [1, 1]} : vector<16x8xf32> to vector<14x8xf32>
    %11 = tpu.concatenate %9, %10 in 0 : vector<2x8xf32>, vector<14x8xf32> -> vector<16x8xf32>
    %cst_9 = arith.constant 0.000000e+00 : f32
    %12 = vector.broadcast %cst_9 : f32 to vector<2x8xf32>
    %13 = vector.extract_strided_slice %8 {offsets = [2, 0], sizes = [14, 8], strides = [1, 1]} : vector<16x8xf32> to vector<14x8xf32>
    %14 = tpu.concatenate %13, %12 in 0 : vector<14x8xf32>, vector<2x8xf32> -> vector<16x8xf32>
    %c8 = arith.constant 8 : index
    %c0_10 = arith.constant 0 : index
    %15 = vector.load %arg2[%c8, %c0_10] : memref<85x8xf32, #tpu.memory_space<vmem>>, vector<8x8xf32>
    %cst_11 = arith.constant dense<0.000000e+00> : vector<16x8xf32>
    %16 = tpu.matmul %11, %15, %cst_11 {dimension_numbers = #tpu.dot_dimension_numbers<[1], [0], [0], [1], [0, 0, 1, 1], [], []>} : vector<16x8xf32>, vector<8x8xf32>, vector<16x8xf32> -> vector<16x8xf32>
    %c16 = arith.constant 16 : index
    %c0_12 = arith.constant 0 : index
    %17 = vector.load %arg2[%c16, %c0_12] : memref<85x8xf32, #tpu.memory_space<vmem>>, vector<8x8xf32>
    %cst_13 = arith.constant dense<0.000000e+00> : vector<16x8xf32>
    %18 = tpu.matmul %8, %17, %cst_13 {dimension_numbers = #tpu.dot_dimension_numbers<[1], [0], [0], [1], [0, 0, 1, 1], [], []>} : vector<16x8xf32>, vector<8x8xf32>, vector<16x8xf32> -> vector<16x8xf32>
    %19 = arith.addf %16, %18 : vector<16x8xf32>
    %c24 = arith.constant 24 : index
    %c0_14 = arith.constant 0 : index
    %20 = vector.load %arg2[%c24, %c0_14] : memref<85x8xf32, #tpu.memory_space<vmem>>, vector<8x8xf32>
    %cst_15 = arith.constant dense<0.000000e+00> : vector<16x8xf32>
    %21 = tpu.matmul %14, %20, %cst_15 {dimension_numbers = #tpu.dot_dimension_numbers<[1], [0], [0], [1], [0, 0, 1, 1], [], []>} : vector<16x8xf32>, vector<8x8xf32>, vector<16x8xf32> -> vector<16x8xf32>
    %22 = arith.addf %19, %21 : vector<16x8xf32>
    %c0_16 = arith.constant 0 : index
    %c8_17 = arith.constant 8 : index
    %23 = vector.load %arg7[%c0_16, %c8_17] : memref<1x249xf32, #tpu.memory_space<vmem>>, vector<1x8xf32>
    %24 = vector.broadcast %23 : vector<1x8xf32> to vector<16x8xf32>
    %25 = arith.addf %22, %24 : vector<16x8xf32>
    %c0_18 = arith.constant 0 : index
    %c0_19 = arith.constant 0 : index
    %26 = vector.load %arg4[%c0_18, %c0_19] : memref<8x24xf32, #tpu.memory_space<vmem>>, vector<8x24xf32>
    %c0_20 = arith.constant 0 : index
    %c16_21 = arith.constant 16 : index
    %27 = vector.load %arg7[%c0_20, %c16_21] : memref<1x249xf32, #tpu.memory_space<vmem>>, vector<1x24xf32>
    %c32 = arith.constant 32 : index
    %c0_22 = arith.constant 0 : index
    %28 = vector.load %arg2[%c32, %c0_22] : memref<85x8xf32, #tpu.memory_space<vmem>>, vector<8x8xf32>
    %c0_23 = arith.constant 0 : index
    %c40 = arith.constant 40 : index
    %29 = vector.load %arg7[%c0_23, %c40] : memref<1x249xf32, #tpu.memory_space<vmem>>, vector<1x8xf32>
    %cst_24 = arith.constant dense<0.000000e+00> : vector<16x24xf32>
    %30 = tpu.matmul %8, %26, %cst_24 {dimension_numbers = #tpu.dot_dimension_numbers<[1], [0], [0], [1], [0, 0, 1, 1], [], []>} : vector<16x8xf32>, vector<8x24xf32>, vector<16x24xf32> -> vector<16x24xf32>
    %31 = vector.broadcast %27 : vector<1x24xf32> to vector<16x24xf32>
    %32 = arith.addf %30, %31 : vector<16x24xf32>
    %33 = vector.extract_strided_slice %32 {offsets = [0, 0], sizes = [2, 24], strides = [1, 1]} : vector<16x24xf32> to vector<2x24xf32>
    %34 = vector.extract_strided_slice %32 {offsets = [2, 0], sizes = [2, 24], strides = [1, 1]} : vector<16x24xf32> to vector<2x24xf32>
    %35 = vector.extract_strided_slice %32 {offsets = [4, 0], sizes = [2, 24], strides = [1, 1]} : vector<16x24xf32> to vector<2x24xf32>
    %36 = vector.extract_strided_slice %32 {offsets = [6, 0], sizes = [2, 24], strides = [1, 1]} : vector<16x24xf32> to vector<2x24xf32>
    %37 = vector.extract_strided_slice %32 {offsets = [8, 0], sizes = [2, 24], strides = [1, 1]} : vector<16x24xf32> to vector<2x24xf32>
    %38 = vector.extract_strided_slice %32 {offsets = [10, 0], sizes = [2, 24], strides = [1, 1]} : vector<16x24xf32> to vector<2x24xf32>
    %39 = vector.extract_strided_slice %32 {offsets = [12, 0], sizes = [2, 24], strides = [1, 1]} : vector<16x24xf32> to vector<2x24xf32>
    %40 = vector.extract_strided_slice %32 {offsets = [14, 0], sizes = [2, 24], strides = [1, 1]} : vector<16x24xf32> to vector<2x24xf32>
    %41 = vector.shape_cast %33 : vector<2x24xf32> to vector<1x2x24xf32>
    %42 = vector.shape_cast %34 : vector<2x24xf32> to vector<1x2x24xf32>
    %43 = vector.shape_cast %35 : vector<2x24xf32> to vector<1x2x24xf32>
    %44 = vector.shape_cast %36 : vector<2x24xf32> to vector<1x2x24xf32>
    %45 = vector.shape_cast %37 : vector<2x24xf32> to vector<1x2x24xf32>
    %46 = vector.shape_cast %38 : vector<2x24xf32> to vector<1x2x24xf32>
    %47 = vector.shape_cast %39 : vector<2x24xf32> to vector<1x2x24xf32>
    %48 = vector.shape_cast %40 : vector<2x24xf32> to vector<1x2x24xf32>
    %49 = tpu.concatenate %41, %42, %43, %44, %45, %46, %47, %48 in 0 : vector<1x2x24xf32>, vector<1x2x24xf32>, vector<1x2x24xf32>, vector<1x2x24xf32>, vector<1x2x24xf32>, vector<1x2x24xf32>, vector<1x2x24xf32>, vector<1x2x24xf32> -> vector<8x2x24xf32>
    %50 = vector.extract_strided_slice %49 {offsets = [0, 0, 0], sizes = [8, 2, 8], strides = [1, 1, 1]} : vector<8x2x24xf32> to vector<8x2x8xf32>
    %cst_25 = arith.constant 0.707106769 : f32
    %51 = vector.broadcast %cst_25 : f32 to vector<8x2x8xf32>
    %52 = arith.mulf %50, %51 : vector<8x2x8xf32>
    %53 = vector.extract_strided_slice %49 {offsets = [0, 0, 8], sizes = [8, 2, 8], strides = [1, 1, 1]} : vector<8x2x24xf32> to vector<8x2x8xf32>
    %54 = vector.extract_strided_slice %49 {offsets = [0, 0, 16], sizes = [8, 2, 8], strides = [1, 1, 1]} : vector<8x2x24xf32> to vector<8x2x8xf32>
    %55 = vector.extract_strided_slice %52 {offsets = [0, 0, 0], sizes = [8, 2, 2], strides = [1, 1, 1]} : vector<8x2x8xf32> to vector<8x2x2xf32>
    %56 = vector.extract_strided_slice %53 {offsets = [0, 0, 0], sizes = [8, 2, 2], strides = [1, 1, 1]} : vector<8x2x8xf32> to vector<8x2x2xf32>
    "tpu.trace_start"() <{level = 10 : i32, message = "nqd,nkd->nqk"}> : () -> ()
    %cst_26 = arith.constant dense<0.000000e+00> : vector<8x2x2xf32>
    %57 = tpu.matmul %55, %56, %cst_26 {dimension_numbers = #tpu.dot_dimension_numbers<[2], [2], [1], [1], [0, 0, 0, 1, 1, 1], [0], [0]>} : vector<8x2x2xf32>, vector<8x2x2xf32>, vector<8x2x2xf32> -> vector<8x2x2xf32>
    "tpu.trace_stop"() : () -> ()
    %cst_27 = arith.constant dense<0xFF800000> : vector<8x2xf32>
    %58 = vector.multi_reduction <maximumf>, %57, %cst_27 [2] : vector<8x2x2xf32> to vector<8x2xf32>
    %59 = vector.shape_cast %58 : vector<8x2xf32> to vector<8x2x1xf32>
    %60 = vector.broadcast %59 : vector<8x2x1xf32> to vector<8x2x2xf32>
    %61 = arith.subf %57, %60 : vector<8x2x2xf32>
    %62 = math.exp %61 : vector<8x2x2xf32>
    %cst_28 = arith.constant dense<0.000000e+00> : vector<8x2xf32>
    %63 = vector.multi_reduction <add>, %62, %cst_28 [2] : vector<8x2x2xf32> to vector<8x2xf32>
    %64 = vector.shape_cast %63 : vector<8x2xf32> to vector<8x2x1xf32>
    %65 = tpu.reciprocal %64 {approx = true} : vector<8x2x1xf32> -> vector<8x2x1xf32>
    %66 = vector.broadcast %65 : vector<8x2x1xf32> to vector<8x2x2xf32>
    %67 = arith.mulf %62, %66 : vector<8x2x2xf32>
    %68 = vector.extract_strided_slice %54 {offsets = [0, 0, 0], sizes = [8, 2, 2], strides = [1, 1, 1]} : vector<8x2x8xf32> to vector<8x2x2xf32>
    "tpu.trace_start"() <{level = 10 : i32, message = "nqk,nkd->nqd"}> : () -> ()
    %cst_29 = arith.constant dense<0.000000e+00> : vector<8x2x2xf32>
    %69 = tpu.matmul %67, %68, %cst_29 {dimension_numbers = #tpu.dot_dimension_numbers<[2], [1], [1], [2], [0, 0, 0, 1, 1, 2], [0], [0]>} : vector<8x2x2xf32>, vector<8x2x2xf32>, vector<8x2x2xf32> -> vector<8x2x2xf32>
    "tpu.trace_stop"() : () -> ()
    %70 = vector.extract_strided_slice %52 {offsets = [0, 0, 2], sizes = [8, 2, 2], strides = [1, 1, 1]} : vector<8x2x8xf32> to vector<8x2x2xf32>
    %71 = vector.extract_strided_slice %53 {offsets = [0, 0, 2], sizes = [8, 2, 2], strides = [1, 1, 1]} : vector<8x2x8xf32> to vector<8x2x2xf32>
    "tpu.trace_start"() <{level = 10 : i32, message = "nqd,nkd->nqk"}> : () -> ()
    %cst_30 = arith.constant dense<0.000000e+00> : vector<8x2x2xf32>
    %72 = tpu.matmul %70, %71, %cst_30 {dimension_numbers = #tpu.dot_dimension_numbers<[2], [2], [1], [1], [0, 0, 0, 1, 1, 1], [0], [0]>} : vector<8x2x2xf32>, vector<8x2x2xf32>, vector<8x2x2xf32> -> vector<8x2x2xf32>
    "tpu.trace_stop"() : () -> ()
    %cst_31 = arith.constant dense<0xFF800000> : vector<8x2xf32>
    %73 = vector.multi_reduction <maximumf>, %72, %cst_31 [2] : vector<8x2x2xf32> to vector<8x2xf32>
    %74 = vector.shape_cast %73 : vector<8x2xf32> to vector<8x2x1xf32>
    %75 = vector.broadcast %74 : vector<8x2x1xf32> to vector<8x2x2xf32>
    %76 = arith.subf %72, %75 : vector<8x2x2xf32>
    %77 = math.exp %76 : vector<8x2x2xf32>
    %cst_32 = arith.constant dense<0.000000e+00> : vector<8x2xf32>
    %78 = vector.multi_reduction <add>, %77, %cst_32 [2] : vector<8x2x2xf32> to vector<8x2xf32>
    %79 = vector.shape_cast %78 : vector<8x2xf32> to vector<8x2x1xf32>
    %80 = tpu.reciprocal %79 {approx = true} : vector<8x2x1xf32> -> vector<8x2x1xf32>
    %81 = vector.broadcast %80 : vector<8x2x1xf32> to vector<8x2x2xf32>
    %82 = arith.mulf %77, %81 : vector<8x2x2xf32>
    %83 = vector.extract_strided_slice %54 {offsets = [0, 0, 2], sizes = [8, 2, 2], strides = [1, 1, 1]} : vector<8x2x8xf32> to vector<8x2x2xf32>
    "tpu.trace_start"() <{level = 10 : i32, message = "nqk,nkd->nqd"}> : () -> ()
    %cst_33 = arith.constant dense<0.000000e+00> : vector<8x2x2xf32>
    %84 = tpu.matmul %82, %83, %cst_33 {dimension_numbers = #tpu.dot_dimension_numbers<[2], [1], [1], [2], [0, 0, 0, 1, 1, 2], [0], [0]>} : vector<8x2x2xf32>, vector<8x2x2xf32>, vector<8x2x2xf32> -> vector<8x2x2xf32>
    "tpu.trace_stop"() : () -> ()
    %85 = vector.extract_strided_slice %52 {offsets = [0, 0, 4], sizes = [8, 2, 2], strides = [1, 1, 1]} : vector<8x2x8xf32> to vector<8x2x2xf32>
    %86 = vector.extract_strided_slice %53 {offsets = [0, 0, 4], sizes = [8, 2, 2], strides = [1, 1, 1]} : vector<8x2x8xf32> to vector<8x2x2xf32>
    "tpu.trace_start"() <{level = 10 : i32, message = "nqd,nkd->nqk"}> : () -> ()
    %cst_34 = arith.constant dense<0.000000e+00> : vector<8x2x2xf32>
    %87 = tpu.matmul %85, %86, %cst_34 {dimension_numbers = #tpu.dot_dimension_numbers<[2], [2], [1], [1], [0, 0, 0, 1, 1, 1], [0], [0]>} : vector<8x2x2xf32>, vector<8x2x2xf32>, vector<8x2x2xf32> -> vector<8x2x2xf32>
    "tpu.trace_stop"() : () -> ()
    %cst_35 = arith.constant dense<0xFF800000> : vector<8x2xf32>
    %88 = vector.multi_reduction <maximumf>, %87, %cst_35 [2] : vector<8x2x2xf32> to vector<8x2xf32>
    %89 = vector.shape_cast %88 : vector<8x2xf32> to vector<8x2x1xf32>
    %90 = vector.broadcast %89 : vector<8x2x1xf32> to vector<8x2x2xf32>
    %91 = arith.subf %87, %90 : vector<8x2x2xf32>
    %92 = math.exp %91 : vector<8x2x2xf32>
    %cst_36 = arith.constant dense<0.000000e+00> : vector<8x2xf32>
    %93 = vector.multi_reduction <add>, %92, %cst_36 [2] : vector<8x2x2xf32> to vector<8x2xf32>
    %94 = vector.shape_cast %93 : vector<8x2xf32> to vector<8x2x1xf32>
    %95 = tpu.reciprocal %94 {approx = true} : vector<8x2x1xf32> -> vector<8x2x1xf32>
    %96 = vector.broadcast %95 : vector<8x2x1xf32> to vector<8x2x2xf32>
    %97 = arith.mulf %92, %96 : vector<8x2x2xf32>
    %98 = vector.extract_strided_slice %54 {offsets = [0, 0, 4], sizes = [8, 2, 2], strides = [1, 1, 1]} : vector<8x2x8xf32> to vector<8x2x2xf32>
    "tpu.trace_start"() <{level = 10 : i32, message = "nqk,nkd->nqd"}> : () -> ()
    %cst_37 = arith.constant dense<0.000000e+00> : vector<8x2x2xf32>
    %99 = tpu.matmul %97, %98, %cst_37 {dimension_numbers = #tpu.dot_dimension_numbers<[2], [1], [1], [2], [0, 0, 0, 1, 1, 2], [0], [0]>} : vector<8x2x2xf32>, vector<8x2x2xf32>, vector<8x2x2xf32> -> vector<8x2x2xf32>
    "tpu.trace_stop"() : () -> ()
    %100 = vector.extract_strided_slice %52 {offsets = [0, 0, 6], sizes = [8, 2, 2], strides = [1, 1, 1]} : vector<8x2x8xf32> to vector<8x2x2xf32>
    %101 = vector.extract_strided_slice %53 {offsets = [0, 0, 6], sizes = [8, 2, 2], strides = [1, 1, 1]} : vector<8x2x8xf32> to vector<8x2x2xf32>
    "tpu.trace_start"() <{level = 10 : i32, message = "nqd,nkd->nqk"}> : () -> ()
    %cst_38 = arith.constant dense<0.000000e+00> : vector<8x2x2xf32>
    %102 = tpu.matmul %100, %101, %cst_38 {dimension_numbers = #tpu.dot_dimension_numbers<[2], [2], [1], [1], [0, 0, 0, 1, 1, 1], [0], [0]>} : vector<8x2x2xf32>, vector<8x2x2xf32>, vector<8x2x2xf32> -> vector<8x2x2xf32>
    "tpu.trace_stop"() : () -> ()
    %cst_39 = arith.constant dense<0xFF800000> : vector<8x2xf32>
    %103 = vector.multi_reduction <maximumf>, %102, %cst_39 [2] : vector<8x2x2xf32> to vector<8x2xf32>
    %104 = vector.shape_cast %103 : vector<8x2xf32> to vector<8x2x1xf32>
    %105 = vector.broadcast %104 : vector<8x2x1xf32> to vector<8x2x2xf32>
    %106 = arith.subf %102, %105 : vector<8x2x2xf32>
    %107 = math.exp %106 : vector<8x2x2xf32>
    %cst_40 = arith.constant dense<0.000000e+00> : vector<8x2xf32>
    %108 = vector.multi_reduction <add>, %107, %cst_40 [2] : vector<8x2x2xf32> to vector<8x2xf32>
    %109 = vector.shape_cast %108 : vector<8x2xf32> to vector<8x2x1xf32>
    %110 = tpu.reciprocal %109 {approx = true} : vector<8x2x1xf32> -> vector<8x2x1xf32>
    %111 = vector.broadcast %110 : vector<8x2x1xf32> to vector<8x2x2xf32>
    %112 = arith.mulf %107, %111 : vector<8x2x2xf32>
    %113 = vector.extract_strided_slice %54 {offsets = [0, 0, 6], sizes = [8, 2, 2], strides = [1, 1, 1]} : vector<8x2x8xf32> to vector<8x2x2xf32>
    "tpu.trace_start"() <{level = 10 : i32, message = "nqk,nkd->nqd"}> : () -> ()
    %cst_41 = arith.constant dense<0.000000e+00> : vector<8x2x2xf32>
    %114 = tpu.matmul %112, %113, %cst_41 {dimension_numbers = #tpu.dot_dimension_numbers<[2], [1], [1], [2], [0, 0, 0, 1, 1, 2], [0], [0]>} : vector<8x2x2xf32>, vector<8x2x2xf32>, vector<8x2x2xf32> -> vector<8x2x2xf32>
    "tpu.trace_stop"() : () -> ()
    %115 = tpu.concatenate %69, %84, %99, %114 in 2 : vector<8x2x2xf32>, vector<8x2x2xf32>, vector<8x2x2xf32>, vector<8x2x2xf32> -> vector<8x2x8xf32>
    %116 = vector.extract_strided_slice %115 {offsets = [0, 0, 0], sizes = [1, 2, 8], strides = [1, 1, 1]} : vector<8x2x8xf32> to vector<1x2x8xf32>
    %117 = vector.shape_cast %116 : vector<1x2x8xf32> to vector<2x8xf32>
    %118 = vector.extract_strided_slice %115 {offsets = [1, 0, 0], sizes = [1, 2, 8], strides = [1, 1, 1]} : vector<8x2x8xf32> to vector<1x2x8xf32>
    %119 = vector.shape_cast %118 : vector<1x2x8xf32> to vector<2x8xf32>
    %120 = vector.extract_strided_slice %115 {offsets = [2, 0, 0], sizes = [1, 2, 8], strides = [1, 1, 1]} : vector<8x2x8xf32> to vector<1x2x8xf32>
    %121 = vector.shape_cast %120 : vector<1x2x8xf32> to vector<2x8xf32>
    %122 = vector.extract_strided_slice %115 {offsets = [3, 0, 0], sizes = [1, 2, 8], strides = [1, 1, 1]} : vector<8x2x8xf32> to vector<1x2x8xf32>
    %123 = vector.shape_cast %122 : vector<1x2x8xf32> to vector<2x8xf32>
    %124 = vector.extract_strided_slice %115 {offsets = [4, 0, 0], sizes = [1, 2, 8], strides = [1, 1, 1]} : vector<8x2x8xf32> to vector<1x2x8xf32>
    %125 = vector.shape_cast %124 : vector<1x2x8xf32> to vector<2x8xf32>
    %126 = vector.extract_strided_slice %115 {offsets = [5, 0, 0], sizes = [1, 2, 8], strides = [1, 1, 1]} : vector<8x2x8xf32> to vector<1x2x8xf32>
    %127 = vector.shape_cast %126 : vector<1x2x8xf32> to vector<2x8xf32>
    %128 = vector.extract_strided_slice %115 {offsets = [6, 0, 0], sizes = [1, 2, 8], strides = [1, 1, 1]} : vector<8x2x8xf32> to vector<1x2x8xf32>
    %129 = vector.shape_cast %128 : vector<1x2x8xf32> to vector<2x8xf32>
    %130 = vector.extract_strided_slice %115 {offsets = [7, 0, 0], sizes = [1, 2, 8], strides = [1, 1, 1]} : vector<8x2x8xf32> to vector<1x2x8xf32>
    %131 = vector.shape_cast %130 : vector<1x2x8xf32> to vector<2x8xf32>
    %132 = tpu.concatenate %117, %119, %121, %123, %125, %127, %129, %131 in 0 : vector<2x8xf32>, vector<2x8xf32>, vector<2x8xf32>, vector<2x8xf32>, vector<2x8xf32>, vector<2x8xf32>, vector<2x8xf32>, vector<2x8xf32> -> vector<16x8xf32>
    %cst_42 = arith.constant dense<0.000000e+00> : vector<16x8xf32>
    %133 = tpu.matmul %132, %28, %cst_42 {dimension_numbers = #tpu.dot_dimension_numbers<[1], [0], [0], [1], [0, 0, 1, 1], [], []>} : vector<16x8xf32>, vector<8x8xf32>, vector<16x8xf32> -> vector<16x8xf32>
    %134 = vector.broadcast %29 : vector<1x8xf32> to vector<16x8xf32>
    %135 = arith.addf %133, %134 : vector<16x8xf32>
    %136 = arith.addf %135, %25 : vector<16x8xf32>
    %cst_43 = arith.constant 0.000000e+00 : f32
    %137 = vector.broadcast %cst_43 : f32 to vector<16x8xf32>
    %138 = arith.maximumf %136, %137 : vector<16x8xf32>
    %c40_44 = arith.constant 40 : index
    %c0_45 = arith.constant 0 : index
    %139 = vector.load %arg2[%c40_44, %c0_45] : memref<85x8xf32, #tpu.memory_space<vmem>>, vector<8x8xf32>
    %cst_46 = arith.constant dense<0.000000e+00> : vector<16x8xf32>
    %140 = tpu.matmul %138, %139, %cst_46 {dimension_numbers = #tpu.dot_dimension_numbers<[1], [0], [0], [1], [0, 0, 1, 1], [], []>} : vector<16x8xf32>, vector<8x8xf32>, vector<16x8xf32> -> vector<16x8xf32>
    %c0_47 = arith.constant 0 : index
    %c48 = arith.constant 48 : index
    %141 = vector.load %arg7[%c0_47, %c48] : memref<1x249xf32, #tpu.memory_space<vmem>>, vector<1x8xf32>
    %142 = vector.broadcast %141 : vector<1x8xf32> to vector<16x8xf32>
    %143 = arith.addf %140, %142 : vector<16x8xf32>
    %cst_48 = arith.constant 0.000000e+00 : f32
    %144 = vector.broadcast %cst_48 : f32 to vector<16x8xf32>
    %145 = arith.maximumf %143, %144 : vector<16x8xf32>
    %c0_49 = arith.constant 0 : index
    %c0_50 = arith.constant 0 : index
    %146 = vector.load %arg3[%c0_49, %c0_50] : memref<75x21xf32, #tpu.memory_space<vmem>>, vector<54x21xf32>
    %cst_51 = arith.constant dense<0.000000e+00> : vector<16x21xf32>
    %147 = tpu.matmul %1, %146, %cst_51 {dimension_numbers = #tpu.dot_dimension_numbers<[1], [0], [0], [1], [0, 0, 1, 1], [], []>} : vector<16x54xf32>, vector<54x21xf32>, vector<16x21xf32> -> vector<16x21xf32>
    %c0_52 = arith.constant 0 : index
    %c56 = arith.constant 56 : index
    %148 = vector.load %arg7[%c0_52, %c56] : memref<1x249xf32, #tpu.memory_space<vmem>>, vector<1x21xf32>
    %149 = vector.broadcast %148 : vector<1x21xf32> to vector<16x21xf32>
    %150 = arith.addf %147, %149 : vector<16x21xf32>
    %cst_53 = arith.constant 0.000000e+00 : f32
    %151 = vector.broadcast %cst_53 : f32 to vector<16x21xf32>
    %152 = arith.maximumf %150, %151 : vector<16x21xf32>
    %c0_54 = arith.constant 0 : index
    %c0_55 = arith.constant 0 : index
    %153 = vector.load %arg5[%c0_54, %c0_55] : memref<21x63xf32, #tpu.memory_space<vmem>>, vector<21x63xf32>
    %c0_56 = arith.constant 0 : index
    %c77 = arith.constant 77 : index
    %154 = vector.load %arg7[%c0_56, %c77] : memref<1x249xf32, #tpu.memory_space<vmem>>, vector<1x63xf32>
    %c54 = arith.constant 54 : index
    %c0_57 = arith.constant 0 : index
    %155 = vector.load %arg3[%c54, %c0_57] : memref<75x21xf32, #tpu.memory_space<vmem>>, vector<21x21xf32>
    %c0_58 = arith.constant 0 : index
    %c140 = arith.constant 140 : index
    %156 = vector.load %arg7[%c0_58, %c140] : memref<1x249xf32, #tpu.memory_space<vmem>>, vector<1x21xf32>
    %cst_59 = arith.constant dense<0.000000e+00> : vector<16x63xf32>
    %157 = tpu.matmul %152, %153, %cst_59 {dimension_numbers = #tpu.dot_dimension_numbers<[1], [0], [0], [1], [0, 0, 1, 1], [], []>} : vector<16x21xf32>, vector<21x63xf32>, vector<16x63xf32> -> vector<16x63xf32>
    %158 = vector.broadcast %154 : vector<1x63xf32> to vector<16x63xf32>
    %159 = arith.addf %157, %158 : vector<16x63xf32>
    %160 = vector.extract_strided_slice %159 {offsets = [0, 0], sizes = [2, 63], strides = [1, 1]} : vector<16x63xf32> to vector<2x63xf32>
    %161 = vector.extract_strided_slice %159 {offsets = [2, 0], sizes = [2, 63], strides = [1, 1]} : vector<16x63xf32> to vector<2x63xf32>
    %162 = vector.extract_strided_slice %159 {offsets = [4, 0], sizes = [2, 63], strides = [1, 1]} : vector<16x63xf32> to vector<2x63xf32>
    %163 = vector.extract_strided_slice %159 {offsets = [6, 0], sizes = [2, 63], strides = [1, 1]} : vector<16x63xf32> to vector<2x63xf32>
    %164 = vector.extract_strided_slice %159 {offsets = [8, 0], sizes = [2, 63], strides = [1, 1]} : vector<16x63xf32> to vector<2x63xf32>
    %165 = vector.extract_strided_slice %159 {offsets = [10, 0], sizes = [2, 63], strides = [1, 1]} : vector<16x63xf32> to vector<2x63xf32>
    %166 = vector.extract_strided_slice %159 {offsets = [12, 0], sizes = [2, 63], strides = [1, 1]} : vector<16x63xf32> to vector<2x63xf32>
    %167 = vector.extract_strided_slice %159 {offsets = [14, 0], sizes = [2, 63], strides = [1, 1]} : vector<16x63xf32> to vector<2x63xf32>
    %168 = vector.shape_cast %160 : vector<2x63xf32> to vector<1x2x63xf32>
    %169 = vector.shape_cast %161 : vector<2x63xf32> to vector<1x2x63xf32>
    %170 = vector.shape_cast %162 : vector<2x63xf32> to vector<1x2x63xf32>
    %171 = vector.shape_cast %163 : vector<2x63xf32> to vector<1x2x63xf32>
    %172 = vector.shape_cast %164 : vector<2x63xf32> to vector<1x2x63xf32>
    %173 = vector.shape_cast %165 : vector<2x63xf32> to vector<1x2x63xf32>
    %174 = vector.shape_cast %166 : vector<2x63xf32> to vector<1x2x63xf32>
    %175 = vector.shape_cast %167 : vector<2x63xf32> to vector<1x2x63xf32>
    %176 = tpu.concatenate %168, %169, %170, %171, %172, %173, %174, %175 in 0 : vector<1x2x63xf32>, vector<1x2x63xf32>, vector<1x2x63xf32>, vector<1x2x63xf32>, vector<1x2x63xf32>, vector<1x2x63xf32>, vector<1x2x63xf32>, vector<1x2x63xf32> -> vector<8x2x63xf32>
    %177 = vector.extract_strided_slice %176 {offsets = [0, 0, 0], sizes = [8, 2, 21], strides = [1, 1, 1]} : vector<8x2x63xf32> to vector<8x2x21xf32>
    %cst_60 = arith.constant 0.377964467 : f32
    %178 = vector.broadcast %cst_60 : f32 to vector<8x2x21xf32>
    %179 = arith.mulf %177, %178 : vector<8x2x21xf32>
    %180 = vector.extract_strided_slice %176 {offsets = [0, 0, 21], sizes = [8, 2, 21], strides = [1, 1, 1]} : vector<8x2x63xf32> to vector<8x2x21xf32>
    %181 = vector.extract_strided_slice %176 {offsets = [0, 0, 42], sizes = [8, 2, 21], strides = [1, 1, 1]} : vector<8x2x63xf32> to vector<8x2x21xf32>
    %182 = vector.extract_strided_slice %179 {offsets = [0, 0, 0], sizes = [8, 2, 7], strides = [1, 1, 1]} : vector<8x2x21xf32> to vector<8x2x7xf32>
    %183 = vector.extract_strided_slice %180 {offsets = [0, 0, 0], sizes = [8, 2, 7], strides = [1, 1, 1]} : vector<8x2x21xf32> to vector<8x2x7xf32>
    "tpu.trace_start"() <{level = 10 : i32, message = "nqd,nkd->nqk"}> : () -> ()
    %cst_61 = arith.constant dense<0.000000e+00> : vector<8x2x2xf32>
    %184 = tpu.matmul %182, %183, %cst_61 {dimension_numbers = #tpu.dot_dimension_numbers<[2], [2], [1], [1], [0, 0, 0, 1, 1, 1], [0], [0]>} : vector<8x2x7xf32>, vector<8x2x7xf32>, vector<8x2x2xf32> -> vector<8x2x2xf32>
    "tpu.trace_stop"() : () -> ()
    %cst_62 = arith.constant dense<0xFF800000> : vector<8x2xf32>
    %185 = vector.multi_reduction <maximumf>, %184, %cst_62 [2] : vector<8x2x2xf32> to vector<8x2xf32>
    %186 = vector.shape_cast %185 : vector<8x2xf32> to vector<8x2x1xf32>
    %187 = vector.broadcast %186 : vector<8x2x1xf32> to vector<8x2x2xf32>
    %188 = arith.subf %184, %187 : vector<8x2x2xf32>
    %189 = math.exp %188 : vector<8x2x2xf32>
    %cst_63 = arith.constant dense<0.000000e+00> : vector<8x2xf32>
    %190 = vector.multi_reduction <add>, %189, %cst_63 [2] : vector<8x2x2xf32> to vector<8x2xf32>
    %191 = vector.shape_cast %190 : vector<8x2xf32> to vector<8x2x1xf32>
    %192 = tpu.reciprocal %191 {approx = true} : vector<8x2x1xf32> -> vector<8x2x1xf32>
    %193 = vector.broadcast %192 : vector<8x2x1xf32> to vector<8x2x2xf32>
    %194 = arith.mulf %189, %193 : vector<8x2x2xf32>
    %195 = vector.extract_strided_slice %181 {offsets = [0, 0, 0], sizes = [8, 2, 7], strides = [1, 1, 1]} : vector<8x2x21xf32> to vector<8x2x7xf32>
    "tpu.trace_start"() <{level = 10 : i32, message = "nqk,nkd->nqd"}> : () -> ()
    %cst_64 = arith.constant dense<0.000000e+00> : vector<8x2x7xf32>
    %196 = tpu.matmul %194, %195, %cst_64 {dimension_numbers = #tpu.dot_dimension_numbers<[2], [1], [1], [2], [0, 0, 0, 1, 1, 2], [0], [0]>} : vector<8x2x2xf32>, vector<8x2x7xf32>, vector<8x2x7xf32> -> vector<8x2x7xf32>
    "tpu.trace_stop"() : () -> ()
    %197 = vector.extract_strided_slice %179 {offsets = [0, 0, 7], sizes = [8, 2, 7], strides = [1, 1, 1]} : vector<8x2x21xf32> to vector<8x2x7xf32>
    %198 = vector.extract_strided_slice %180 {offsets = [0, 0, 7], sizes = [8, 2, 7], strides = [1, 1, 1]} : vector<8x2x21xf32> to vector<8x2x7xf32>
    "tpu.trace_start"() <{level = 10 : i32, message = "nqd,nkd->nqk"}> : () -> ()
    %cst_65 = arith.constant dense<0.000000e+00> : vector<8x2x2xf32>
    %199 = tpu.matmul %197, %198, %cst_65 {dimension_numbers = #tpu.dot_dimension_numbers<[2], [2], [1], [1], [0, 0, 0, 1, 1, 1], [0], [0]>} : vector<8x2x7xf32>, vector<8x2x7xf32>, vector<8x2x2xf32> -> vector<8x2x2xf32>
    "tpu.trace_stop"() : () -> ()
    %cst_66 = arith.constant dense<0xFF800000> : vector<8x2xf32>
    %200 = vector.multi_reduction <maximumf>, %199, %cst_66 [2] : vector<8x2x2xf32> to vector<8x2xf32>
    %201 = vector.shape_cast %200 : vector<8x2xf32> to vector<8x2x1xf32>
    %202 = vector.broadcast %201 : vector<8x2x1xf32> to vector<8x2x2xf32>
    %203 = arith.subf %199, %202 : vector<8x2x2xf32>
    %204 = math.exp %203 : vector<8x2x2xf32>
    %cst_67 = arith.constant dense<0.000000e+00> : vector<8x2xf32>
    %205 = vector.multi_reduction <add>, %204, %cst_67 [2] : vector<8x2x2xf32> to vector<8x2xf32>
    %206 = vector.shape_cast %205 : vector<8x2xf32> to vector<8x2x1xf32>
    %207 = tpu.reciprocal %206 {approx = true} : vector<8x2x1xf32> -> vector<8x2x1xf32>
    %208 = vector.broadcast %207 : vector<8x2x1xf32> to vector<8x2x2xf32>
    %209 = arith.mulf %204, %208 : vector<8x2x2xf32>
    %210 = vector.extract_strided_slice %181 {offsets = [0, 0, 7], sizes = [8, 2, 7], strides = [1, 1, 1]} : vector<8x2x21xf32> to vector<8x2x7xf32>
    "tpu.trace_start"() <{level = 10 : i32, message = "nqk,nkd->nqd"}> : () -> ()
    %cst_68 = arith.constant dense<0.000000e+00> : vector<8x2x7xf32>
    %211 = tpu.matmul %209, %210, %cst_68 {dimension_numbers = #tpu.dot_dimension_numbers<[2], [1], [1], [2], [0, 0, 0, 1, 1, 2], [0], [0]>} : vector<8x2x2xf32>, vector<8x2x7xf32>, vector<8x2x7xf32> -> vector<8x2x7xf32>
    "tpu.trace_stop"() : () -> ()
    %212 = vector.extract_strided_slice %179 {offsets = [0, 0, 14], sizes = [8, 2, 7], strides = [1, 1, 1]} : vector<8x2x21xf32> to vector<8x2x7xf32>
    %213 = vector.extract_strided_slice %180 {offsets = [0, 0, 14], sizes = [8, 2, 7], strides = [1, 1, 1]} : vector<8x2x21xf32> to vector<8x2x7xf32>
    "tpu.trace_start"() <{level = 10 : i32, message = "nqd,nkd->nqk"}> : () -> ()
    %cst_69 = arith.constant dense<0.000000e+00> : vector<8x2x2xf32>
    %214 = tpu.matmul %212, %213, %cst_69 {dimension_numbers = #tpu.dot_dimension_numbers<[2], [2], [1], [1], [0, 0, 0, 1, 1, 1], [0], [0]>} : vector<8x2x7xf32>, vector<8x2x7xf32>, vector<8x2x2xf32> -> vector<8x2x2xf32>
    "tpu.trace_stop"() : () -> ()
    %cst_70 = arith.constant dense<0xFF800000> : vector<8x2xf32>
    %215 = vector.multi_reduction <maximumf>, %214, %cst_70 [2] : vector<8x2x2xf32> to vector<8x2xf32>
    %216 = vector.shape_cast %215 : vector<8x2xf32> to vector<8x2x1xf32>
    %217 = vector.broadcast %216 : vector<8x2x1xf32> to vector<8x2x2xf32>
    %218 = arith.subf %214, %217 : vector<8x2x2xf32>
    %219 = math.exp %218 : vector<8x2x2xf32>
    %cst_71 = arith.constant dense<0.000000e+00> : vector<8x2xf32>
    %220 = vector.multi_reduction <add>, %219, %cst_71 [2] : vector<8x2x2xf32> to vector<8x2xf32>
    %221 = vector.shape_cast %220 : vector<8x2xf32> to vector<8x2x1xf32>
    %222 = tpu.reciprocal %221 {approx = true} : vector<8x2x1xf32> -> vector<8x2x1xf32>
    %223 = vector.broadcast %222 : vector<8x2x1xf32> to vector<8x2x2xf32>
    %224 = arith.mulf %219, %223 : vector<8x2x2xf32>
    %225 = vector.extract_strided_slice %181 {offsets = [0, 0, 14], sizes = [8, 2, 7], strides = [1, 1, 1]} : vector<8x2x21xf32> to vector<8x2x7xf32>
    "tpu.trace_start"() <{level = 10 : i32, message = "nqk,nkd->nqd"}> : () -> ()
    %cst_72 = arith.constant dense<0.000000e+00> : vector<8x2x7xf32>
    %226 = tpu.matmul %224, %225, %cst_72 {dimension_numbers = #tpu.dot_dimension_numbers<[2], [1], [1], [2], [0, 0, 0, 1, 1, 2], [0], [0]>} : vector<8x2x2xf32>, vector<8x2x7xf32>, vector<8x2x7xf32> -> vector<8x2x7xf32>
    "tpu.trace_stop"() : () -> ()
    %227 = tpu.concatenate %196, %211, %226 in 2 : vector<8x2x7xf32>, vector<8x2x7xf32>, vector<8x2x7xf32> -> vector<8x2x21xf32>
    %228 = vector.extract_strided_slice %227 {offsets = [0, 0, 0], sizes = [1, 2, 21], strides = [1, 1, 1]} : vector<8x2x21xf32> to vector<1x2x21xf32>
    %229 = vector.shape_cast %228 : vector<1x2x21xf32> to vector<2x21xf32>
    %230 = vector.extract_strided_slice %227 {offsets = [1, 0, 0], sizes = [1, 2, 21], strides = [1, 1, 1]} : vector<8x2x21xf32> to vector<1x2x21xf32>
    %231 = vector.shape_cast %230 : vector<1x2x21xf32> to vector<2x21xf32>
    %232 = vector.extract_strided_slice %227 {offsets = [2, 0, 0], sizes = [1, 2, 21], strides = [1, 1, 1]} : vector<8x2x21xf32> to vector<1x2x21xf32>
    %233 = vector.shape_cast %232 : vector<1x2x21xf32> to vector<2x21xf32>
    %234 = vector.extract_strided_slice %227 {offsets = [3, 0, 0], sizes = [1, 2, 21], strides = [1, 1, 1]} : vector<8x2x21xf32> to vector<1x2x21xf32>
    %235 = vector.shape_cast %234 : vector<1x2x21xf32> to vector<2x21xf32>
    %236 = vector.extract_strided_slice %227 {offsets = [4, 0, 0], sizes = [1, 2, 21], strides = [1, 1, 1]} : vector<8x2x21xf32> to vector<1x2x21xf32>
    %237 = vector.shape_cast %236 : vector<1x2x21xf32> to vector<2x21xf32>
    %238 = vector.extract_strided_slice %227 {offsets = [5, 0, 0], sizes = [1, 2, 21], strides = [1, 1, 1]} : vector<8x2x21xf32> to vector<1x2x21xf32>
    %239 = vector.shape_cast %238 : vector<1x2x21xf32> to vector<2x21xf32>
    %240 = vector.extract_strided_slice %227 {offsets = [6, 0, 0], sizes = [1, 2, 21], strides = [1, 1, 1]} : vector<8x2x21xf32> to vector<1x2x21xf32>
    %241 = vector.shape_cast %240 : vector<1x2x21xf32> to vector<2x21xf32>
    %242 = vector.extract_strided_slice %227 {offsets = [7, 0, 0], sizes = [1, 2, 21], strides = [1, 1, 1]} : vector<8x2x21xf32> to vector<1x2x21xf32>
    %243 = vector.shape_cast %242 : vector<1x2x21xf32> to vector<2x21xf32>
    %244 = tpu.concatenate %229, %231, %233, %235, %237, %239, %241, %243 in 0 : vector<2x21xf32>, vector<2x21xf32>, vector<2x21xf32>, vector<2x21xf32>, vector<2x21xf32>, vector<2x21xf32>, vector<2x21xf32>, vector<2x21xf32> -> vector<16x21xf32>
    %cst_73 = arith.constant dense<0.000000e+00> : vector<16x21xf32>
    %245 = tpu.matmul %244, %155, %cst_73 {dimension_numbers = #tpu.dot_dimension_numbers<[1], [0], [0], [1], [0, 0, 1, 1], [], []>} : vector<16x21xf32>, vector<21x21xf32>, vector<16x21xf32> -> vector<16x21xf32>
    %246 = vector.broadcast %156 : vector<1x21xf32> to vector<16x21xf32>
    %247 = arith.addf %245, %246 : vector<16x21xf32>
    %248 = arith.addf %247, %152 : vector<16x21xf32>
    %cst_74 = arith.constant 0.000000e+00 : f32
    %249 = vector.broadcast %cst_74 : f32 to vector<16x21xf32>
    %250 = arith.maximumf %248, %249 : vector<16x21xf32>
    %c64 = arith.constant 64 : index
    %c0_75 = arith.constant 0 : index
    %251 = vector.load %arg2[%c64, %c0_75] : memref<85x8xf32, #tpu.memory_space<vmem>>, vector<21x8xf32>
    %cst_76 = arith.constant dense<0.000000e+00> : vector<16x8xf32>
    %252 = tpu.matmul %250, %251, %cst_76 {dimension_numbers = #tpu.dot_dimension_numbers<[1], [0], [0], [1], [0, 0, 1, 1], [], []>} : vector<16x21xf32>, vector<21x8xf32>, vector<16x8xf32> -> vector<16x8xf32>
    %c0_77 = arith.constant 0 : index
    %c161 = arith.constant 161 : index
    %253 = vector.load %arg7[%c0_77, %c161] : memref<1x249xf32, #tpu.memory_space<vmem>>, vector<1x8xf32>
    %254 = vector.broadcast %253 : vector<1x8xf32> to vector<16x8xf32>
    %255 = arith.addf %252, %254 : vector<16x8xf32>
    %cst_78 = arith.constant 0.000000e+00 : f32
    %256 = vector.broadcast %cst_78 : f32 to vector<16x8xf32>
    %257 = arith.maximumf %255, %256 : vector<16x8xf32>
    %258 = arith.mulf %145, %257 : vector<16x8xf32>
    %cst_79 = arith.constant 0.000000e+00 : f32
    %259 = vector.broadcast %cst_79 : f32 to vector<16x8xf32>
    %260 = arith.maximumf %258, %259 : vector<16x8xf32>
    %c48_80 = arith.constant 48 : index
    %c0_81 = arith.constant 0 : index
    %261 = vector.load %arg2[%c48_80, %c0_81] : memref<85x8xf32, #tpu.memory_space<vmem>>, vector<8x8xf32>
    %cst_82 = arith.constant dense<0.000000e+00> : vector<16x8xf32>
    %262 = tpu.matmul %260, %261, %cst_82 {dimension_numbers = #tpu.dot_dimension_numbers<[1], [0], [0], [1], [0, 0, 1, 1], [], []>} : vector<16x8xf32>, vector<8x8xf32>, vector<16x8xf32> -> vector<16x8xf32>
    %c0_83 = arith.constant 0 : index
    %c169 = arith.constant 169 : index
    %263 = vector.load %arg7[%c0_83, %c169] : memref<1x249xf32, #tpu.memory_space<vmem>>, vector<1x8xf32>
    %264 = vector.broadcast %263 : vector<1x8xf32> to vector<16x8xf32>
    %265 = arith.addf %262, %264 : vector<16x8xf32>
    %cst_84 = arith.constant 0.000000e+00 : f32
    %266 = vector.broadcast %cst_84 : f32 to vector<16x8xf32>
    %267 = arith.maximumf %265, %266 : vector<16x8xf32>
    %c56_85 = arith.constant 56 : index
    %c0_86 = arith.constant 0 : index
    %268 = vector.load %arg2[%c56_85, %c0_86] : memref<85x8xf32, #tpu.memory_space<vmem>>, vector<8x8xf32>
    %cst_87 = arith.constant dense<0.000000e+00> : vector<16x8xf32>
    %269 = tpu.matmul %267, %268, %cst_87 {dimension_numbers = #tpu.dot_dimension_numbers<[1], [0], [0], [1], [0, 0, 1, 1], [], []>} : vector<16x8xf32>, vector<8x8xf32>, vector<16x8xf32> -> vector<16x8xf32>
    %c0_88 = arith.constant 0 : index
    %c177 = arith.constant 177 : index
    %270 = vector.load %arg7[%c0_88, %c177] : memref<1x249xf32, #tpu.memory_space<vmem>>, vector<1x8xf32>
    %271 = vector.broadcast %270 : vector<1x8xf32> to vector<16x8xf32>
    %272 = arith.addf %269, %271 : vector<16x8xf32>
    %cst_89 = arith.constant 0.000000e+00 : f32
    %273 = vector.broadcast %cst_89 : f32 to vector<16x8xf32>
    %274 = arith.maximumf %272, %273 : vector<16x8xf32>
    %275 = vector.extract_strided_slice %274 {offsets = [0, 0], sizes = [2, 8], strides = [1, 1]} : vector<16x8xf32> to vector<2x8xf32>
    %276 = vector.extract_strided_slice %274 {offsets = [2, 0], sizes = [2, 8], strides = [1, 1]} : vector<16x8xf32> to vector<2x8xf32>
    %277 = vector.extract_strided_slice %274 {offsets = [4, 0], sizes = [2, 8], strides = [1, 1]} : vector<16x8xf32> to vector<2x8xf32>
    %278 = vector.extract_strided_slice %274 {offsets = [6, 0], sizes = [2, 8], strides = [1, 1]} : vector<16x8xf32> to vector<2x8xf32>
    %279 = vector.extract_strided_slice %274 {offsets = [8, 0], sizes = [2, 8], strides = [1, 1]} : vector<16x8xf32> to vector<2x8xf32>
    %280 = vector.extract_strided_slice %274 {offsets = [10, 0], sizes = [2, 8], strides = [1, 1]} : vector<16x8xf32> to vector<2x8xf32>
    %281 = vector.extract_strided_slice %274 {offsets = [12, 0], sizes = [2, 8], strides = [1, 1]} : vector<16x8xf32> to vector<2x8xf32>
    %282 = vector.extract_strided_slice %274 {offsets = [14, 0], sizes = [2, 8], strides = [1, 1]} : vector<16x8xf32> to vector<2x8xf32>
    %283 = tpu.concatenate %275, %276, %277, %278, %279, %280, %281, %282 in 1 : vector<2x8xf32>, vector<2x8xf32>, vector<2x8xf32>, vector<2x8xf32>, vector<2x8xf32>, vector<2x8xf32>, vector<2x8xf32>, vector<2x8xf32> -> vector<2x64xf32>
    %c0_90 = arith.constant 0 : index
    %c0_91 = arith.constant 0 : index
    %284 = vector.load %arg6[%c0_90, %c0_91] : memref<64x64xf32, #tpu.memory_space<vmem>>, vector<64x64xf32>
    %cst_92 = arith.constant dense<0.000000e+00> : vector<2x64xf32>
    %285 = tpu.matmul %283, %284, %cst_92 {dimension_numbers = #tpu.dot_dimension_numbers<[1], [0], [0], [1], [0, 0, 1, 1], [], []>} : vector<2x64xf32>, vector<64x64xf32>, vector<2x64xf32> -> vector<2x64xf32>
    %c0_93 = arith.constant 0 : index
    %c185 = arith.constant 185 : index
    %286 = vector.load %arg7[%c0_93, %c185] : memref<1x249xf32, #tpu.memory_space<vmem>>, vector<1x64xf32>
    %287 = vector.broadcast %286 : vector<1x64xf32> to vector<2x64xf32>
    %288 = arith.addf %285, %287 : vector<2x64xf32>
    %cst_94 = arith.constant dense<0xFF800000> : vector<2xf32>
    %289 = vector.multi_reduction <maximumf>, %288, %cst_94 [1] : vector<2x64xf32> to vector<2xf32>
    %290 = vector.shape_cast %289 : vector<2xf32> to vector<2x1xf32>
    %291 = vector.broadcast %290 : vector<2x1xf32> to vector<2x64xf32>
    %292 = arith.subf %288, %291 : vector<2x64xf32>
    %293 = math.exp %292 : vector<2x64xf32>
    %cst_95 = arith.constant dense<0.000000e+00> : vector<2xf32>
    %294 = vector.multi_reduction <add>, %293, %cst_95 [1] : vector<2x64xf32> to vector<2xf32>
    %295 = vector.shape_cast %294 : vector<2xf32> to vector<2x1xf32>
    %296 = vector.broadcast %295 : vector<2x1xf32> to vector<2x64xf32>
    %297 = arith.divf %293, %296 : vector<2x64xf32>
    %c0_96 = arith.constant 0 : index
    %c0_97 = arith.constant 0 : index
    %298 = vector.load %arg8[%c0_96, %c0_97] : memref<2x64xf32, #tpu.memory_space<vmem>>, vector<2x64xf32>
    tpu.vector_store %arg8[%c0_96, %c0_97], %297 {strides = array<i32>} : memref<2x64xf32, #tpu.memory_space<vmem>>, vector<2x64xf32>,
    return
  }
}

</mosaic_0001>

<bundles_post_ra>
// kernel: chess_ai_forward.1
= control target key start
LH: loop header
LB: loop body
LE: loop exit
PB: predicated region body
PF: predicated region fallthrough
CT: control target
= control target key end

     0   :  { %vm39_vm0 = vcmask 64512   ;;  %s6674_s0 = inlined_call_operand.vmem [shape: f32[16,8], index: 0, kind: input, shape index: {}]   ;;  %s6675_s1 = inlined_call_operand.vmem [shape: f32[16,54], index: 1, kind: input, shape index: {}]   ;;  %s6676_s2 = inlined_call_operand.vmem [shape: f32[85,8], index: 2, kind: input, shape index: {}]   ;;  %s6677_s3 = inlined_call_operand.vmem [shape: f32[75,21], index: 3, kind: input, shape index: {}]   ;;  %s6678_s4 = inlined_call_operand.vmem [shape: f32[8,24], index: 4, kind: input, shape index: {}]   ;;  %s6679_s5 = inlined_call_operand.vmem [shape: f32[21,63], index: 5, kind: input, shape index: {}]   ;;  %s6680_s6 = inlined_call_operand.vmem [shape: f32[64,64], index: 6, kind: input, shape index: {}]   ;;  %s6681_s7 = inlined_call_operand.vmem [shape: f32[1,249], index: 7, kind: input, shape index: {}]   ;;  %s6682_s8 = inlined_call_operand.hbm [shape: f32[2,64], index: 8, kind: output, shape index: {}]  }
   0x1   :  { %v34_v0 = vld [vmem:[%s6676_s2] sm:$0xff] }
   0x2   :  { %v30_v1 = vld [vmem:[%s6674_s0] sm:$0xff]  ;;  %61 = vmatpush.msra.mxu0 %v34_v0 }
   0x3   :  { %4633 = vmatmul.msk.f32.vlgmr.msra.gmra.mxu0 %vm39_vm0, %v30_v1 }
   0x4   :  { %13 = vsyncpa [#allocation3], 0  ;;  %v31_v2 = vld [vmem:[%s6674_s0 + $0x8] sm:$0xff]  ;;  %v4925_v3 = vld [vmem:[%s6681_s7] ss:$0 sm:$0xff]  ;;  %s5185_s13 = smov 112  }
   0x5   :  { %180 = vrot.lane.b32.xlu0 %v4925_v3, %s5185_s13  ;;  %v86_v4 = vld [vmem:[%s6676_s2 + $0x10] sm:$0xff]  ;;  %v178_v5 = vld [vmem:[%s6678_s4] sm:$0xff]  ;;  %v85_v6 = vld [vmem:[%s6676_s2 + $0x8] sm:$0xff]  ;;  %vm73_vm1 = vcmask 1041408   ;;  %vm79_vm2 = vcmask 1045504   ;;  %s5186_s4 = smov 120  }
   0x6   :  { %106 = vmatpush.msra.mxu1 %v86_v4  ;;  %198 = vmatpush.msrb.mxu0 %v178_v5  ;;  %v142_v7 = vld [vmem:[%s6676_s2 + $0x18] sm:$0xff]  ;;  %s5187_s21 = smov 118   ;;  %s5188_s22 = smov 126   ;;  %vm230_vm3 = vcmask 15360   ;;  %vm445_vm4 = vcmask 9216   ;;  %vm2565_vm5 = vcmask 441344  }
   0x7   :  { %134 = vmatpush.msra.mxu2 %v85_v6  ;;  %163 = vmatpush.msra.mxu3 %v142_v7  ;;  %s5189_s23 = smov 110   ;;  %s5190_s24 = smov 124   ;;  %vm2625_vm6 = vcmask 1044480   ;;  %vm2618_vm7 = vcmask 171008   ;;  %vm2438_vm8 = vcmask 31744   ;;  %vm2447_vm9 = vcmask 48128  }
   0x8   :  { %s5191_s25 = smov 116   ;;  %s5192_s26 = smov 108   ;;  %vm2475_vm10 = vcmask 1043456   ;;  %vm2615_vm11 = vcmask 416768   ;;  %vm2676_vm12 = vcmask 56320   ;;  %vm4323_vm13 = vcmask 113664  }
   0x9   :  { %s5193_s27 = smov 122   ;;  %s5194_s28 = smov 114   ;;  %vm4544_vm14 = vcmask 130048   ;;  %vm4546_vm15 = vcmask 195584  }
   0xa   :  { %s5195_s29 = smov 106   ;;  %s5196_s30 = smov 2  }
   0xb   :  { %4634 = vmatmul.msk.f32.gmra.mxu0 %vm39_vm0, %v31_v2  ;;  %s5197_s9 = smov 4   ;;  %s5198_s12 = smov 72  }
   0xc   :  { %s5199_s10 = smov 6   ;;  %s5200_s18 = smov 51  }
   0xd   :  { %s5201_s20 = smov 88   ;;  %s5218_s11 = smov 40  }
   0xe   :  { %s5220_s14 = smov 71  }
  0x77   :  { %v181_v22 = vpop.permute.xlu0 %180 }
  0x80   :  { %v63_v8 = vpop.f32.mrf.mxu0 }
  0x81   :  { %v64_v9 = vadd.f32 %v4925_v3, %v63_v8 }
  0x83   :  { %v69_v10 = vmax.f32 %v64_v9, 0.0 }
  0x85   :  { %4635 = vmatmul.msk.f32.vlgmr.msra.gmra.mxu1 %vm39_vm0, %v69_v10  ;;  %4641 = vmatmul.msk.f32.vlgmr.msrb.gmra.mxu0 %vm39_vm0, %v69_v10  ;;  %v74_v11 = vrot.slane %v69_v10, 6  ;;  %v80_v17 = vrot.slane %v69_v10, 2 }
  0x87   :  { %v78_v12 = vsel %vm73_vm1, 0.0, %v74_v11 }
  0x88   :  { %v66_v13 = vpop.f32.mrf.mxu0  ;;  %4637 = vmatmul.msk.f32.vlgmr.msra.gmra.mxu2 %vm39_vm0, %v78_v12 }
  0x89   :  { %v67_v14 = vadd.f32 %v4925_v3, %v66_v13 }
  0x8b   :  { %v70_v15 = vmax.f32 %v67_v14, 0.0 }
  0x8d   :  { %4642 = vmatmul.msk.f32.gmra.mxu0 %vm39_vm0, %v70_v15  ;;  %v75_v16 = vrot.slane %v70_v15, 6  ;;  %v81_v18 = vrot.slane %v70_v15, 2  ;;  %4636 = vmatmul.msk.f32.gmra.mxu1 %vm39_vm0, %v70_v15 }
  0x8f   :  { %v76_v19 = vsel %vm73_vm1, %v74_v11, %v75_v16  ;;  %v82_v20 = vsel %vm79_vm2, %v80_v17, %v81_v18  ;;  %v84_v21 = vsel %vm79_vm2, %v81_v18, 0.0 }
  0x90   :  { %4638 = vmatmul.msk.f32.gmra.mxu2 %vm39_vm0, %v76_v19  ;;  %4639 = vmatmul.msk.f32.vlgmr.msra.gmra.mxu3 %vm39_vm0, %v82_v20 }
  0x98   :  { %4640 = vmatmul.msk.f32.gmra.mxu3 %vm39_vm0, %v84_v21 }
 0x102   :  { %v200_v23 = vpop.f32.mrf.mxu0  ;;  %v5417_v55 = vpop.f32.mrf.mxu1 }
 0x103   :  { %v5306_v24 = vadd.f32 %v200_v23, %v181_v22 }
 0x105   :  { %v5309_v25 = vrot.slane %v5306_v24, 4  ;;  %v5312_v26 = vrot.slane %v5306_v24, 2  ;;  %v5324_v30 = vrot.slane %v5306_v24, 6  ;;  %v5364_v34 = vmul.f32 0.70710677, %v5306_v24 }
 0x107   :  { %283 = vrot.lane.b32.xlu1 %v5309_v25, %s5186_s4  ;;  %256 = vrot.lane.b32.xlu0 %v5312_v26, %s5186_s4  ;;  %v5357_v33 = vmul.f32 0.70710677, %v5312_v26  ;;  %v5372_v40 = vmul.f32 0.70710677, %v5309_v25  ;;  %v5398_v49 = vmul.f32 0.70710677, %v5324_v30 }
 0x10a   :  { %v203_v27 = vpop.f32.mrf.mxu0  ;;  %v5423_v58 = vpop.f32.mrf.mxu1 }
 0x10b   :  { %v5318_v28 = vadd.f32 %v203_v27, %v181_v22  ;;  %v5415_v54 = vpop.f32.mrf.mxu2 }
 0x10d   :  { %v5321_v29 = vrot.slane %v5318_v28, 2  ;;  %v5333_v31 = vrot.slane %v5318_v28, 4  ;;  %v5342_v32 = vrot.slane %v5318_v28, 6  ;;  %v5385_v45 = vmul.f32 0.70710677, %v5318_v28 }
 0x10f   :  { %364 = vrot.lane.b32.xlu2 %v5321_v29, %s5186_s4  ;;  %228 = vrot.lane.b32.xlu1 %v5306_v24, %s5186_s4  ;;  %v5382_v44 = vmul.f32 0.70710677, %v5321_v29  ;;  %v5401_v50 = vmul.f32 0.70710677, %v5333_v31  ;;  %v5410_v52 = vmul.f32 0.70710677, %v5342_v32 }
 0x110   :  { %310 = vrot.lane.b32.xlu0 %v5324_v30, %s5186_s4 }
 0x113   :  { %v5419_v56 = vpop.f32.mrf.mxu3  ;;  %v5421_v57 = vpop.f32.mrf.mxu2 }
 0x117   :  { %337 = vrot.lane.b32.xlu2 %v5318_v28, %s5186_s4  ;;  %391 = vrot.lane.b32.xlu1 %v5333_v31, %s5186_s4 }
 0x118   :  { %534 = vrot.lane.b32.xlu0 %v5306_v24, %s5185_s13 }
 0x11b   :  { %v5425_v59 = vpop.f32.mrf.mxu3 }
 0x11f   :  { %418 = vrot.lane.b32.xlu2 %v5342_v32, %s5186_s4  ;;  %561 = vrot.lane.b32.xlu1 %v5312_v26, %s5185_s13 }
 0x120   :  { %780 = vrot.lane.b32.xlu0 %v5312_v26, %s5187_s21 }
 0x127   :  { %669 = vrot.lane.b32.xlu2 %v5321_v29, %s5185_s13  ;;  %642 = vrot.lane.b32.xlu1 %v5318_v28, %s5185_s13 }
 0x128   :  { %752 = vrot.lane.b32.xlu0 %v5306_v24, %s5187_s21 }
 0x12f   :  { %588 = vrot.lane.b32.xlu2 %v5309_v25, %s5185_s13 }
 0x130   :  { %778 = vrot.lane.b32.xlu0 %v5357_v33, %s5188_s22 }
 0x138   :  { %750 = vrot.lane.b32.xlu0 %v5364_v34, %s5188_s22 }
 0x169   :  { %v365_v35 = vpop.permute.xlu2 %364 }
 0x171   :  { %v338_v36 = vpop.permute.xlu2 %337 }
 0x179   :  { %v419_v37 = vpop.permute.xlu2 %418  ;;  %v284_v38 = vpop.permute.xlu1 %283 }
 0x17a   :  { %v257_v39 = vpop.permute.xlu0 %256  ;;  %4647 = vmatpush.xpose.msk.msrb.mxu3 %vm230_vm3, %v284_v38 }
 0x17b   :  { %4645 = vmatpush.xpose.msk.msrb.mxu2 %vm230_vm3, %v257_v39 }
 0x17d   :  { %4648 = vmatmul.msk.f32.vlgmr.msrb.gmra.mxu3 %vm230_vm3, %v5372_v40 }
 0x17e   :  { %4653 = vmatpush.xpose.msk.msra.mxu3 %vm230_vm3, %v365_v35  ;;  %4646 = vmatmul.msk.f32.vlgmr.msrb.gmra.mxu2 %vm230_vm3, %v5357_v33 }
 0x17f   :  { %4651 = vmatpush.xpose.msk.msra.mxu2 %vm230_vm3, %v338_v36 }
 0x181   :  { %v670_v41 = vpop.permute.xlu2 %669  ;;  %v229_v42 = vpop.permute.xlu1 %228 }
 0x182   :  { %v311_v43 = vpop.permute.xlu0 %310  ;;  %4643 = vmatpush.xpose.msk.msrb.mxu1 %vm230_vm3, %v229_v42 }
 0x185   :  { %4644 = vmatmul.msk.f32.vlgmr.msrb.gmra.mxu1 %vm230_vm3, %v5364_v34  ;;  %4654 = vmatmul.msk.f32.vlgmr.msra.gmra.mxu3 %vm230_vm3, %v5382_v44 }
 0x186   :  { %4649 = vmatpush.xpose.msk.msra.mxu1 %vm230_vm3, %v311_v43  ;;  %4652 = vmatmul.msk.f32.vlgmr.msra.gmra.mxu2 %vm230_vm3, %v5385_v45 }
 0x189   :  { %v589_v46 = vpop.permute.xlu2 %588  ;;  %v392_v47 = vpop.permute.xlu1 %391 }
 0x18a   :  { %4657 = vmatpush.xpose.msk.msrb.mxu1 %vm230_vm3, %v419_v37  ;;  %v535_v48 = vpop.permute.xlu0 %534  ;;  %4655 = vmatpush.xpose.msk.msra.mxu0 %vm230_vm3, %v392_v47 }
 0x18b   :  { %4659 = vmatpush.msk.msrb.mxu2 %vm73_vm1, %v535_v48 }
 0x18d   :  { %4650 = vmatmul.msk.f32.vlgmr.msra.gmra.mxu1 %vm230_vm3, %v5398_v49  ;;  %4656 = vmatmul.msk.f32.vlgmr.msra.gmra.mxu0 %vm230_vm3, %v5401_v50 }
 0x18e   :  { %4663 = vmatpush.msk.msrb.mxu0 %vm73_vm1, %v589_v46 }
 0x191   :  { %v562_v51 = vpop.permute.xlu1 %561 }
 0x192   :  { %4661 = vmatpush.msk.msrb.mxu3 %vm73_vm1, %v562_v51  ;;  %v5447_v12 = vpop.permute.xlu0 %780 }
 0x194   :  { %4669 = vmatpush.msk.msra.mxu3 %vm73_vm1, %v670_v41 }
 0x195   :  { %4658 = vmatmul.msk.f32.vlgmr.msrb.gmra.mxu1 %vm230_vm3, %v5410_v52 }
 0x199   :  { %v643_v53 = vpop.permute.xlu1 %642 }
 0x19a   :  { %4667 = vmatpush.msk.msra.mxu2 %vm73_vm1, %v643_v53  ;;  %v5449_v13 = vpop.permute.xlu0 %752 }
 0x1a2   :  { %v5453_v14 = vpop.permute.xlu0 %778 }
 0x1aa   :  { %v5455_v15 = vpop.permute.xlu0 %750 }
 0x200   :  { %v307_v0 = vpop.f32.mrf.mxu3 }
 0x201   :  { %v280_v60 = vpop.f32.mrf.mxu2  ;;  %v452_v8 = vsel %vm445_vm4, %v307_v0, -inf }
 0x202   :  { %v253_v61 = vpop.f32.mrf.mxu1  ;;  %v449_v62 = vsel %vm445_vm4, %v280_v60, -inf }
 0x203   :  { %450 = vmax.xlane.f32.xlu0 %v449_v62  ;;  %v446_v63 = vsel %vm445_vm4, %v253_v61, -inf }
 0x204   :  { %447 = vmax.xlane.f32.xlu1 %v446_v63 }
 0x208   :  { %v388_v3 = vpop.f32.mrf.mxu3 }
 0x209   :  { %v461_v4 = vsel %vm445_vm4, %v388_v3, -inf  ;;  %v5433_v5 = vpop.f32.mrf.mxu2 }
 0x20a   :  { %v415_v1 = vpop.f32.mrf.mxu0  ;;  %v458_v6 = vsel %vm445_vm4, %v5433_v5, -inf  ;;  %v334_v7 = vpop.f32.mrf.mxu1 }
 0x20b   :  { %v464_v2 = vsel %vm445_vm4, %v415_v1, -inf  ;;  %v455_v11 = vsel %vm445_vm4, %v334_v7, -inf }
 0x20c   :  { %465 = vmax.xlane.f32.xlu2 %v464_v2 }
 0x212   :  { %v5442_v9 = vpop.f32.mrf.mxu1 }
 0x213   :  { %v467_v10 = vsel %vm445_vm4, %v5442_v9, -inf }
 0x214   :  { %462 = vmax.xlane.f32.xlu2 %v461_v4 }
 0x217   :  { %892 = vrot.lane.b32.xlu0 %v5321_v29, %s5187_s21 }
 0x21c   :  { %459 = vmax.xlane.f32.xlu2 %v458_v6 }
 0x21d   :  { %864 = vrot.lane.b32.xlu1 %v5318_v28, %s5187_s21 }
 0x225   :  { %890 = vrot.lane.b32.xlu1 %v5382_v44, %s5188_s22 }
 0x241   :  { %453 = vmax.xlane.f32.xlu0 %v452_v8 }
 0x249   :  { %468 = vmax.xlane.f32.xlu0 %v467_v10 }
 0x24f   :  { %456 = vmax.xlane.f32.xlu1 %v455_v11 }
 0x268   :  { %615 = vrot.lane.b32.xlu1 %v5324_v30, %s5185_s13 }
 0x276   :  { %v451_v19 = vpop.xlane.xlu0 %450 }
 0x277   :  { %v448_v16 = vpop.xlane.xlu1 %447  ;;  %v471_v21 = vsub.f32 %v280_v60, %v451_v19 }
 0x278   :  { %v470_v17 = vsub.f32 %v253_v61, %v448_v16 }
 0x279   :  { %v480_v36 = vmul.f32 1.442695, %v471_v21 }
 0x27a   :  { %v478_v18 = vmul.f32 1.442695, %v470_v17 }
 0x27c   :  { %4929 = vpow2.f32 %v478_v18 }
 0x27f   :  { %v466_v20 = vpop.xlane.xlu2 %465 }
 0x280   :  { %v476_v22 = vsub.f32 %v415_v1, %v466_v20 }
 0x282   :  { %v5457_v23 = vpop.eup %4929  ;;  %v490_v27 = vmul.f32 1.442695, %v476_v22 }
 0x283   :  { %v494_v35 = vsel %vm445_vm4, %v5457_v23, 0.0 }
 0x284   :  { %4931 = vpow2.f32 %v490_v27  ;;  %495 = vadd.xlane.f32.xlu2 %v494_v35 }
 0x285   :  { %4933 = vpow2.f32 %v480_v36 }
 0x287   :  { %v463_v37 = vpop.xlane.xlu2 %462 }
 0x288   :  { %v475_v38 = vsub.f32 %v388_v3, %v463_v37 }
 0x289   :  { %v5472_v51 = vpop.permute.xlu0 %892 }
 0x28a   :  { %v5461_v39 = vpop.eup %4931  ;;  %v488_v41 = vmul.f32 1.442695, %v475_v38 }
 0x28b   :  { %v512_v42 = vsel %vm445_vm4, %v5461_v39, 0.0  ;;  %v4934_v43 = vpop.eup %4933 }
 0x28c   :  { %4935 = vpow2.f32 %v488_v41  ;;  %513 = vadd.xlane.f32.xlu0 %v512_v42  ;;  %v497_v46 = vsel %vm445_vm4, %v4934_v43, 0.0 }
 0x28f   :  { %v5474_v53 = vpop.permute.xlu1 %864  ;;  %v460_v10 = vpop.xlane.xlu2 %459 }
 0x292   :  { %v5466_v47 = vpop.eup %4935  ;;  %498 = vadd.xlane.f32.xlu1 %v497_v46 }
 0x293   :  { %v509_v48 = vsel %vm445_vm4, %v5466_v47, 0.0 }
 0x294   :  { %510 = vadd.xlane.f32.xlu0 %v509_v48 }
 0x297   :  { %v5480_v63 = vpop.permute.xlu1 %890 }
 0x2a8   :  { %862 = vrot.lane.b32.xlu0 %v5385_v45, %s5188_s22 }
 0x2b0   :  { %834 = vrot.lane.b32.xlu0 %v5398_v49, %s5188_s22 }
 0x2b4   :  { %v454_v60 = vpop.xlane.xlu0 %453 }
 0x2b5   :  { %v472_v61 = vsub.f32 %v307_v0, %v454_v60 }
 0x2b7   :  { %v482_v62 = vmul.f32 1.442695, %v472_v61 }
 0x2b8   :  { %918 = vrot.lane.b32.xlu0 %v5401_v50, %s5188_s22 }
 0x2b9   :  { %4937 = vpow2.f32 %v482_v62 }
 0x2bc   :  { %v469_v11 = vpop.xlane.xlu0 %468 }
 0x2bd   :  { %v477_v37 = vsub.f32 %v5442_v9, %v469_v11 }
 0x2bf   :  { %v5482_v1 = vpop.eup %4937 }
 0x2c0   :  { %1062 = vrot.lane.b32.xlu0 %v5306_v24, %s5189_s23  ;;  %v500_v2 = vsel %vm445_vm4, %v5482_v1, 0.0 }
 0x2c1   :  { %501 = vadd.xlane.f32.xlu1 %v500_v2 }
 0x2c2   :  { %v457_v3 = vpop.xlane.xlu1 %456 }
 0x2c3   :  { %v473_v4 = vsub.f32 %v334_v7, %v457_v3 }
 0x2c5   :  { %v484_v0 = vmul.f32 1.442695, %v473_v4 }
 0x2c7   :  { %4939 = vpow2.f32 %v484_v0 }
 0x2c8   :  { %1170 = vrot.lane.b32.xlu0 %v5318_v28, %s5189_s23 }
 0x2cd   :  { %v5490_v6 = vpop.eup %4939 }
 0x2ce   :  { %v503_v8 = vsel %vm445_vm4, %v5490_v6, 0.0 }
 0x2cf   :  { %504 = vadd.xlane.f32.xlu2 %v503_v8 }
 0x2d0   :  { %1278 = vrot.lane.b32.xlu0 %v5364_v34, %s5190_s24 }
 0x2d8   :  { %1143 = vrot.lane.b32.xlu0 %v5324_v30, %s5189_s23 }
 0x2da   :  { %723 = vrot.lane.b32.xlu1 %v5342_v32, %s5185_s13  ;;  %v616_v7 = vpop.permute.xlu1 %615 }
 0x2db   :  { %4665 = vmatpush.msk.msra.mxu1 %vm73_vm1, %v616_v7 }
 0x2e0   :  { %1418 = vrot.lane.b32.xlu0 %v5382_v44, %s5190_s24 }
 0x2e2   :  { %836 = vrot.lane.b32.xlu1 %v5324_v30, %s5187_s21 }
 0x2e7   :  { %696 = vrot.lane.b32.xlu2 %v5333_v31, %s5185_s13  ;;  %s5210_s13 = smov 80  }
 0x2e8   :  { %1390 = vrot.lane.b32.xlu0 %v5385_v45, %s5190_s24 }
 0x2ea   :  { %920 = vrot.lane.b32.xlu1 %v5333_v31, %s5187_s21 }
 0x2ef   :  { %808 = vrot.lane.b32.xlu2 %v5309_v25, %s5187_s21 }
 0x2f2   :  { %946 = vrot.lane.b32.xlu1 %v5410_v52, %s5188_s22 }
 0x2f7   :  { %806 = vrot.lane.b32.xlu2 %v5372_v40, %s5188_s22  ;;  %v496_v16 = vpop.xlane.xlu2 %495  ;;  %s5202_s22 = smov 107  }
 0x2f8   :  { %4941 = vrcp.f32 %v496_v16 }
 0x2fa   :  { %1089 = vrot.lane.b32.xlu1 %v5312_v26, %s5189_s23 }
 0x2fe   :  { %v4942_v17 = vpop.eup %4941 }
 0x2ff   :  { %v526_v18 = vmul.f32 %v4942_v17, %v5457_v23  ;;  %v514_v19 = vpop.xlane.xlu0 %513  ;;  %v474_v23 = vsub.f32 %v5433_v5, %v460_v10  ;;  %v492_v5 = vmul.f32 1.442695, %v477_v37 }
 0x301   :  { %4660 = vmatmul.msk.f32.vlgmr.msrb.gmra.mxu2 %vm230_vm3, %v526_v18  ;;  %v486_v36 = vmul.f32 1.442695, %v474_v23 }
 0x302   :  { %1116 = vrot.lane.b32.xlu1 %v5309_v25, %s5189_s23  ;;  %4675 = vmatpush.xpose.msk.msrb.mxu2 %vm230_vm3, %v5449_v13 }
 0x305   :  { %v499_v20 = vpop.xlane.xlu1 %498 }
 0x306   :  { %4943 = vrcp.f32 %v499_v20 }
 0x307   :  { %v511_v21 = vpop.xlane.xlu0 %510 }
 0x308   :  { %4945 = vrcp.f32 %v511_v21 }
 0x309   :  { %4947 = vpow2.f32 %v486_v36 }
 0x30a   :  { %1420 = vrot.lane.b32.xlu1 %v5321_v29, %s5191_s25  ;;  %4949 = vpow2.f32 %v492_v5 }
 0x30c   :  { %v4944_v22 = vpop.eup %4943 }
 0x30d   :  { %v527_v27 = vmul.f32 %v4944_v22, %v4934_v43 }
 0x30e   :  { %v4946_v35 = vpop.eup %4945 }
 0x30f   :  { %4662 = vmatmul.msk.f32.vlgmr.msrb.gmra.mxu3 %vm230_vm3, %v527_v27  ;;  %v531_v13 = vmul.f32 %v4946_v35, %v5466_v47 }
 0x310   :  { %4677 = vmatpush.xpose.msk.msrb.mxu3 %vm230_vm3, %v5447_v12  ;;  %v4948_v12 = vpop.eup %4947 }
 0x311   :  { %v506_v38 = vsel %vm445_vm4, %v4948_v12, 0.0  ;;  %v5543_v41 = vpop.eup %4949 }
 0x312   :  { %1224 = vrot.lane.b32.xlu1 %v5333_v31, %s5189_s23  ;;  %v515_v9 = vsel %vm445_vm4, %v5543_v41, 0.0 }
 0x317   :  { %4670 = vmatmul.msk.f32.vlgmr.msra.gmra.mxu3 %vm230_vm3, %v531_v13 }
 0x318   :  { %4685 = vmatpush.xpose.msk.msra.mxu3 %vm230_vm3, %v5472_v51 }
 0x31a   :  { %1251 = vrot.lane.b32.xlu1 %v5342_v32, %s5189_s23 }
 0x31f   :  { %4678 = vmatmul.msk.f32.vlgmr.msrb.gmra.mxu3 %vm230_vm3, %v5453_v14 }
 0x320   :  { %507 = vadd.xlane.f32.xlu2 %v506_v38 }
 0x327   :  { %4686 = vmatmul.msk.f32.vlgmr.msra.gmra.mxu3 %vm230_vm3, %v5480_v63  ;;  %v863_v63 = vpop.permute.xlu0 %862 }
 0x328   :  { %516 = vadd.xlane.f32.xlu2 %v515_v9 }
 0x32f   :  { %v835_v2 = vpop.permute.xlu0 %834 }
 0x334   :  { %v502_v42 = vpop.xlane.xlu1 %501 }
 0x335   :  { %4951 = vrcp.f32 %v502_v42 }
 0x336   :  { %4953 = vrcp.f32 %v514_v19 }
 0x337   :  { %v919_v0 = vpop.permute.xlu0 %918 }
 0x33b   :  { %v4952_v43 = vpop.eup %4951 }
 0x33c   :  { %v528_v46 = vmul.f32 %v4952_v43, %v5482_v1  ;;  %v4954_v47 = vpop.eup %4953 }
 0x33d   :  { %v532_v51 = vmul.f32 %v4954_v47, %v5461_v39 }
 0x33e   :  { %4664 = vmatmul.msk.f32.vlgmr.msrb.gmra.mxu0 %vm230_vm3, %v528_v46 }
 0x33f   :  { %v1063_v16 = vpop.permute.xlu0 %1062 }
 0x340   :  { %948 = vrot.lane.b32.xlu2 %v5342_v32, %s5187_s21 }
 0x342   :  { %v505_v14 = vpop.xlane.xlu2 %504 }
 0x343   :  { %4955 = vrcp.f32 %v505_v14 }
 0x347   :  { %v1171_v19 = vpop.permute.xlu0 %1170 }
 0x348   :  { %1197 = vrot.lane.b32.xlu2 %v5321_v29, %s5189_s23  ;;  %s5203_s23 = smov 86  }
 0x349   :  { %v4956_v48 = vpop.eup %4955 }
 0x34a   :  { %v529_v60 = vmul.f32 %v4956_v48, %v5490_v6  ;;  %v697_v61 = vpop.permute.xlu2 %696 }
 0x34b   :  { %4671 = vmatpush.msk.msra.mxu0 %vm73_vm1, %v697_v61 }
 0x34c   :  { %v724_v62 = vpop.permute.xlu1 %723  ;;  %4666 = vmatmul.msk.f32.vlgmr.msra.gmra.mxu1 %vm230_vm3, %v529_v60  ;;  %4672 = vmatmul.msk.f32.vlgmr.msra.gmra.mxu0 %vm230_vm3, %v532_v51 }
 0x34d   :  { %4673 = vmatpush.msk.msrb.mxu1 %vm73_vm1, %v724_v62 }
 0x34f   :  { %v5586_v36 = vpop.permute.xlu0 %1278 }
 0x350   :  { %1308 = vrot.lane.b32.xlu2 %v5312_v26, %s5191_s25 }
 0x352   :  { %v809_v1 = vpop.permute.xlu2 %808 }
 0x353   :  { %4679 = vmatpush.xpose.msk.msrb.mxu0 %vm230_vm3, %v809_v1 }
 0x354   :  { %v837_v39 = vpop.permute.xlu1 %836 }
 0x355   :  { %4681 = vmatpush.xpose.msk.msra.mxu1 %vm230_vm3, %v837_v39 }
 0x358   :  { %1280 = vrot.lane.b32.xlu2 %v5306_v24, %s5191_s25 }
 0x35a   :  { %v807_v3 = vpop.permute.xlu2 %806 }
 0x35b   :  { %4680 = vmatmul.msk.f32.vlgmr.msrb.gmra.mxu0 %vm230_vm3, %v807_v3 }
 0x35c   :  { %v921_v4 = vpop.permute.xlu1 %920 }
 0x35d   :  { %4687 = vmatpush.xpose.msk.msra.mxu0 %vm230_vm3, %v921_v4 }
 0x360   :  { %1306 = vrot.lane.b32.xlu2 %v5357_v33, %s5190_s24 }
 0x363   :  { %4688 = vmatmul.msk.f32.vlgmr.msra.gmra.mxu0 %vm230_vm3, %v919_v0 }
 0x364   :  { %v947_v6 = vpop.permute.xlu1 %946 }
 0x368   :  { %1392 = vrot.lane.b32.xlu2 %v5318_v28, %s5191_s25 }
 0x36c   :  { %v1090_v8 = vpop.permute.xlu1 %1089 }
 0x36d   :  { %4693 = vmatpush.msk.msrb.mxu3 %vm73_vm1, %v1090_v8 }
 0x374   :  { %v1117_v7 = vpop.permute.xlu1 %1116 }
 0x375   :  { %4695 = vmatpush.msk.msrb.mxu0 %vm73_vm1, %v1117_v7 }
 0x37c   :  { %v5576_v10 = vpop.permute.xlu1 %1420 }
 0x384   :  { %v1225_v11 = vpop.permute.xlu1 %1224  ;;  %v5608_v14 = vpop.f32.mrf.mxu2 }
 0x385   :  { %4703 = vmatpush.msk.msra.mxu0 %vm73_vm1, %v1225_v11 }
 0x38c   :  { %v1252_v38 = vpop.permute.xlu1 %1251 }
 0x392   :  { %v5579_v17 = vpop.f32.mrf.mxu3 }
 0x393   :  { %v508_v18 = vpop.xlane.xlu2 %507 }
 0x394   :  { %4957 = vrcp.f32 %v508_v18 }
 0x39a   :  { %v4958_v20 = vpop.eup %4957  ;;  %v5581_v21 = vpop.f32.mrf.mxu3 }
 0x39b   :  { %v530_v22 = vmul.f32 %v4958_v20, %v4948_v12  ;;  %v517_v27 = vpop.xlane.xlu2 %516  ;;  %v1144_v12 = vpop.permute.xlu0 %1143 }
 0x39c   :  { %4959 = vrcp.f32 %v517_v27 }
 0x39d   :  { %4668 = vmatmul.msk.f32.vlgmr.msra.gmra.mxu2 %vm230_vm3, %v530_v22 }
 0x39e   :  { %4683 = vmatpush.xpose.msk.msra.mxu2 %vm230_vm3, %v5474_v53 }
 0x3a2   :  { %v4960_v23 = vpop.eup %4959  ;;  %v803_v35 = vpop.f32.mrf.mxu3 }
 0x3a3   :  { %v533_v13 = vmul.f32 %v4960_v23, %v5543_v41  ;;  %v949_v37 = vpop.permute.xlu2 %948  ;;  %v977_v5 = vsel %vm445_vm4, %v803_v35, -inf  ;;  %v5631_v7 = vpop.permute.xlu0 %1418 }
 0x3a4   :  { %978 = vmax.xlane.f32.xlu2 %v977_v5 }
 0x3a5   :  { %4674 = vmatmul.msk.f32.vlgmr.msrb.gmra.mxu1 %vm230_vm3, %v533_v13  ;;  %4676 = vmatmul.msk.f32.vlgmr.msrb.gmra.mxu2 %vm230_vm3, %v5455_v15 }
 0x3a6   :  { %4689 = vmatpush.xpose.msk.msrb.mxu1 %vm230_vm3, %v949_v37  ;;  %4691 = vmatpush.msk.msrb.mxu2 %vm73_vm1, %v1063_v16 }
 0x3aa   :  { %v915_v1 = vpop.f32.mrf.mxu3 }
 0x3ab   :  { %v1198_v53 = vpop.permute.xlu2 %1197  ;;  %v989_v4 = vsel %vm445_vm4, %v915_v1, -inf  ;;  %v5635_v16 = vpop.permute.xlu0 %1390 }
 0x3ac   :  { %4701 = vmatpush.msk.msra.mxu3 %vm73_vm1, %v1198_v53 }
 0x3ad   :  { %4682 = vmatmul.msk.f32.vlgmr.msra.gmra.mxu1 %vm230_vm3, %v835_v2  ;;  %4684 = vmatmul.msk.f32.vlgmr.msra.gmra.mxu2 %vm230_vm3, %v863_v63 }
 0x3ae   :  { %4697 = vmatpush.msk.msra.mxu1 %vm73_vm1, %v1144_v12  ;;  %4699 = vmatpush.msk.msra.mxu2 %vm73_vm1, %v1171_v19 }
 0x3b5   :  { %4690 = vmatmul.msk.f32.vlgmr.msrb.gmra.mxu1 %vm230_vm3, %v947_v6  ;;  %v5621_v6 = vpop.permute.xlu2 %1308 }
 0x3b6   :  { %4705 = vmatpush.msk.msrb.mxu1 %vm73_vm1, %v1252_v38 }
 0x3bb   :  { %v5602_v15 = vpop.f32.mrf.mxu0 }
 0x3bd   :  { %v5629_v8 = vpop.permute.xlu2 %1280 }
 0x3c5   :  { %v5633_v11 = vpop.permute.xlu2 %1306 }
 0x3c9   :  { %v5604_v41 = vpop.f32.mrf.mxu0  ;;  %v5610_v47 = vpop.f32.mrf.mxu1 }
 0x3cd   :  { %v5637_v18 = vpop.permute.xlu2 %1392 }
 0x3d8   :  { %v831_v9 = vpop.f32.mrf.mxu0 }
 0x3d9   :  { %v980_v42 = vsel %vm445_vm4, %v831_v9, -inf }
 0x3da   :  { %981 = vmax.xlane.f32.xlu0 %v980_v42 }
 0x3e0   :  { %v943_v43 = vpop.f32.mrf.mxu0 }
 0x3e1   :  { %v992_v46 = vsel %vm445_vm4, %v943_v43, -inf }
 0x3e2   :  { %993 = vmax.xlane.f32.xlu2 %v992_v46 }
 0x417   :  { %v979_v27 = vpop.xlane.xlu2 %978 }
 0x418   :  { %v999_v23 = vsub.f32 %v803_v35, %v979_v27 }
 0x41a   :  { %v1008_v13 = vmul.f32 1.442695, %v999_v23 }
 0x420   :  { %v5612_v48 = vpop.f32.mrf.mxu2 }
 0x422   :  { %v5614_v51 = vpop.f32.mrf.mxu1 }
 0x428   :  { %v775_v60 = vpop.f32.mrf.mxu2 }
 0x429   :  { %v974_v61 = vsel %vm445_vm4, %v775_v60, -inf }
 0x42a   :  { %975 = vmax.xlane.f32.xlu0 %v974_v61  ;;  %v859_v62 = vpop.f32.mrf.mxu1 }
 0x42b   :  { %v983_v63 = vsel %vm445_vm4, %v859_v62, -inf }
 0x42c   :  { %984 = vmax.xlane.f32.xlu1 %v983_v63 }
 0x430   :  { %v887_v39 = vpop.f32.mrf.mxu2 }
 0x431   :  { %v986_v2 = vsel %vm445_vm4, %v887_v39, -inf }
 0x432   :  { %987 = vmax.xlane.f32.xlu2 %v986_v2  ;;  %v971_v3 = vpop.f32.mrf.mxu1 }
 0x433   :  { %v995_v0 = vsel %vm445_vm4, %v971_v3, -inf }
 0x434   :  { %990 = vmax.xlane.f32.xlu1 %v989_v4  ;;  %996 = vmax.xlane.f32.xlu0 %v995_v0 }
 0x448   :  { %1336 = vrot.lane.b32.xlu0 %v5309_v25, %s5191_s25 }
 0x44a   :  { %1334 = vrot.lane.b32.xlu2 %v5372_v40, %s5190_s24 }
 0x44d   :  { %1364 = vrot.lane.b32.xlu1 %v5324_v30, %s5191_s25  ;;  %v982_v19 = vpop.xlane.xlu0 %981 }
 0x44e   :  { %v1000_v20 = vsub.f32 %v831_v9, %v982_v19 }
 0x450   :  { %v1010_v22 = vmul.f32 1.442695, %v1000_v20 }
 0x452   :  { %4961 = vpow2.f32 %v1010_v22 }
 0x453   :  { %4963 = vpow2.f32 %v1008_v13 }
 0x455   :  { %v994_v38 = vpop.xlane.xlu2 %993 }
 0x456   :  { %v1004_v35 = vsub.f32 %v943_v43, %v994_v38 }
 0x458   :  { %v5639_v37 = vpop.eup %4961  ;;  %v1018_v4 = vmul.f32 1.442695, %v1004_v35 }
 0x459   :  { %v1028_v5 = vsel %vm445_vm4, %v5639_v37, 0.0  ;;  %v5643_v53 = vpop.eup %4963 }
 0x45a   :  { %v1025_v12 = vsel %vm445_vm4, %v5643_v53, 0.0 }
 0x477   :  { %1029 = vadd.xlane.f32.xlu1 %v1028_v5 }
 0x47f   :  { %1026 = vadd.xlane.f32.xlu1 %v1025_v12 }
 0x49d   :  { %v976_v9 = vpop.xlane.xlu0 %975 }
 0x49e   :  { %v998_v42 = vsub.f32 %v775_v60, %v976_v9 }
 0x49f   :  { %v985_v46 = vpop.xlane.xlu1 %984 }
 0x4a0   :  { %v1006_v61 = vmul.f32 1.442695, %v998_v42  ;;  %v1001_v63 = vsub.f32 %v859_v62, %v985_v46 }
 0x4a2   :  { %4965 = vpow2.f32 %v1006_v61  ;;  %v1012_v2 = vmul.f32 1.442695, %v1001_v63 }
 0x4a4   :  { %4967 = vpow2.f32 %v1012_v2 }
 0x4a5   :  { %v988_v0 = vpop.xlane.xlu2 %987  ;;  %4969 = vpow2.f32 %v1018_v4 }
 0x4a6   :  { %v1002_v27 = vsub.f32 %v887_v39, %v988_v0 }
 0x4a7   :  { %v991_v19 = vpop.xlane.xlu1 %990  ;;  %v997_v20 = vpop.xlane.xlu0 %996 }
 0x4a8   :  { %v5647_v22 = vpop.eup %4965  ;;  %v1003_v23 = vsub.f32 %v915_v1, %v991_v19  ;;  %v1005_v13 = vsub.f32 %v971_v3, %v997_v20  ;;  %v1014_v38 = vmul.f32 1.442695, %v1002_v27 }
 0x4a9   :  { %v1022_v60 = vsel %vm445_vm4, %v5647_v22, 0.0 }
 0x4aa   :  { %v5651_v5 = vpop.eup %4967  ;;  %v1016_v43 = vmul.f32 1.442695, %v1003_v23  ;;  %v1020_v62 = vmul.f32 1.442695, %v1005_v13  ;;  %1023 = vadd.xlane.f32.xlu2 %v1022_v60 }
 0x4ab   :  { %v1031_v12 = vsel %vm445_vm4, %v5651_v5, 0.0  ;;  %v5655_v9 = vpop.eup %4969 }
 0x4ac   :  { %4971 = vpow2.f32 %v1016_v43  ;;  %1032 = vadd.xlane.f32.xlu0 %v1031_v12  ;;  %v1040_v1 = vsel %vm445_vm4, %v5655_v9, 0.0 }
 0x4ad   :  { %4973 = vpow2.f32 %v1020_v62 }
 0x4ae   :  { %4975 = vpow2.f32 %v1014_v38 }
 0x4b2   :  { %v5659_v39 = vpop.eup %4971  ;;  %1041 = vadd.xlane.f32.xlu2 %v1040_v1 }
 0x4b3   :  { %v5661_v3 = vpop.eup %4973  ;;  %v1037_v42 = vsel %vm445_vm4, %v5659_v39, 0.0 }
 0x4b4   :  { %1038 = vadd.xlane.f32.xlu0 %v1037_v42  ;;  %v1043_v46 = vsel %vm445_vm4, %v5661_v3, 0.0  ;;  %v5667_v35 = vpop.eup %4975 }
 0x4b5   :  { %1044 = vadd.xlane.f32.xlu1 %v1043_v46  ;;  %v1034_v61 = vsel %vm445_vm4, %v5667_v35, 0.0 }
 0x4ba   :  { %1035 = vadd.xlane.f32.xlu2 %v1034_v61  ;;  %v1337_v20 = vpop.permute.xlu0 %1336 }
 0x4bf   :  { %v1365_v63 = vpop.permute.xlu1 %1364 }
 0x4c8   :  { %1362 = vrot.lane.b32.xlu0 %v5398_v49, %s5190_s24 }
 0x4ce   :  { %1448 = vrot.lane.b32.xlu1 %v5333_v31, %s5191_s25 }
 0x4d0   :  { %1446 = vrot.lane.b32.xlu0 %v5401_v50, %s5190_s24 }
 0x4d2   :  { %1476 = vrot.lane.b32.xlu2 %v5342_v32, %s5191_s25 }
 0x4d6   :  { %1474 = vrot.lane.b32.xlu1 %v5410_v52, %s5190_s24  ;;  %s5204_s24 = smov 100  }
 0x4d8   :  { %1590 = vrot.lane.b32.xlu0 %v5306_v24, %s5192_s26 }
 0x4da   :  { %1617 = vrot.lane.b32.xlu2 %v5312_v26, %s5192_s26 }
 0x4de   :  { %1671 = vrot.lane.b32.xlu1 %v5324_v30, %s5192_s26 }
 0x4e0   :  { %1698 = vrot.lane.b32.xlu0 %v5318_v28, %s5192_s26 }
 0x4e2   :  { %1725 = vrot.lane.b32.xlu2 %v5321_v29, %s5192_s26 }
 0x4e6   :  { %1806 = vrot.lane.b32.xlu1 %v5364_v34, %s5193_s27 }
 0x4e8   :  { %1644 = vrot.lane.b32.xlu0 %v5309_v25, %s5192_s26 }
 0x4ea   :  { %v1030_v2 = vpop.xlane.xlu1 %1029 }
 0x4eb   :  { %4977 = vrcp.f32 %v1030_v2 }
 0x4ee   :  { %1779 = vrot.lane.b32.xlu1 %v5342_v32, %s5192_s26 }
 0x4f0   :  { %1836 = vrot.lane.b32.xlu0 %v5312_v26, %s5194_s28 }
 0x4f1   :  { %v4978_v4 = vpop.eup %4977 }
 0x4f2   :  { %v1056_v0 = vmul.f32 %v4978_v4, %v5639_v37  ;;  %v1027_v19 = vpop.xlane.xlu1 %1026  ;;  %v1335_v37 = vpop.permute.xlu2 %1334 }
 0x4f3   :  { %4979 = vrcp.f32 %v1027_v19 }
 0x4f4   :  { %4696 = vmatmul.msk.f32.vlgmr.msrb.gmra.mxu0 %vm230_vm3, %v1056_v0 }
 0x4f5   :  { %4711 = vmatpush.xpose.msk.msrb.mxu0 %vm230_vm3, %v1337_v20 }
 0x4f8   :  { %1808 = vrot.lane.b32.xlu0 %v5306_v24, %s5194_s28 }
 0x4f9   :  { %v4980_v34 = vpop.eup %4979 }
 0x4fa   :  { %v1055_v27 = vmul.f32 %v4980_v34, %v5643_v53 }
 0x4fc   :  { %4694 = vmatmul.msk.f32.vlgmr.msrb.gmra.mxu3 %vm230_vm3, %v1055_v27 }
 0x4fd   :  { %4709 = vmatpush.xpose.msk.msrb.mxu3 %vm230_vm3, %v5621_v6 }
 0x500   :  { %1834 = vrot.lane.b32.xlu0 %v5357_v33, %s5193_s27 }
 0x508   :  { %1752 = vrot.lane.b32.xlu0 %v5333_v31, %s5192_s26  ;;  %s5205_s26 = smov 121  }
 0x510   :  { %1948 = vrot.lane.b32.xlu0 %v5321_v29, %s5194_s28 }
 0x51d   :  { %v1024_v23 = vpop.xlane.xlu2 %1023 }
 0x51e   :  { %4981 = vrcp.f32 %v1024_v23 }
 0x51f   :  { %v1033_v13 = vpop.xlane.xlu0 %1032 }
 0x520   :  { %4983 = vrcp.f32 %v1033_v13 }
 0x524   :  { %v4982_v60 = vpop.eup %4981 }
 0x525   :  { %v1054_v53 = vmul.f32 %v4982_v60, %v5647_v22  ;;  %v1042_v43 = vpop.xlane.xlu2 %1041 }
 0x526   :  { %v4984_v62 = vpop.eup %4983  ;;  %4985 = vrcp.f32 %v1042_v43 }
 0x527   :  { %v1057_v6 = vmul.f32 %v4984_v62, %v5651_v5  ;;  %v1039_v12 = vpop.xlane.xlu0 %1038  ;;  %4692 = vmatmul.msk.f32.vlgmr.msrb.gmra.mxu2 %vm230_vm3, %v1054_v53 }
 0x528   :  { %4987 = vrcp.f32 %v1039_v12  ;;  %v1045_v33 = vpop.xlane.xlu1 %1044  ;;  %4707 = vmatpush.xpose.msk.msrb.mxu2 %vm230_vm3, %v5629_v8 }
 0x529   :  { %4989 = vrcp.f32 %v1045_v33  ;;  %4698 = vmatmul.msk.f32.vlgmr.msra.gmra.mxu1 %vm230_vm3, %v1057_v6 }
 0x52a   :  { %4713 = vmatpush.xpose.msk.msra.mxu1 %vm230_vm3, %v1365_v63 }
 0x52c   :  { %v4986_v38 = vpop.eup %4985 }
 0x52d   :  { %v1060_v22 = vmul.f32 %v4986_v38, %v5655_v9  ;;  %v1036_v1 = vpop.xlane.xlu2 %1035 }
 0x52e   :  { %v4988_v42 = vpop.eup %4987  ;;  %4991 = vrcp.f32 %v1036_v1 }
 0x52f   :  { %v4990_v5 = vpop.eup %4989  ;;  %v1059_v46 = vmul.f32 %v4988_v42, %v5659_v39  ;;  %4704 = vmatmul.msk.f32.vlgmr.msra.gmra.mxu0 %vm230_vm3, %v1060_v22 }
 0x530   :  { %v1061_v61 = vmul.f32 %v4990_v5, %v5661_v3 }
 0x531   :  { %4702 = vmatmul.msk.f32.vlgmr.msra.gmra.mxu3 %vm230_vm3, %v1059_v46 }
 0x532   :  { %4706 = vmatmul.msk.f32.vlgmr.msrb.gmra.mxu1 %vm230_vm3, %v1061_v61  ;;  %4717 = vmatpush.xpose.msk.msra.mxu3 %vm230_vm3, %v5576_v10 }
 0x534   :  { %v4992_v8 = vpop.eup %4991 }
 0x535   :  { %v1058_v9 = vmul.f32 %v4992_v8, %v5667_v35  ;;  %v1477_v63 = vpop.permute.xlu2 %1476 }
 0x536   :  { %4721 = vmatpush.xpose.msk.msrb.mxu1 %vm230_vm3, %v1477_v63 }
 0x537   :  { %4700 = vmatmul.msk.f32.vlgmr.msra.gmra.mxu2 %vm230_vm3, %v1058_v9  ;;  %4712 = vmatmul.msk.f32.vlgmr.msrb.gmra.mxu0 %vm230_vm3, %v1335_v37 }
 0x538   :  { %4715 = vmatpush.xpose.msk.msra.mxu2 %vm230_vm3, %v5637_v18 }
 0x539   :  { %4710 = vmatmul.msk.f32.vlgmr.msrb.gmra.mxu3 %vm230_vm3, %v5633_v11 }
 0x53a   :  { %v1363_v39 = vpop.permute.xlu0 %1362 }
 0x53b   :  { %4714 = vmatmul.msk.f32.vlgmr.msra.gmra.mxu1 %vm230_vm3, %v1363_v39 }
 0x53d   :  { %v1618_v10 = vpop.permute.xlu2 %1617 }
 0x53e   :  { %4725 = vmatpush.msk.msrb.mxu3 %vm73_vm1, %v1618_v10 }
 0x53f   :  { %4708 = vmatmul.msk.f32.vlgmr.msrb.gmra.mxu2 %vm230_vm3, %v5586_v36 }
 0x540   :  { %v1449_v3 = vpop.permute.xlu1 %1448 }
 0x541   :  { %4719 = vmatpush.xpose.msk.msra.mxu0 %vm230_vm3, %v1449_v3  ;;  %4718 = vmatmul.msk.f32.vlgmr.msra.gmra.mxu3 %vm230_vm3, %v5631_v7 }
 0x542   :  { %v1447_v35 = vpop.permute.xlu0 %1446 }
 0x544   :  { %4720 = vmatmul.msk.f32.vlgmr.msra.gmra.mxu0 %vm230_vm3, %v1447_v35 }
 0x545   :  { %v1726_v18 = vpop.permute.xlu2 %1725 }
 0x546   :  { %4733 = vmatpush.msk.msra.mxu3 %vm73_vm1, %v1726_v18 }
 0x547   :  { %4716 = vmatmul.msk.f32.vlgmr.msra.gmra.mxu2 %vm230_vm3, %v5635_v16 }
 0x548   :  { %v1475_v11 = vpop.permute.xlu1 %1474 }
 0x549   :  { %4722 = vmatmul.msk.f32.vlgmr.msrb.gmra.mxu1 %vm230_vm3, %v1475_v11 }
 0x54a   :  { %v1591_v2 = vpop.permute.xlu0 %1590 }
 0x54b   :  { %4723 = vmatpush.msk.msrb.mxu2 %vm73_vm1, %v1591_v2 }
 0x550   :  { %v1672_v36 = vpop.permute.xlu1 %1671 }
 0x551   :  { %4729 = vmatpush.msk.msra.mxu1 %vm73_vm1, %v1672_v36 }
 0x552   :  { %v1699_v4 = vpop.permute.xlu0 %1698 }
 0x553   :  { %4731 = vmatpush.msk.msra.mxu2 %vm73_vm1, %v1699_v4 }
 0x558   :  { %v5744_v7 = vpop.permute.xlu1 %1806 }
 0x55a   :  { %v1645_v0 = vpop.permute.xlu0 %1644 }
 0x55b   :  { %4727 = vmatpush.msk.msrb.mxu0 %vm73_vm1, %v1645_v0 }
 0x560   :  { %v1780_v19 = vpop.permute.xlu1 %1779 }
 0x561   :  { %4737 = vmatpush.msk.msrb.mxu1 %vm73_vm1, %v1780_v19 }
 0x562   :  { %v5748_v16 = vpop.permute.xlu0 %1836 }
 0x56a   :  { %v5750_v20 = vpop.permute.xlu0 %1808 }
 0x571   :  { %v5755_v37 = vpop.f32.mrf.mxu0 }
 0x572   :  { %v5752_v34 = vpop.permute.xlu0 %1834 }
 0x57a   :  { %v1753_v27 = vpop.permute.xlu0 %1752 }
 0x57b   :  { %4735 = vmatpush.msk.msra.mxu0 %vm73_vm1, %v1753_v27 }
 0x57f   :  { %v5759_v13 = vpop.f32.mrf.mxu3 }
 0x582   :  { %v5793_v18 = vpop.permute.xlu0 %1948 }
 0x5a6   :  { %v5757_v23 = vpop.f32.mrf.mxu1 }
 0x5aa   :  { %v5765_v43 = vpop.f32.mrf.mxu2 }
 0x5ac   :  { %v5761_v60 = vpop.f32.mrf.mxu0 }
 0x5af   :  { %v5763_v53 = vpop.f32.mrf.mxu1 }
 0x5b4   :  { %v5767_v62 = vpop.f32.mrf.mxu3  ;;  %v1359_v6 = vpop.f32.mrf.mxu0 }
 0x5b5   :  { %v1508_v12 = vsel %vm445_vm4, %v1359_v6, -inf }
 0x5b6   :  { %1509 = vmax.xlane.f32.xlu0 %v1508_v12 }
 0x5b8   :  { %v1387_v33 = vpop.f32.mrf.mxu1 }
 0x5b9   :  { %v1511_v38 = vsel %vm445_vm4, %v1387_v33, -inf }
 0x5ba   :  { %1512 = vmax.xlane.f32.xlu2 %v1511_v38  ;;  %v5771_v22 = vpop.f32.mrf.mxu2 }
 0x5bc   :  { %v1331_v1 = vpop.f32.mrf.mxu3 }
 0x5bd   :  { %v1505_v5 = vsel %vm445_vm4, %v1331_v1, -inf }
 0x5c1   :  { %v1471_v42 = vpop.f32.mrf.mxu0 }
 0x5c2   :  { %1506 = vmax.xlane.f32.xlu2 %v1505_v5  ;;  %v1520_v46 = vsel %vm445_vm4, %v1471_v42, -inf  ;;  %v1303_v61 = vpop.f32.mrf.mxu2 }
 0x5c3   :  { %1521 = vmax.xlane.f32.xlu1 %v1520_v46  ;;  %v1502_v35 = vsel %vm445_vm4, %v1303_v61, -inf }
 0x5c4   :  { %v1443_v9 = vpop.f32.mrf.mxu3 }
 0x5c5   :  { %v1517_v39 = vsel %vm445_vm4, %v1443_v9, -inf }
 0x5c6   :  { %v1499_v8 = vpop.f32.mrf.mxu1 }
 0x5c7   :  { %v1523_v63 = vsel %vm445_vm4, %v1499_v8, -inf }
 0x5c8   :  { %1524 = vmax.xlane.f32.xlu0 %v1523_v63 }
 0x5ca   :  { %v1415_v10 = vpop.f32.mrf.mxu2 }
 0x5cb   :  { %1518 = vmax.xlane.f32.xlu1 %v1517_v39  ;;  %v1514_v3 = vsel %vm445_vm4, %v1415_v10, -inf }
 0x5cc   :  { %1515 = vmax.xlane.f32.xlu2 %v1514_v3 }
 0x5d0   :  { %1503 = vmax.xlane.f32.xlu0 %v1502_v35 }
 0x5e4   :  { %1946 = vrot.lane.b32.xlu1 %v5382_v44, %s5193_s27  ;;  %1864 = vrot.lane.b32.xlu0 %v5309_v25, %s5194_s28 }
 0x5e5   :  { %1920 = vrot.lane.b32.xlu2 %v5318_v28, %s5194_s28 }
 0x5ec   :  { %1918 = vrot.lane.b32.xlu1 %v5385_v45, %s5193_s27  ;;  %1892 = vrot.lane.b32.xlu0 %v5324_v30, %s5194_s28 }
 0x5f4   :  { %1862 = vrot.lane.b32.xlu1 %v5372_v40, %s5193_s27  ;;  %1890 = vrot.lane.b32.xlu0 %v5398_v49, %s5193_s27 }
 0x629   :  { %v1510_v44 = vpop.xlane.xlu0 %1509 }
 0x62a   :  { %v1528_v11 = vsub.f32 %v1359_v6, %v1510_v44 }
 0x62c   :  { %v1538_v2 = vmul.f32 1.442695, %v1528_v11 }
 0x62d   :  { %v1513_v36 = vpop.xlane.xlu2 %1512 }
 0x62e   :  { %4993 = vpow2.f32 %v1538_v2  ;;  %v1529_v4 = vsub.f32 %v1387_v33, %v1513_v36 }
 0x630   :  { %v1540_v0 = vmul.f32 1.442695, %v1529_v4 }
 0x632   :  { %4995 = vpow2.f32 %v1540_v0 }
 0x634   :  { %v4994_v19 = vpop.eup %4993 }
 0x635   :  { %v1556_v45 = vsel %vm445_vm4, %v4994_v19, 0.0  ;;  %v1507_v49 = vpop.xlane.xlu2 %1506 }
 0x636   :  { %v1522_v27 = vpop.xlane.xlu1 %1521  ;;  %1557 = vadd.xlane.f32.xlu1 %v1556_v45  ;;  %v1527_v63 = vsub.f32 %v1331_v1, %v1507_v49 }
 0x637   :  { %v1532_v12 = vsub.f32 %v1471_v42, %v1522_v27 }
 0x638   :  { %v5796_v38 = vpop.eup %4995  ;;  %v1536_v11 = vmul.f32 1.442695, %v1527_v63 }
 0x639   :  { %v1546_v40 = vmul.f32 1.442695, %v1532_v12  ;;  %v1559_v6 = vsel %vm445_vm4, %v5796_v38, 0.0 }
 0x63b   :  { %v1525_v5 = vpop.xlane.xlu0 %1524  ;;  %4997 = vpow2.f32 %v1546_v40 }
 0x63c   :  { %v1533_v46 = vsub.f32 %v1499_v8, %v1525_v5 }
 0x63e   :  { %v1548_v33 = vmul.f32 1.442695, %v1533_v46  ;;  %v1519_v39 = vpop.xlane.xlu1 %1518  ;;  %1560 = vadd.xlane.f32.xlu1 %v1559_v6 }
 0x63f   :  { %v1531_v3 = vsub.f32 %v1443_v9, %v1519_v39  ;;  %v1516_v42 = vpop.xlane.xlu2 %1515 }
 0x640   :  { %4999 = vpow2.f32 %v1548_v33  ;;  %v1530_v8 = vsub.f32 %v1415_v10, %v1516_v42 }
 0x641   :  { %v1544_v35 = vmul.f32 1.442695, %v1531_v3  ;;  %v4998_v44 = vpop.eup %4997 }
 0x642   :  { %v1568_v4 = vsel %vm445_vm4, %v4998_v44, 0.0  ;;  %v1542_v27 = vmul.f32 1.442695, %v1530_v8 }
 0x643   :  { %5001 = vpow2.f32 %v1544_v35  ;;  %v1504_v2 = vpop.xlane.xlu0 %1503 }
 0x644   :  { %v1526_v36 = vsub.f32 %v1303_v61, %v1504_v2  ;;  %5003 = vpow2.f32 %v1536_v11 }
 0x646   :  { %v5000_v0 = vpop.eup %4999  ;;  %v1534_v45 = vmul.f32 1.442695, %v1526_v36  ;;  %1569 = vadd.xlane.f32.xlu1 %v1568_v4 }
 0x647   :  { %v1571_v1 = vsel %vm445_vm4, %v5000_v0, 0.0 }
 0x648   :  { %5005 = vpow2.f32 %v1534_v45  ;;  %1572 = vadd.xlane.f32.xlu2 %v1571_v1 }
 0x649   :  { %v5802_v9 = vpop.eup %5001  ;;  %5007 = vpow2.f32 %v1542_v27 }
 0x64a   :  { %v1565_v12 = vsel %vm445_vm4, %v5802_v9, 0.0  ;;  %v5004_v40 = vpop.eup %5003 }
 0x64b   :  { %1566 = vadd.xlane.f32.xlu0 %v1565_v12  ;;  %v1553_v10 = vsel %vm445_vm4, %v5004_v40, 0.0 }
 0x64e   :  { %v5006_v61 = vpop.eup %5005 }
 0x64f   :  { %v1550_v49 = vsel %vm445_vm4, %v5006_v61, 0.0  ;;  %v5008_v5 = vpop.eup %5007 }
 0x650   :  { %1551 = vadd.xlane.f32.xlu1 %v1550_v49  ;;  %1554 = vadd.xlane.f32.xlu2 %v1553_v10  ;;  %v1562_v46 = vsel %vm445_vm4, %v5008_v5, 0.0 }
 0x656   :  { %v5819_v6 = vpop.permute.xlu1 %1946 }
 0x658   :  { %1563 = vadd.xlane.f32.xlu1 %v1562_v46 }
 0x65e   :  { %v5821_v63 = vpop.permute.xlu1 %1918 }
 0x65f   :  { %1974 = vrot.lane.b32.xlu0 %v5401_v50, %s5193_s27  ;;  %v1865_v50 = vpop.permute.xlu0 %1864 }
 0x666   :  { %v1863_v33 = vpop.permute.xlu1 %1862 }
 0x667   :  { %v1893_v42 = vpop.permute.xlu0 %1892 }
 0x668   :  { %1976 = vrot.lane.b32.xlu2 %v5333_v31, %s5194_s28 }
 0x66f   :  { %v1891_v8 = vpop.permute.xlu0 %1890 }
 0x670   :  { %2002 = vrot.lane.b32.xlu2 %v5410_v52, %s5193_s27  ;;  %v1921_v52 = vpop.permute.xlu2 %1920 }
 0x671   :  { %2004 = vrot.lane.b32.xlu1 %v5342_v32, %s5194_s28 }
 0x678   :  { %2145 = vrot.lane.b32.xlu2 %v5312_v26, %s5195_s29 }
 0x6a9   :  { %v1558_v39 = vpop.xlane.xlu1 %1557 }
 0x6aa   :  { %5009 = vrcp.f32 %v1558_v39 }
 0x6b0   :  { %v5010_v3 = vpop.eup %5009 }
 0x6b1   :  { %v1584_v35 = vmul.f32 %v5010_v3, %v4994_v19  ;;  %v1561_v11 = vpop.xlane.xlu1 %1560 }
 0x6b2   :  { %5011 = vrcp.f32 %v1561_v11 }
 0x6b3   :  { %4728 = vmatmul.msk.f32.vlgmr.msrb.gmra.mxu0 %vm230_vm3, %v1584_v35 }
 0x6b4   :  { %4743 = vmatpush.xpose.msk.msrb.mxu0 %vm230_vm3, %v1865_v50 }
 0x6b8   :  { %v5012_v2 = vpop.eup %5011 }
 0x6b9   :  { %v1585_v26 = vmul.f32 %v5012_v2, %v5796_v38  ;;  %v1570_v36 = vpop.xlane.xlu1 %1569 }
 0x6ba   :  { %5013 = vrcp.f32 %v1570_v36 }
 0x6bb   :  { %v1573_v4 = vpop.xlane.xlu2 %1572  ;;  %4730 = vmatmul.msk.f32.vlgmr.msra.gmra.mxu1 %vm230_vm3, %v1585_v26 }
 0x6bc   :  { %5015 = vrcp.f32 %v1573_v4  ;;  %4745 = vmatpush.xpose.msk.msra.mxu1 %vm230_vm3, %v1893_v42 }
 0x6be   :  { %v1567_v38 = vpop.xlane.xlu0 %1566 }
 0x6c0   :  { %v5014_v19 = vpop.eup %5013 }
 0x6c1   :  { %v1588_v45 = vmul.f32 %v5014_v19, %v4998_v44 }
 0x6c2   :  { %v5016_v1 = vpop.eup %5015 }
 0x6c3   :  { %v1589_v27 = vmul.f32 %v5016_v1, %v5000_v0  ;;  %v1552_v12 = vpop.xlane.xlu1 %1551  ;;  %v1555_v49 = vpop.xlane.xlu2 %1554  ;;  %4736 = vmatmul.msk.f32.vlgmr.msra.gmra.mxu0 %vm230_vm3, %v1588_v45 }
 0x6c4   :  { %5017 = vrcp.f32 %v1552_v12 }
 0x6c5   :  { %5019 = vrcp.f32 %v1555_v49  ;;  %4738 = vmatmul.msk.f32.vlgmr.msrb.gmra.mxu1 %vm230_vm3, %v1589_v27 }
 0x6c6   :  { %5021 = vrcp.f32 %v1567_v38 }
 0x6ca   :  { %v5018_v10 = vpop.eup %5017 }
 0x6cb   :  { %v5020_v46 = vpop.eup %5019  ;;  %v1582_v39 = vmul.f32 %v5018_v10, %v5006_v61  ;;  %v1564_v50 = vpop.xlane.xlu1 %1563  ;;  %4744 = vmatmul.msk.f32.vlgmr.msrb.gmra.mxu0 %vm230_vm3, %v1863_v33 }
 0x6cc   :  { %v1977_v3 = vpop.permute.xlu2 %1976  ;;  %v1583_v44 = vmul.f32 %v5020_v46, %v5004_v40  ;;  %5023 = vrcp.f32 %v1564_v50  ;;  %v5022_v0 = vpop.eup %5021 }
 0x6cd   :  { %4751 = vmatpush.xpose.msk.msra.mxu0 %vm230_vm3, %v1977_v3  ;;  %4724 = vmatmul.msk.f32.vlgmr.msrb.gmra.mxu2 %vm230_vm3, %v1582_v39  ;;  %v1587_v11 = vmul.f32 %v5022_v0, %v5802_v9 }
 0x6ce   :  { %4746 = vmatmul.msk.f32.vlgmr.msra.gmra.mxu1 %vm230_vm3, %v1891_v8  ;;  %4726 = vmatmul.msk.f32.vlgmr.msrb.gmra.mxu3 %vm230_vm3, %v1583_v44 }
 0x6cf   :  { %4739 = vmatpush.xpose.msk.msrb.mxu2 %vm230_vm3, %v5750_v20  ;;  %4741 = vmatpush.xpose.msk.msrb.mxu3 %vm230_vm3, %v5748_v16 }
 0x6d1   :  { %v1975_v35 = vpop.permute.xlu0 %1974 }
 0x6d2   :  { %v5024_v61 = vpop.eup %5023 }
 0x6d3   :  { %v1586_v33 = vmul.f32 %v5024_v61, %v5008_v5  ;;  %4752 = vmatmul.msk.f32.vlgmr.msra.gmra.mxu0 %vm230_vm3, %v1975_v35 }
 0x6d4   :  { %v2003_v40 = vpop.permute.xlu2 %2002 }
 0x6d5   :  { %4732 = vmatmul.msk.f32.vlgmr.msra.gmra.mxu2 %vm230_vm3, %v1586_v33 }
 0x6d6   :  { %4734 = vmatmul.msk.f32.vlgmr.msra.gmra.mxu3 %vm230_vm3, %v1587_v11  ;;  %4747 = vmatpush.xpose.msk.msra.mxu2 %vm230_vm3, %v1921_v52 }
 0x6d7   :  { %4749 = vmatpush.xpose.msk.msra.mxu3 %vm230_vm3, %v5793_v18 }
 0x6dc   :  { %v2146_v20 = vpop.permute.xlu2 %2145 }
 0x6dd   :  { %4740 = vmatmul.msk.f32.vlgmr.msrb.gmra.mxu2 %vm230_vm3, %v5744_v7 }
 0x6de   :  { %4742 = vmatmul.msk.f32.vlgmr.msrb.gmra.mxu3 %vm230_vm3, %v5752_v34 }
 0x6df   :  { %4757 = vmatpush.msk.msrb.mxu3 %vm73_vm1, %v2146_v20 }
 0x6e3   :  { %v2005_v16 = vpop.permute.xlu1 %2004 }
 0x6e4   :  { %4753 = vmatpush.xpose.msk.msrb.mxu1 %vm230_vm3, %v2005_v16 }
 0x6e5   :  { %4748 = vmatmul.msk.f32.vlgmr.msra.gmra.mxu2 %vm230_vm3, %v5821_v63 }
 0x6e6   :  { %4750 = vmatmul.msk.f32.vlgmr.msra.gmra.mxu3 %vm230_vm3, %v5819_v6 }
 0x6e7   :  { %4754 = vmatmul.msk.f32.vlgmr.msrb.gmra.mxu1 %vm230_vm3, %v2003_v40 }
 0x730   :  { %v5857_v18 = vpop.f32.mrf.mxu0 }
 0x738   :  { %v5859_v9 = vpop.f32.mrf.mxu1 }
 0x740   :  { %v5861_v7 = vpop.f32.mrf.mxu0 }
 0x742   :  { %v5863_v34 = vpop.f32.mrf.mxu1 }
 0x748   :  { %v1887_v5 = vpop.f32.mrf.mxu0 }
 0x749   :  { %v2036_v52 = vsel %vm445_vm4, %v1887_v5, -inf }
 0x74a   :  { %2037 = vmax.xlane.f32.xlu2 %v2036_v52 }
 0x74b   :  { %v1915_v42 = vpop.f32.mrf.mxu1 }
 0x74c   :  { %v2039_v63 = vsel %vm445_vm4, %v1915_v42, -inf }
 0x74d   :  { %2040 = vmax.xlane.f32.xlu1 %v2039_v63 }
 0x750   :  { %v5867_v2 = vpop.f32.mrf.mxu2  ;;  %v1999_v6 = vpop.f32.mrf.mxu0 }
 0x751   :  { %v5869_v26 = vpop.f32.mrf.mxu3  ;;  %v2048_v36 = vsel %vm445_vm4, %v1999_v6, -inf }
 0x755   :  { %2049 = vmax.xlane.f32.xlu1 %v2048_v36 }
 0x758   :  { %v5872_v4 = vpop.f32.mrf.mxu2 }
 0x759   :  { %v5874_v19 = vpop.f32.mrf.mxu3 }
 0x760   :  { %v1831_v8 = vpop.f32.mrf.mxu2 }
 0x761   :  { %v1859_v45 = vpop.f32.mrf.mxu3  ;;  %v2030_v1 = vsel %vm445_vm4, %v1831_v8, -inf }
 0x762   :  { %2031 = vmax.xlane.f32.xlu0 %v2030_v1  ;;  %v2033_v27 = vsel %vm445_vm4, %v1859_v45, -inf }
 0x763   :  { %2034 = vmax.xlane.f32.xlu1 %v2033_v27 }
 0x764   :  { %v2027_v12 = vpop.f32.mrf.mxu1 }
 0x765   :  { %v2051_v49 = vsel %vm445_vm4, %v2027_v12, -inf }
 0x766   :  { %2052 = vmax.xlane.f32.xlu2 %v2051_v49 }
 0x768   :  { %v1943_v38 = vpop.f32.mrf.mxu2 }
 0x769   :  { %v2042_v10 = vsel %vm445_vm4, %v1943_v38, -inf  ;;  %v1971_v46 = vpop.f32.mrf.mxu3 }
 0x76a   :  { %2043 = vmax.xlane.f32.xlu0 %v2042_v10  ;;  %v2045_v39 = vsel %vm445_vm4, %v1971_v46, -inf }
 0x76e   :  { %2046 = vmax.xlane.f32.xlu2 %v2045_v39 }
 0x77c   :  { %2118 = vrot.lane.b32.xlu1 %v5306_v24, %s5195_s29 }
 0x786   :  { %2172 = vrot.lane.b32.xlu2 %v5309_v25, %s5195_s29 }
 0x7bd   :  { %v2038_v50 = vpop.xlane.xlu2 %2037 }
 0x7be   :  { %v2056_v3 = vsub.f32 %v1887_v5, %v2038_v50 }
 0x7c0   :  { %v2041_v44 = vpop.xlane.xlu1 %2040  ;;  %v2066_v0 = vmul.f32 1.442695, %v2056_v3 }
 0x7c1   :  { %v2057_v61 = vsub.f32 %v1915_v42, %v2041_v44 }
 0x7c2   :  { %5025 = vpow2.f32 %v2066_v0 }
 0x7c3   :  { %v2068_v35 = vmul.f32 1.442695, %v2057_v61 }
 0x7c5   :  { %5027 = vpow2.f32 %v2068_v35 }
 0x7c8   :  { %v2050_v33 = vpop.xlane.xlu1 %2049  ;;  %v5885_v40 = vpop.eup %5025 }
 0x7c9   :  { %v2060_v11 = vsub.f32 %v1999_v6, %v2050_v33  ;;  %v2084_v20 = vsel %vm445_vm4, %v5885_v40, 0.0 }
 0x7ca   :  { %2085 = vadd.xlane.f32.xlu2 %v2084_v20 }
 0x7cb   :  { %v5889_v16 = vpop.eup %5027  ;;  %v2074_v24 = vmul.f32 1.442695, %v2060_v11 }
 0x7cc   :  { %v2087_v25 = vsel %vm445_vm4, %v5889_v16, 0.0 }
 0x7cd   :  { %5029 = vpow2.f32 %v2074_v24  ;;  %2088 = vadd.xlane.f32.xlu0 %v2087_v25 }
 0x7d3   :  { %v5893_v5 = vpop.eup %5029 }
 0x7d4   :  { %v2096_v52 = vsel %vm445_vm4, %v5893_v5, 0.0 }
 0x7d5   :  { %2097 = vadd.xlane.f32.xlu0 %v2096_v52  ;;  %v2032_v42 = vpop.xlane.xlu0 %2031 }
 0x7d6   :  { %v2054_v63 = vsub.f32 %v1831_v8, %v2032_v42  ;;  %v2035_v36 = vpop.xlane.xlu1 %2034 }
 0x7d7   :  { %v2055_v49 = vsub.f32 %v1859_v45, %v2035_v36 }
 0x7d8   :  { %v2062_v6 = vmul.f32 1.442695, %v2054_v63 }
 0x7d9   :  { %v2053_v1 = vpop.xlane.xlu2 %2052  ;;  %v2064_v50 = vmul.f32 1.442695, %v2055_v49 }
 0x7da   :  { %5031 = vpow2.f32 %v2062_v6  ;;  %v2061_v27 = vsub.f32 %v2027_v12, %v2053_v1 }
 0x7dc   :  { %v2076_v10 = vmul.f32 1.442695, %v2061_v27 }
 0x7dd   :  { %v2044_v3 = vpop.xlane.xlu0 %2043 }
 0x7de   :  { %5033 = vpow2.f32 %v2076_v10  ;;  %v2058_v12 = vsub.f32 %v1943_v38, %v2044_v3  ;;  %v2558_v3 = vld [vmem:[%s6677_s3 + $0x18] sm:$0xff] }
 0x7df   :  { %5035 = vpow2.f32 %v2064_v50 }
 0x7e0   :  { %v5897_v39 = vpop.eup %5031  ;;  %v2070_v33 = vmul.f32 1.442695, %v2058_v12  ;;  %v33_v12 = vld [vmem:[%s6675_s1 + $0x8] sm:$0xff] }
 0x7e1   :  { %v2047_v44 = vpop.xlane.xlu2 %2046  ;;  %v2078_v0 = vsel %vm445_vm4, %v5897_v39, 0.0 }
 0x7e2   :  { %v2059_v61 = vsub.f32 %v1971_v46, %v2047_v44  ;;  %2079 = vadd.xlane.f32.xlu1 %v2078_v0  ;;  %2226 = vrot.lane.b32.xlu2 %v5318_v28, %s5195_s29  ;;  %v2557_v44 = vld [vmem:[%s6677_s3 + $0x10] sm:$0xff]  ;;  %v2556_v0 = vld [vmem:[%s6677_s3 + $0x8] sm:$0xff] }
 0x7e4   :  { %v5903_v8 = vpop.eup %5033  ;;  %v2072_v45 = vmul.f32 1.442695, %v2059_v61  ;;  %v2555_v61 = vld [vmem:[%s6677_s3] sm:$0xff] }
 0x7e5   :  { %v2099_v35 = vsel %vm445_vm4, %v5903_v8, 0.0  ;;  %v5036_v20 = vpop.eup %5035 }
 0x7e6   :  { %5037 = vpow2.f32 %v2072_v45  ;;  %2100 = vadd.xlane.f32.xlu0 %v2099_v35  ;;  %v2081_v28 = vsel %vm445_vm4, %v5036_v20, 0.0 }
 0x7e7   :  { %5039 = vpow2.f32 %v2070_v33 }
 0x7e9   :  { %v2173_v11 = vpop.permute.xlu2 %2172 }
 0x7ea   :  { %4759 = vmatpush.msk.msrb.mxu0 %vm73_vm1, %v2173_v11  ;;  %2307 = vrot.lane.b32.xlu2 %v5342_v32, %s5195_s29  ;;  %v4926_v32 = vld [vmem:[%s6681_s7] ss:$0 sm:$0xff]  ;;  %v2602_v11 = vld [vmem:[%s6679_s5 + $0x10] sm:$0x1f] }
 0x7ec   :  { %v5910_v46 = vpop.eup %5037 }
 0x7ed   :  { %v2093_v38 = vsel %vm445_vm4, %v5910_v46, 0.0  ;;  %v5040_v25 = vpop.eup %5039 }
 0x7ee   :  { %v2119_v24 = vpop.permute.xlu1 %2118  ;;  %2082 = vadd.xlane.f32.xlu0 %v2081_v28  ;;  %2094 = vadd.xlane.f32.xlu1 %v2093_v38  ;;  %v2090_v52 = vsel %vm445_vm4, %v5040_v25, 0.0 }
 0x7ef   :  { %4755 = vmatpush.msk.msrb.mxu2 %vm73_vm1, %v2119_v24  ;;  %v2603_v24 = vld [vmem:[%s6681_s7] sm:$0x3] }
 0x7f2   :  { %2346 = vrot.lane.b32.xlu2 %v5755_v37, %s5196_s30 }
 0x7f6   :  { %2091 = vadd.xlane.f32.xlu0 %v2090_v52 }
 0x7fa   :  { %2348 = vrot.lane.b32.xlu2 %v5757_v23, %s5196_s30 }
 0x802   :  { %2374 = vrot.lane.b32.xlu2 %v5867_v2, %s5197_s9 }
 0x807   :  { %2253 = vrot.lane.b32.xlu1 %v5321_v29, %s5195_s29 }
 0x80a   :  { %2199 = vrot.lane.b32.xlu0 %v5324_v30, %s5195_s29  ;;  %2354 = vrot.lane.b32.xlu2 %v5761_v60, %s5196_s30 }
 0x80f   :  { %2280 = vrot.lane.b32.xlu1 %v5333_v31, %s5195_s29  ;;  %s4624_s29 = sshll.u32 %s6682_s8, 4  ;;  %s4625_s29 = int_to_ptr.hbm [resolvable:$true] %s4624_s29 }
 0x812   :  { %2344 = vrot.lane.b32.xlu0 %v5759_v13, %s5196_s30  ;;  %2356 = vrot.lane.b32.xlu2 %v5763_v53, %s5196_s30 }
 0x817   :  { %2562 = vrot.lane.b32.xlu1 %v4926_v32, %s5198_s12 }
 0x81a   :  { %2342 = vrot.lane.b32.xlu0 %v5765_v43, %s5196_s30  ;;  %2382 = vrot.lane.b32.xlu2 %v5872_v4, %s5197_s9 }
 0x81f   :  { %2376 = vrot.lane.b32.xlu1 %v5869_v26, %s5197_s9 }
 0x822   :  { %2352 = vrot.lane.b32.xlu0 %v5767_v62, %s5196_s30 }
 0x827   :  { %2378 = vrot.lane.b32.xlu1 %v5857_v18, %s5197_s9 }
 0x82a   :  { %2350 = vrot.lane.b32.xlu0 %v5771_v22, %s5196_s30  ;;  %s5206_s30 = smov 79  }
 0x82f   :  { %2380 = vrot.lane.b32.xlu1 %v5859_v9, %s5197_s9 }
 0x837   :  { %2384 = vrot.lane.b32.xlu1 %v5874_v19, %s5197_s9 }
 0x83d   :  { %v2086_v29 = vpop.xlane.xlu2 %2085 }
 0x83e   :  { %5041 = vrcp.f32 %v2086_v29 }
 0x83f   :  { %2386 = vrot.lane.b32.xlu1 %v5861_v7, %s5197_s9 }
 0x840   :  { %v2089_v23 = vpop.xlane.xlu0 %2088 }
 0x844   :  { %v5042_v30 = vpop.eup %5041 }
 0x845   :  { %v2112_v31 = vmul.f32 %v5042_v30, %v5885_v40  ;;  %v2227_v37 = vpop.permute.xlu2 %2226  ;;  %v2609_v30 = vperm.slane %v2603_v24, 0 }
 0x846   :  { %4763 = vmatpush.msk.msra.mxu2 %vm73_vm1, %v2227_v37 }
 0x847   :  { %2388 = vrot.lane.b32.xlu1 %v5863_v34, %s5197_s9  ;;  %4760 = vmatmul.msk.f32.vlgmr.msrb.gmra.mxu0 %vm230_vm3, %v2112_v31  ;;  %v5157_v31 = vld [vmem:[%s6681_s7] ss:$0 sm:$0xff]  ;;  %s5207_s9 = smov 93  }
 0x848   :  { %v2098_v13 = vpop.xlane.xlu0 %2097 }
 0x84d   :  { %v2308_v1 = vpop.permute.xlu2 %2307 }
 0x855   :  { %v2080_v60 = vpop.xlane.xlu1 %2079 }
 0x856   :  { %5043 = vrcp.f32 %v2080_v60 }
 0x859   :  { %v2101_v53 = vpop.xlane.xlu0 %2100 }
 0x85c   :  { %v5044_v43 = vpop.eup %5043 }
 0x85d   :  { %v2110_v62 = vmul.f32 %v5044_v43, %v5897_v39  ;;  %v2561_v39 = vld [vmem:[%s6677_s3 + $0x30] sm:$0x3f] }
 0x85f   :  { %4756 = vmatmul.msk.f32.vlgmr.msrb.gmra.mxu2 %vm230_vm3, %v2110_v62 }
 0x861   :  { %v2083_v22 = vpop.xlane.xlu0 %2082  ;;  %v2095_v34 = vpop.xlane.xlu1 %2094 }
 0x862   :  { %5045 = vrcp.f32 %v2083_v22  ;;  %v2347_v22 = vpop.permute.xlu2 %2346 }
 0x868   :  { %v5046_v18 = vpop.eup %5045 }
 0x869   :  { %v2111_v9 = vmul.f32 %v5046_v18, %v5036_v20  ;;  %v2092_v7 = vpop.xlane.xlu0 %2091  ;;  %v2601_v20 = vld [vmem:[%s6679_s5 + $0x8] sm:$0xff] }
 0x86a   :  { %5047 = vrcp.f32 %v2092_v7  ;;  %v2349_v7 = vpop.permute.xlu2 %2348 }
 0x86b   :  { %4758 = vmatmul.msk.f32.vlgmr.msrb.gmra.mxu3 %vm230_vm3, %v2111_v9  ;;  %5049 = vrcp.f32 %v2095_v34 }
 0x86c   :  { %5051 = vrcp.f32 %v2089_v23 }
 0x86d   :  { %5053 = vrcp.f32 %v2098_v13 }
 0x86e   :  { %5055 = vrcp.f32 %v2101_v53 }
 0x870   :  { %v5048_v2 = vpop.eup %5047 }
 0x871   :  { %v2114_v26 = vmul.f32 %v5048_v2, %v5040_v25  ;;  %v5050_v4 = vpop.eup %5049  ;;  %v2610_v25 = vperm.slane %v2603_v24, 1 }
 0x872   :  { %v5052_v19 = vpop.eup %5051  ;;  %v2115_v40 = vmul.f32 %v5050_v4, %v5910_v46  ;;  %v2600_v46 = vld [vmem:[%s6679_s5] sm:$0xff] }
 0x873   :  { %4764 = vmatmul.msk.f32.vlgmr.msra.gmra.mxu2 %vm230_vm3, %v2114_v26  ;;  %v2113_v63 = vmul.f32 %v5052_v19, %v5889_v16  ;;  %v5054_v36 = vpop.eup %5053  ;;  %v2560_v16 = vld [vmem:[%s6677_s3 + $0x28] sm:$0xff]  ;;  %v2375_v26 = vpop.permute.xlu2 %2374 }
 0x874   :  { %v5056_v27 = vpop.eup %5055  ;;  %v2116_v49 = vmul.f32 %v5054_v36, %v5893_v5  ;;  %v2559_v5 = vld [vmem:[%s6677_s3 + $0x20] sm:$0xff] }
 0x875   :  { %v2117_v50 = vmul.f32 %v5056_v27, %v5903_v8  ;;  %v32_v8 = vld [vmem:[%s6675_s1] sm:$0xff] }
 0x879   :  { %v2254_v42 = vpop.permute.xlu1 %2253 }
 0x87a   :  { %4765 = vmatpush.msk.msra.mxu3 %vm73_vm1, %v2254_v42 }
 0x87b   :  { %4766 = vmatmul.msk.f32.vlgmr.msra.gmra.mxu3 %vm230_vm3, %v2115_v40  ;;  %v2355_v40 = vpop.permute.xlu2 %2354 }
 0x87c   :  { %v2200_v6 = vpop.permute.xlu0 %2199 }
 0x87d   :  { %4761 = vmatpush.msk.msra.mxu1 %vm73_vm1, %v2200_v6 }
 0x87e   :  { %4762 = vmatmul.msk.f32.vlgmr.msra.gmra.mxu1 %vm230_vm3, %v2113_v63  ;;  %v179_v63 = vld [vmem:[%s6676_s2 + $0x20] sm:$0xff] }
 0x87f   :  { %4769 = vmatpush.msk.msrb.mxu1 %vm73_vm1, %v2308_v1  ;;  %2505 = vmatpush.msrb.mxu2 %v179_v63 }
 0x881   :  { %v2281_v10 = vpop.permute.xlu1 %2280  ;;  %4778 = vmatpush.msk.msra.mxu1 %vm2625_vm6, %v2602_v11 }
 0x882   :  { %4767 = vmatpush.msk.msra.mxu0 %vm73_vm1, %v2281_v10 }
 0x883   :  { %4768 = vmatmul.msk.f32.vlgmr.msra.gmra.mxu0 %vm230_vm3, %v2116_v49  ;;  %2643 = vmatpush.msra.mxu1 %v2601_v20  ;;  %v2357_v36 = vpop.permute.xlu2 %2356 }
 0x884   :  { %4775 = vmatpush.msk.msrb.mxu0 %vm79_vm2, %v2561_v39  ;;  %v2345_v9 = vpop.permute.xlu0 %2344 }
 0x885   :  { %2644 = vmatpush.msra.mxu1 %v2600_v46  ;;  %v2431_v39 = vsel %vm230_vm3, %v5579_v17, %v2345_v9 }
 0x886   :  { %2585 = vmatpush.msrb.mxu0 %v2560_v16  ;;  %4770 = vmatmul.msk.f32.vlgmr.msrb.gmra.mxu1 %vm230_vm3, %v2117_v50 }
 0x888   :  { %2586 = vmatpush.msrb.mxu0 %v2559_v5 }
 0x889   :  { %v2563_v37 = vpop.permute.xlu1 %2562 }
 0x88a   :  { %2587 = vmatpush.msrb.mxu0 %v2558_v3 }
 0x88b   :  { %v2383_v49 = vpop.permute.xlu2 %2382 }
 0x88c   :  { %2588 = vmatpush.msrb.mxu0 %v2557_v44  ;;  %v2343_v2 = vpop.permute.xlu0 %2342  ;;  %v2432_v44 = vsel %vm230_vm3, %v5602_v15, %v2347_v22 }
 0x88d   :  { %v2430_v3 = vsel %vm230_vm3, %v5608_v14, %v2343_v2 }
 0x88e   :  { %2589 = vmatpush.msrb.mxu0 %v2556_v0  ;;  %v2439_v17 = vsel %vm2438_vm8, %v2430_v3, %v2375_v26  ;;  %v2517_v3 = vld [vmem:[%s6676_s2 + $0x28] sm:$0xff] }
 0x88f   :  { %2545 = vmatpush.msrb.mxu3 %v2517_v3 }
 0x890   :  { %2590 = vmatpush.msrb.mxu0 %v2555_v61 }
 0x891   :  { %4776 = vmatmul.msk.f32.vlgmr.msrb.gmra.mxu0 %vm2565_vm5, %v32_v8  ;;  %v2377_v18 = vpop.permute.xlu1 %2376 }
 0x892   :  { %v2440_v16 = vsel %vm2438_vm8, %v2431_v39, %v2377_v18 }
 0x894   :  { %v2353_v19 = vpop.permute.xlu0 %2352 }
 0x899   :  { %4777 = vmatmul.msk.f32.gmra.mxu0 %vm2565_vm5, %v33_v12  ;;  %v2379_v34 = vpop.permute.xlu1 %2378  ;;  %vm4567_vm5 = vcmask 523264  }
 0x89a   :  { %v2441_v8 = vsel %vm2438_vm8, %v2432_v44, %v2379_v34 }
 0x89c   :  { %v2351_v6 = vpop.permute.xlu0 %2350 }
 0x8a1   :  { %v2381_v4 = vpop.permute.xlu1 %2380 }
 0x8a9   :  { %v2385_v42 = vpop.permute.xlu1 %2384 }
 0x8b1   :  { %v2387_v1 = vpop.permute.xlu1 %2386 }
 0x8b9   :  { %v2389_v50 = vpop.permute.xlu1 %2388 }
 0x8c4   :  { %v2196_v45 = vpop.f32.mrf.mxu0 }
 0x8c5   :  { %2410 = vrot.lane.b32.xlu0 %v2196_v45, %s5199_s10  ;;  %v2433_v45 = vsel %vm230_vm3, %v5610_v47, %v2349_v7  ;;  %v2435_v47 = vsel %vm230_vm3, %v5581_v21, %v2353_v19 }
 0x8e2   :  { %v2142_v35 = vpop.f32.mrf.mxu2 }
 0x8e3   :  { %2406 = vrot.lane.b32.xlu2 %v2142_v35, %s5199_s10 }
 0x8ee   :  { %v2169_v33 = vpop.f32.mrf.mxu3 }
 0x8ef   :  { %2408 = vrot.lane.b32.xlu0 %v2169_v33, %s5199_s10  ;;  %v2442_v33 = vsel %vm2438_vm8, %v2433_v45, %v2381_v4 }
 0x8f6   :  { %v2250_v28 = vpop.f32.mrf.mxu2 }
 0x8f7   :  { %2414 = vrot.lane.b32.xlu2 %v2250_v28, %s5199_s10 }
 0x8fb   :  { %v2223_v38 = vpop.f32.mrf.mxu1 }
 0x8fc   :  { %2412 = vrot.lane.b32.xlu1 %v2223_v38, %s5199_s10 }
 0x8fe   :  { %v2277_v52 = vpop.f32.mrf.mxu3 }
 0x8ff   :  { %2416 = vrot.lane.b32.xlu0 %v2277_v52, %s5199_s10  ;;  %2613 = vrot.lane.b32.xlu2 %v2610_v25, %s5200_s18  ;;  %v2444_v25 = vsel %vm2438_vm8, %v2435_v47, %v2385_v42 }
 0x900   :  { %v2304_v29 = vpop.f32.mrf.mxu0 }
 0x903   :  { %v2331_v32 = vpop.f32.mrf.mxu1 }
 0x904   :  { %2420 = vrot.lane.b32.xlu1 %v2331_v32, %s5199_s10 }
 0x907   :  { %2418 = vrot.lane.b32.xlu0 %v2304_v29, %s5199_s10  ;;  %v2437_v29 = vsel %vm230_vm3, %v5614_v51, %v2357_v36  ;;  %s5217_s10 = smov 48  }
 0x90c   :  { %173 = vrot.lane.b32.xlu1 %v5157_v31, %s5186_s4 }
 0x90e   :  { %v2592_v23 = vpop.f32.mrf.mxu0 }
 0x90f   :  { %v6007_v13 = vadd.f32 %v2592_v23, %v2563_v37  ;;  %2611 = vrot.lane.b32.xlu0 %v2609_v30, %s5200_s18  ;;  %v2434_v30 = vsel %vm230_vm3, %v5612_v48, %v2351_v6 }
 0x910   :  { %v2443_v9 = vsel %vm2438_vm8, %v2434_v30, %v2383_v49 }
 0x911   :  { %v2598_v60 = vmax.f32 %v6007_v13, 0.0 }
 0x913   :  { %4779 = vmatmul.msk.f32.vlgmr.msra.gmra.mxu1 %vm2618_vm7, %v2598_v60 }
 0x916   :  { %v2595_v53 = vpop.f32.mrf.mxu0 }
 0x917   :  { %v6013_v43 = vadd.f32 %v2595_v53, %v2563_v37  ;;  %2481 = vrot.lane.b32.xlu0 %v5157_v31, %s5201_s20  ;;  %v2436_v31 = vsel %vm230_vm3, %v5604_v41, %v2355_v40  ;;  %v2446_v37 = vsel %vm2438_vm8, %v2437_v29, %v2389_v50 }
 0x918   :  { %v2445_v53 = vsel %vm2438_vm8, %v2436_v31, %v2387_v1 }
 0x919   :  { %v2599_v62 = vmax.f32 %v6013_v43, 0.0 }
 0x91b   :  { %4780 = vmatmul.msk.f32.gmra.mxu1 %vm2618_vm7, %v2599_v62 }
 0x937   :  { %v2411_v27 = vpop.permute.xlu0 %2410 }
 0x938   :  { %v2450_v12 = vsel %vm2447_vm9, %v2441_v8, %v2411_v27 }
 0x939   :  { %v2460_v15 = vrot.slane %v2450_v12, 4 }
 0x93d   :  { %v2407_v0 = vpop.permute.xlu2 %2406 }
 0x93e   :  { %v2448_v35 = vsel %vm2447_vm9, %v2439_v17, %v2407_v0 }
 0x951   :  { %v2415_v23 = vpop.permute.xlu2 %2414 }
 0x952   :  { %v2452_v51 = vsel %vm2447_vm9, %v2443_v9, %v2415_v23 }
 0x959   :  { %v2614_v19 = vpop.permute.xlu2 %2613 }
 0x961   :  { %v2409_v10 = vpop.permute.xlu0 %2408 }
 0x962   :  { %v2449_v5 = vsel %vm2447_vm9, %v2440_v16, %v2409_v10 }
 0x963   :  { %v2457_v61 = vrot.slane %v2449_v5, 6 }
 0x965   :  { %v2474_v14 = vsel %vm73_vm1, %v2448_v35, %v2457_v61  ;;  %v137_v61 = vadd.f32 %v5415_v54, %v5417_v55 }
 0x966   :  { %v2476_v38 = vsel %vm2475_vm10, %v2474_v14, %v2460_v15 }
 0x967   :  { %v171_v17 = vadd.f32 %v5419_v56, %v137_v61 }
 0x96e   :  { %v2413_v11 = vpop.permute.xlu1 %2412 }
 0x96f   :  { %v2451_v20 = vsel %vm2447_vm9, %v2442_v33, %v2413_v11 }
 0x970   :  { %v2463_v46 = vrot.slane %v2451_v20, 2 }
 0x971   :  { %v2417_v28 = vpop.permute.xlu0 %2416 }
 0x972   :  { %v2477_v24 = vsel %vm79_vm2, %v2476_v38, %v2463_v46  ;;  %v2453_v52 = vsel %vm2447_vm9, %v2444_v25, %v2417_v28  ;;  %v140_v46 = vadd.f32 %v5421_v57, %v5423_v58 }
 0x973   :  { %4771 = vmatmul.msk.f32.vlgmr.msrb.gmra.mxu2 %vm39_vm0, %v2477_v24  ;;  %v2466_v21 = vrot.slane %v2453_v52, 6 }
 0x974   :  { %v172_v55 = vadd.f32 %v5425_v59, %v140_v46 }
 0x975   :  { %v2478_v2 = vsel %vm73_vm1, %v2452_v51, %v2466_v21 }
 0x976   :  { %v2421_v32 = vpop.permute.xlu1 %2420 }
 0x977   :  { %v2455_v22 = vsel %vm2447_vm9, %v2446_v37, %v2421_v32 }
 0x978   :  { %v2472_v48 = vrot.slane %v2455_v22, 2 }
 0x979   :  { %v2419_v18 = vpop.permute.xlu0 %2418 }
 0x97a   :  { %v2454_v7 = vsel %vm2447_vm9, %v2445_v53, %v2419_v18 }
 0x97b   :  { %v2469_v34 = vrot.slane %v2454_v7, 4 }
 0x97d   :  { %v2479_v41 = vsel %vm2475_vm10, %v2478_v2, %v2469_v34 }
 0x97e   :  { %v2480_v26 = vsel %vm79_vm2, %v2479_v41, %v2472_v48  ;;  %v174_v8 = vpop.permute.xlu1 %173 }
 0x97f   :  { %4772 = vmatmul.msk.f32.gmra.mxu2 %vm39_vm0, %v2480_v26  ;;  %v176_v33 = vadd.f32 %v174_v8, %v171_v17  ;;  %v177_v28 = vadd.f32 %v174_v8, %v172_v55 }
 0x981   :  { %v2612_v4 = vpop.permute.xlu0 %2611 }
 0x982   :  { %v2616_v40 = vsel %vm2615_vm11, %v2612_v4, %v2614_v19 }
 0x989   :  { %v2482_v12 = vpop.permute.xlu0 %2481 }
 0x990   :  { %v2646_v42 = vpop.f32.mrf.mxu1 }
 0x991   :  { %v6062_v63 = vadd.f32 %v2646_v42, %v2616_v40 }
 0x993   :  { %2674 = vrot.lane.b32.xlu2 %v6062_v63, %s5202_s22  ;;  %v6066_v6 = vrot.slane %v6062_v63, 6  ;;  %v6069_v36 = vrot.slane %v6062_v63, 2  ;;  %v6077_v49 = vrot.slane %v6062_v63, 4  ;;  %v6104_v50 = vmul.f32 0.37796447, %v6062_v63 }
 0x995   :  { %2756 = vrot.lane.b32.xlu0 %v6066_v6, %s5202_s22  ;;  %2702 = vrot.lane.b32.xlu1 %v6069_v36, %s5202_s22  ;;  %v6111_v5 = vmul.f32 0.37796447, %v6066_v6  ;;  %v6151_v32 = vmul.f32 0.37796447, %v6069_v36  ;;  %v6155_v29 = vmul.f32 0.37796447, %v6077_v49 }
 0x998   :  { %v2649_v1 = vpop.f32.mrf.mxu1 }
 0x999   :  { %v6073_v27 = vadd.f32 %v2649_v1, %v2616_v40 }
 0x99b   :  { %2783 = vrot.lane.b32.xlu2 %v6073_v27, %s5202_s22  ;;  %v6080_v10 = vrot.slane %v6073_v27, 6  ;;  %v6085_v39 = vrot.slane %v6073_v27, 2  ;;  %v6089_v16 = vrot.slane %v6073_v27, 4  ;;  %v6122_v44 = vmul.f32 0.37796447, %v6073_v27 }
 0x99d   :  { %2729 = vrot.lane.b32.xlu0 %v6077_v49, %s5202_s22  ;;  %2864 = vrot.lane.b32.xlu1 %v6080_v10, %s5202_s22  ;;  %v6137_v54 = vmul.f32 0.37796447, %v6085_v39  ;;  %v6158_v30 = vmul.f32 0.37796447, %v6080_v10  ;;  %v6169_v23 = vmul.f32 0.37796447, %v6089_v16 }
 0x9a3   :  { %2810 = vrot.lane.b32.xlu2 %v6085_v39, %s5202_s22 }
 0x9a5   :  { %2979 = vrot.lane.b32.xlu0 %v6062_v63, %s5203_s23  ;;  %2837 = vrot.lane.b32.xlu1 %v6089_v16, %s5202_s22 }
 0x9ab   :  { %3060 = vrot.lane.b32.xlu2 %v6066_v6, %s5203_s23 }
 0x9ad   :  { %3087 = vrot.lane.b32.xlu0 %v6073_v27, %s5203_s23  ;;  %3006 = vrot.lane.b32.xlu1 %v6069_v36, %s5203_s23 }
 0x9b3   :  { %3197 = vrot.lane.b32.xlu2 %v6062_v63, %s5204_s24 }
 0x9b5   :  { %3281 = vrot.lane.b32.xlu0 %v6066_v6, %s5204_s24  ;;  %3033 = vrot.lane.b32.xlu1 %v6077_v49, %s5203_s23 }
 0x9bb   :  { %3309 = vrot.lane.b32.xlu2 %v6073_v27, %s5204_s24 }
 0x9bd   :  { %3393 = vrot.lane.b32.xlu0 %v6080_v10, %s5204_s24  ;;  %3195 = vrot.lane.b32.xlu1 %v6104_v50, %s5205_s26 }
 0x9c5   :  { %3279 = vrot.lane.b32.xlu1 %v6111_v5, %s5205_s26 }
 0x9cd   :  { %3168 = vrot.lane.b32.xlu1 %v6080_v10, %s5203_s23 }
 0x9d5   :  { %3114 = vrot.lane.b32.xlu1 %v6085_v39, %s5203_s23 }
 0x9dd   :  { %3141 = vrot.lane.b32.xlu1 %v6089_v16, %s5203_s23 }
 0x9e5   :  { %3307 = vrot.lane.b32.xlu1 %v6122_v44, %s5205_s26 }
 0x9ed   :  { %v2675_v0 = vpop.permute.xlu2 %2674 }
 0x9ee   :  { %4781 = vmatpush.xpose.msk.msra.mxu2 %vm2676_vm12, %v2675_v0 }
 0x9f1   :  { %4782 = vmatmul.msk.f32.vlgmr.msra.gmra.mxu2 %vm2676_vm12, %v6104_v50 }
 0x9f5   :  { %v2784_v45 = vpop.permute.xlu2 %2783 }
 0x9f6   :  { %v2507_v35 = vpop.f32.mrf.mxu2 }
 0x9f7   :  { %v2508_v14 = vadd.f32 %v2507_v35, %v2482_v12 }
 0x9f9   :  { %v2513_v11 = vadd.f32 %v2508_v14, %v176_v33 }
 0x9fb   :  { %v2515_v15 = vmax.f32 %v2513_v11, 0.0 }
 0x9fd   :  { %v2811_v20 = vpop.permute.xlu2 %2810  ;;  %4773 = vmatmul.msk.f32.vlgmr.msrb.gmra.mxu3 %vm39_vm0, %v2515_v15 }
 0x9fe   :  { %4791 = vmatpush.xpose.msk.msra.mxu0 %vm2676_vm12, %v2811_v20 }
 0xa01   :  { %4792 = vmatmul.msk.f32.vlgmr.msra.gmra.mxu0 %vm2676_vm12, %v6137_v54 }
 0xa02   :  { %v2510_v56 = vpop.f32.mrf.mxu2 }
 0xa03   :  { %v2511_v38 = vadd.f32 %v2510_v56, %v2482_v12 }
 0xa05   :  { %v2514_v24 = vadd.f32 %v2511_v38, %v177_v28  ;;  %v3061_v59 = vpop.permute.xlu2 %3060 }
 0xa07   :  { %v2516_v47 = vmax.f32 %v2514_v24, 0.0  ;;  %v2757_v25 = vpop.permute.xlu0 %2756  ;;  %v2703_v52 = vpop.permute.xlu1 %2702 }
 0xa08   :  { %4783 = vmatpush.xpose.msk.msra.mxu3 %vm2676_vm12, %v2703_v52  ;;  %4787 = vmatpush.xpose.msk.msrb.mxu2 %vm2676_vm12, %v2757_v25 }
 0xa09   :  { %4774 = vmatmul.msk.f32.gmra.mxu3 %vm39_vm0, %v2516_v47 }
 0xa0b   :  { %4788 = vmatmul.msk.f32.vlgmr.msrb.gmra.mxu2 %vm2676_vm12, %v6111_v5 }
 0xa0c   :  { %4789 = vmatpush.xpose.msk.msrb.mxu3 %vm2676_vm12, %v2784_v45 }
 0xa0d   :  { %v6210_v56 = vpop.permute.xlu2 %3197 }
 0xa0f   :  { %v2730_v57 = vpop.permute.xlu0 %2729  ;;  %v2865_v58 = vpop.permute.xlu1 %2864 }
 0xa10   :  { %4785 = vmatpush.xpose.msk.msrb.mxu1 %vm2676_vm12, %v2730_v57  ;;  %4795 = vmatpush.xpose.msk.msra.mxu2 %vm2676_vm12, %v2865_v58 }
 0xa11   :  { %4784 = vmatmul.msk.f32.vlgmr.msra.gmra.mxu3 %vm2676_vm12, %v6151_v32 }
 0xa13   :  { %4786 = vmatmul.msk.f32.vlgmr.msrb.gmra.mxu1 %vm2676_vm12, %v6155_v29  ;;  %4796 = vmatmul.msk.f32.vlgmr.msra.gmra.mxu2 %vm2676_vm12, %v6158_v30 }
 0xa14   :  { %4803 = vmatpush.msk.msrb.mxu2 %vm73_vm1, %v3061_v59 }
 0xa15   :  { %v6218_v47 = vpop.permute.xlu2 %3309 }
 0xa17   :  { %v2980_v31 = vpop.permute.xlu0 %2979  ;;  %v2838_v37 = vpop.permute.xlu1 %2837 }
 0xa18   :  { %4793 = vmatpush.xpose.msk.msra.mxu1 %vm2676_vm12, %v2838_v37  ;;  %4797 = vmatpush.msk.msra.mxu3 %vm73_vm1, %v2980_v31 }
 0xa19   :  { %4790 = vmatmul.msk.f32.vlgmr.msrb.gmra.mxu3 %vm2676_vm12, %v6122_v44 }
 0xa1b   :  { %4794 = vmatmul.msk.f32.vlgmr.msra.gmra.mxu1 %vm2676_vm12, %v6169_v23 }
 0xa1f   :  { %v3088_v21 = vpop.permute.xlu0 %3087  ;;  %v3007_v53 = vpop.permute.xlu1 %3006 }
 0xa20   :  { %4799 = vmatpush.msk.msrb.mxu0 %vm73_vm1, %v3007_v53  ;;  %4805 = vmatpush.msk.msrb.mxu3 %vm73_vm1, %v3088_v21 }
 0xa27   :  { %v3034_v22 = vpop.permute.xlu1 %3033  ;;  %v6206_v14 = vpop.permute.xlu0 %3281 }
 0xa28   :  { %4801 = vmatpush.msk.msrb.mxu1 %vm73_vm1, %v3034_v22 }
 0xa2f   :  { %v6178_v18 = vpop.permute.xlu1 %3195  ;;  %v6208_v11 = vpop.permute.xlu0 %3393 }
 0xa37   :  { %v6180_v9 = vpop.permute.xlu1 %3279 }
 0xa3f   :  { %v3169_v7 = vpop.permute.xlu1 %3168 }
 0xa40   :  { %4811 = vmatpush.msk.msra.mxu2 %vm73_vm1, %v3169_v7 }
 0xa47   :  { %v3115_v51 = vpop.permute.xlu1 %3114 }
 0xa48   :  { %4807 = vmatpush.msk.msra.mxu0 %vm73_vm1, %v3115_v51 }
 0xa4f   :  { %v3142_v34 = vpop.permute.xlu1 %3141 }
 0xa50   :  { %4809 = vmatpush.msk.msra.mxu1 %vm73_vm1, %v3142_v34 }
 0xa57   :  { %v6212_v28 = vpop.permute.xlu1 %3307 }
 0xa74   :  { %v2699_v48 = vpop.f32.mrf.mxu2 }
 0xa75   :  { %v2891_v2 = vsel %vm445_vm4, %v2699_v48, -inf }
 0xa76   :  { %2892 = vmax.xlane.f32.xlu0 %v2891_v2 }
 0xa7e   :  { %v2834_v41 = vpop.f32.mrf.mxu0 }
 0xa7f   :  { %v2906_v26 = vsel %vm445_vm4, %v2834_v41, -inf }
 0xa80   :  { %2907 = vmax.xlane.f32.xlu0 %v2906_v26  ;;  %v6187_v4 = vpop.f32.mrf.mxu3 }
 0xa8c   :  { %v6189_v19 = vpop.f32.mrf.mxu3 }
 0xa8e   :  { %v2780_v40 = vpop.f32.mrf.mxu2 }
 0xa8f   :  { %v2900_v35 = vsel %vm445_vm4, %v2780_v40, -inf }
 0xa90   :  { %v2753_v42 = vpop.f32.mrf.mxu1 }
 0xa91   :  { %v2897_v1 = vsel %vm445_vm4, %v2753_v42, -inf }
 0xa92   :  { %2898 = vmax.xlane.f32.xlu1 %v2897_v1 }
 0xa94   :  { %v6192_v3 = vpop.f32.mrf.mxu3 }
 0xa95   :  { %v2894_v33 = vsel %vm445_vm4, %v6192_v3, -inf }
 0xa96   :  { %v2888_v0 = vpop.f32.mrf.mxu2 }
 0xa97   :  { %v2912_v61 = vsel %vm445_vm4, %v2888_v0, -inf }
 0xa98   :  { %2913 = vmax.xlane.f32.xlu0 %v2912_v61  ;;  %v2861_v8 = vpop.f32.mrf.mxu1 }
 0xa99   :  { %v2909_v12 = vsel %vm445_vm4, %v2861_v8, -inf }
 0xa9a   :  { %2910 = vmax.xlane.f32.xlu2 %v2909_v12 }
 0xa9c   :  { %v2807_v17 = vpop.f32.mrf.mxu3 }
 0xa9d   :  { %v2903_v45 = vsel %vm445_vm4, %v2807_v17, -inf }
 0xa9e   :  { %2904 = vmax.xlane.f32.xlu1 %v2903_v45 }
 0xaa2   :  { %2901 = vmax.xlane.f32.xlu2 %v2900_v35 }
 0xaaa   :  { %2895 = vmax.xlane.f32.xlu2 %v2894_v33 }
 0xaac   :  { %3391 = vrot.lane.b32.xlu0 %v6158_v30, %s5205_s26 }
 0xab7   :  { %3253 = vrot.lane.b32.xlu1 %v6077_v49, %s5204_s24 }
 0xac2   :  { %3225 = vrot.lane.b32.xlu2 %v6069_v36, %s5204_s24 }
 0xae9   :  { %v2893_v15 = vpop.xlane.xlu0 %2892 }
 0xaea   :  { %v2915_v57 = vsub.f32 %v2699_v48, %v2893_v15 }
 0xaec   :  { %v2923_v59 = vmul.f32 1.442695, %v2915_v57 }
 0xaf3   :  { %v2908_v20 = vpop.xlane.xlu0 %2907 }
 0xaf4   :  { %v2920_v46 = vsub.f32 %v2834_v41, %v2908_v20 }
 0xaf6   :  { %v2933_v55 = vmul.f32 1.442695, %v2920_v46 }
 0xaf8   :  { %5057 = vpow2.f32 %v2933_v55 }
 0xafe   :  { %v6214_v38 = vpop.eup %5057 }
 0xaff   :  { %v2954_v24 = vsel %vm445_vm4, %v6214_v38, 0.0 }
 0xb00   :  { %2955 = vadd.xlane.f32.xlu2 %v2954_v24 }
 0xb05   :  { %v2899_v25 = vpop.xlane.xlu1 %2898 }
 0xb06   :  { %v2917_v52 = vsub.f32 %v2753_v42, %v2899_v25 }
 0xb08   :  { %v2927_v58 = vmul.f32 1.442695, %v2917_v52 }
 0xb0a   :  { %5059 = vpow2.f32 %v2927_v58 }
 0xb0b   :  { %v2914_v31 = vpop.xlane.xlu0 %2913  ;;  %5061 = vpow2.f32 %v2923_v59 }
 0xb0c   :  { %v2922_v22 = vsub.f32 %v2888_v0, %v2914_v31 }
 0xb0d   :  { %v2911_v37 = vpop.xlane.xlu2 %2910 }
 0xb0e   :  { %v2921_v21 = vsub.f32 %v2861_v8, %v2911_v37  ;;  %v2937_v41 = vmul.f32 1.442695, %v2922_v22 }
 0xb10   :  { %v6220_v53 = vpop.eup %5059  ;;  %v2935_v7 = vmul.f32 1.442695, %v2921_v21 }
 0xb11   :  { %v2945_v51 = vsel %vm445_vm4, %v6220_v53, 0.0  ;;  %v2905_v34 = vpop.xlane.xlu1 %2904  ;;  %v6224_v42 = vpop.eup %5061 }
 0xb12   :  { %5063 = vpow2.f32 %v2935_v7  ;;  %2946 = vadd.xlane.f32.xlu1 %v2945_v51  ;;  %v2919_v2 = vsub.f32 %v2807_v17, %v2905_v34  ;;  %v2939_v12 = vsel %vm445_vm4, %v6224_v42, 0.0 }
 0xb14   :  { %v2931_v48 = vmul.f32 1.442695, %v2919_v2 }
 0xb15   :  { %v2902_v26 = vpop.xlane.xlu2 %2901 }
 0xb16   :  { %v2918_v1 = vsub.f32 %v2780_v40, %v2902_v26  ;;  %5065 = vpow2.f32 %v2931_v48 }
 0xb17   :  { %5067 = vpow2.f32 %v2937_v41 }
 0xb18   :  { %v6226_v61 = vpop.eup %5063  ;;  %v2929_v8 = vmul.f32 1.442695, %v2918_v1 }
 0xb19   :  { %v2957_v0 = vsel %vm445_vm4, %v6226_v61, 0.0 }
 0xb1a   :  { %5069 = vpow2.f32 %v2929_v8  ;;  %2958 = vadd.xlane.f32.xlu0 %v2957_v0  ;;  %2940 = vadd.xlane.f32.xlu1 %v2939_v12 }
 0xb1c   :  { %v6232_v17 = vpop.eup %5065 }
 0xb1d   :  { %v2896_v45 = vpop.xlane.xlu2 %2895  ;;  %v6234_v35 = vpop.eup %5067  ;;  %v2951_v33 = vsel %vm445_vm4, %v6232_v17, 0.0 }
 0xb1e   :  { %v2916_v40 = vsub.f32 %v6192_v3, %v2896_v45  ;;  %2952 = vadd.xlane.f32.xlu2 %v2951_v33  ;;  %v2960_v55 = vsel %vm445_vm4, %v6234_v35, 0.0  ;;  %v3392_v52 = vpop.permute.xlu0 %3391 }
 0xb20   :  { %v6239_v15 = vpop.eup %5069  ;;  %v2925_v20 = vmul.f32 1.442695, %v2916_v40 }
 0xb21   :  { %v2948_v46 = vsel %vm445_vm4, %v6239_v15, 0.0 }
 0xb22   :  { %5071 = vpow2.f32 %v2925_v20  ;;  %2949 = vadd.xlane.f32.xlu0 %v2948_v46  ;;  %2961 = vadd.xlane.f32.xlu1 %v2960_v55 }
 0xb25   :  { %v3226_v25 = vpop.permute.xlu2 %3225 }
 0xb28   :  { %v6245_v24 = vpop.eup %5071 }
 0xb29   :  { %v2942_v3 = vsel %vm445_vm4, %v6245_v24, 0.0 }
 0xb2a   :  { %2943 = vadd.xlane.f32.xlu1 %v2942_v3 }
 0xb36   :  { %3223 = vrot.lane.b32.xlu0 %v6151_v32, %s5205_s26  ;;  %3251 = vrot.lane.b32.xlu2 %v6155_v29, %s5205_s26 }
 0xb3e   :  { %3365 = vrot.lane.b32.xlu0 %v6089_v16, %s5204_s24  ;;  %3335 = vrot.lane.b32.xlu2 %v6137_v54, %s5205_s26 }
 0xb43   :  { %3337 = vrot.lane.b32.xlu1 %v6085_v39, %s5204_s24  ;;  %s5211_s24 = smov 95  }
 0xb46   :  { %3507 = vrot.lane.b32.xlu0 %v6062_v63, %s5206_s30  ;;  %3588 = vrot.lane.b32.xlu2 %v6066_v6, %s5206_s30 }
 0xb4b   :  { %3363 = vrot.lane.b32.xlu1 %v6169_v23, %s5205_s26 }
 0xb4e   :  { %3615 = vrot.lane.b32.xlu0 %v6073_v27, %s5206_s30  ;;  %3809 = vrot.lane.b32.xlu2 %v6066_v6, %s5207_s9 }
 0xb53   :  { %3696 = vrot.lane.b32.xlu1 %v6080_v10, %s5206_s30 }
 0xb56   :  { %3723 = vrot.lane.b32.xlu0 %v6104_v50, %s5194_s28  ;;  %3837 = vrot.lane.b32.xlu2 %v6073_v27, %s5207_s9  ;;  %v3254_v50 = vpop.permute.xlu1 %3253 }
 0xb5b   :  { %3534 = vrot.lane.b32.xlu1 %v6069_v36, %s5206_s30 }
 0xb5e   :  { %3921 = vrot.lane.b32.xlu0 %v6080_v10, %s5207_s9  ;;  %3781 = vrot.lane.b32.xlu2 %v6077_v49, %s5207_s9 }
 0xb63   :  { %3561 = vrot.lane.b32.xlu1 %v6077_v49, %s5206_s30 }
 0xb6b   :  { %3725 = vrot.lane.b32.xlu1 %v6062_v63, %s5207_s9 }
 0xb73   :  { %3807 = vrot.lane.b32.xlu1 %v6111_v5, %s5194_s28  ;;  %v2956_v58 = vpop.xlane.xlu2 %2955 }
 0xb7b   :  { %3642 = vrot.lane.b32.xlu1 %v6085_v39, %s5206_s30 }
 0xb83   :  { %3669 = vrot.lane.b32.xlu1 %v6089_v16, %s5206_s30 }
 0xb85   :  { %v2947_v57 = vpop.xlane.xlu1 %2946 }
 0xb86   :  { %5073 = vrcp.f32 %v2947_v57 }
 0xb8b   :  { %3753 = vrot.lane.b32.xlu1 %v6069_v36, %s5207_s9 }
 0xb8c   :  { %v5074_v59 = vpop.eup %5073 }
 0xb8d   :  { %v2973_v31 = vmul.f32 %v5074_v59, %v6220_v53  ;;  %v2959_v37 = vpop.xlane.xlu0 %2958  ;;  %v2941_v5 = vpop.xlane.xlu1 %2940 }
 0xb8e   :  { %5075 = vrcp.f32 %v2959_v37 }
 0xb8f   :  { %5077 = vrcp.f32 %v2941_v5  ;;  %4802 = vmatmul.msk.f32.vlgmr.msrb.gmra.mxu1 %vm230_vm3, %v2973_v31 }
 0xb90   :  { %4817 = vmatpush.xpose.msk.msrb.mxu1 %vm2676_vm12, %v3254_v50 }
 0xb91   :  { %v2953_v21 = vpop.xlane.xlu2 %2952 }
 0xb92   :  { %5079 = vrcp.f32 %v2953_v21 }
 0xb94   :  { %v5076_v22 = vpop.eup %5075 }
 0xb95   :  { %v5078_v7 = vpop.eup %5077  ;;  %v2977_v51 = vmul.f32 %v5076_v22, %v6226_v61  ;;  %v2950_v34 = vpop.xlane.xlu0 %2949 }
 0xb96   :  { %v2962_v2 = vpop.xlane.xlu1 %2961  ;;  %v2971_v41 = vmul.f32 %v5078_v7, %v6224_v42  ;;  %5081 = vrcp.f32 %v2950_v34 }
 0xb97   :  { %4810 = vmatmul.msk.f32.vlgmr.msra.gmra.mxu1 %vm230_vm3, %v2977_v51  ;;  %5083 = vrcp.f32 %v2962_v2 }
 0xb98   :  { %4798 = vmatmul.msk.f32.vlgmr.msra.gmra.mxu3 %vm230_vm3, %v2971_v41  ;;  %v5080_v53 = vpop.eup %5079 }
 0xb99   :  { %4813 = vmatpush.xpose.msk.msra.mxu3 %vm2676_vm12, %v6210_v56  ;;  %v3252_v48 = vpop.permute.xlu2 %3251  ;;  %v2975_v8 = vmul.f32 %v5080_v53, %v6232_v17 }
 0xb9c   :  { %v5082_v26 = vpop.eup %5081 }
 0xb9d   :  { %v2974_v1 = vmul.f32 %v5082_v26, %v6239_v15  ;;  %v5084_v56 = vpop.eup %5083 }
 0xb9e   :  { %v2944_v61 = vpop.xlane.xlu1 %2943  ;;  %v2978_v0 = vmul.f32 %v5084_v56, %v6234_v35 }
 0xb9f   :  { %5085 = vrcp.f32 %v2944_v61  ;;  %4804 = vmatmul.msk.f32.vlgmr.msrb.gmra.mxu2 %vm230_vm3, %v2974_v1  ;;  %4818 = vmatmul.msk.f32.vlgmr.msrb.gmra.mxu1 %vm2676_vm12, %v3252_v48 }
 0xba0   :  { %4806 = vmatmul.msk.f32.vlgmr.msrb.gmra.mxu3 %vm230_vm3, %v2975_v8  ;;  %4819 = vmatpush.xpose.msk.msrb.mxu2 %vm2676_vm12, %v6206_v14  ;;  %5087 = vrcp.f32 %v2956_v58 }
 0xba1   :  { %4821 = vmatpush.xpose.msk.msrb.mxu3 %vm2676_vm12, %v6218_v47  ;;  %v3336_v17 = vpop.permute.xlu2 %3335 }
 0xba5   :  { %v5086_v42 = vpop.eup %5085 }
 0xba6   :  { %v2972_v12 = vmul.f32 %v5086_v42, %v6245_v24  ;;  %v5088_v47 = vpop.eup %5087 }
 0xba7   :  { %4812 = vmatmul.msk.f32.vlgmr.msra.gmra.mxu2 %vm230_vm3, %v2978_v0  ;;  %v2976_v45 = vmul.f32 %v5088_v47, %v6214_v38 }
 0xba8   :  { %4800 = vmatmul.msk.f32.vlgmr.msrb.gmra.mxu0 %vm230_vm3, %v2972_v12  ;;  %4814 = vmatmul.msk.f32.vlgmr.msra.gmra.mxu3 %vm2676_vm12, %v6178_v18  ;;  %v3224_v14 = vpop.permute.xlu0 %3223 }
 0xba9   :  { %4815 = vmatpush.xpose.msk.msrb.mxu0 %vm2676_vm12, %v3226_v25  ;;  %4827 = vmatpush.xpose.msk.msra.mxu2 %vm2676_vm12, %v6208_v11  ;;  %v3589_v35 = vpop.permute.xlu2 %3588 }
 0xbaf   :  { %4820 = vmatmul.msk.f32.vlgmr.msrb.gmra.mxu2 %vm2676_vm12, %v6180_v9 }
 0xbb0   :  { %4808 = vmatmul.msk.f32.vlgmr.msra.gmra.mxu0 %vm230_vm3, %v2976_v45  ;;  %4822 = vmatmul.msk.f32.vlgmr.msrb.gmra.mxu3 %vm2676_vm12, %v6212_v28  ;;  %v3366_v18 = vpop.permute.xlu0 %3365 }
 0xbb1   :  { %4835 = vmatpush.msk.msrb.mxu2 %vm73_vm1, %v3589_v35  ;;  %4825 = vmatpush.xpose.msk.msra.mxu1 %vm2676_vm12, %v3366_v18 }
 0xbb5   :  { %v3338_v40 = vpop.permute.xlu1 %3337 }
 0xbb6   :  { %4823 = vmatpush.xpose.msk.msra.mxu0 %vm2676_vm12, %v3338_v40 }
 0xbb7   :  { %4828 = vmatmul.msk.f32.vlgmr.msra.gmra.mxu2 %vm2676_vm12, %v3392_v52 }
 0xbb8   :  { %4816 = vmatmul.msk.f32.vlgmr.msrb.gmra.mxu0 %vm2676_vm12, %v3224_v14  ;;  %v3508_v11 = vpop.permute.xlu0 %3507 }
 0xbb9   :  { %4829 = vmatpush.msk.msra.mxu3 %vm73_vm1, %v3508_v11 }
 0xbbd   :  { %v3364_v38 = vpop.permute.xlu1 %3363 }
 0xbbe   :  { %4826 = vmatmul.msk.f32.vlgmr.msra.gmra.mxu1 %vm2676_vm12, %v3364_v38 }
 0xbc0   :  { %4824 = vmatmul.msk.f32.vlgmr.msra.gmra.mxu0 %vm2676_vm12, %v3336_v17  ;;  %v3616_v9 = vpop.permute.xlu0 %3615  ;;  %v6382_v17 = vpop.permute.xlu2 %3809 }
 0xbc1   :  { %4837 = vmatpush.msk.msrb.mxu3 %vm73_vm1, %v3616_v9 }
 0xbc5   :  { %v3697_v28 = vpop.permute.xlu1 %3696 }
 0xbc6   :  { %4843 = vmatpush.msk.msra.mxu2 %vm73_vm1, %v3697_v28 }
 0xbc8   :  { %v6386_v45 = vpop.permute.xlu0 %3723  ;;  %v6390_v35 = vpop.permute.xlu2 %3837 }
 0xbcd   :  { %v3535_v33 = vpop.permute.xlu1 %3534 }
 0xbce   :  { %4831 = vmatpush.msk.msrb.mxu0 %vm73_vm1, %v3535_v33 }
 0xbd5   :  { %v3562_v15 = vpop.permute.xlu1 %3561 }
 0xbd6   :  { %4833 = vmatpush.msk.msrb.mxu1 %vm73_vm1, %v3562_v15 }
 0xbdd   :  { %v6338_v20 = vpop.permute.xlu1 %3725 }
 0xbe5   :  { %v6340_v46 = vpop.permute.xlu1 %3807 }
 0xbed   :  { %v3643_v55 = vpop.permute.xlu1 %3642 }
 0xbee   :  { %4839 = vmatpush.msk.msra.mxu0 %vm73_vm1, %v3643_v55 }
 0xbf5   :  { %v3670_v24 = vpop.permute.xlu1 %3669 }
 0xbf6   :  { %4841 = vmatpush.msk.msra.mxu1 %vm73_vm1, %v3670_v24 }
 0xbfd   :  { %v6380_v42 = vpop.permute.xlu1 %3753 }
 0xc0c   :  { %v6344_v3 = vpop.f32.mrf.mxu1 }
 0xc14   :  { %v6346_v50 = vpop.f32.mrf.mxu1 }
 0xc1b   :  { %v6348_v25 = vpop.f32.mrf.mxu3 }
 0xc1c   :  { %v3276_v52 = vpop.f32.mrf.mxu1 }
 0xc1d   :  { %v3425_v57 = vsel %vm445_vm4, %v3276_v52, -inf }
 0xc1e   :  { %3426 = vmax.xlane.f32.xlu1 %v3425_v57 }
 0xc22   :  { %v6351_v58 = vpop.f32.mrf.mxu2 }
 0xc23   :  { %v6353_v59 = vpop.f32.mrf.mxu3 }
 0xc25   :  { %v6355_v31 = vpop.f32.mrf.mxu0 }
 0xc2a   :  { %v6357_v37 = vpop.f32.mrf.mxu2 }
 0xc2b   :  { %v6359_v5 = vpop.f32.mrf.mxu3 }
 0xc2c   :  { %v3419_v26 = vsel %vm445_vm4, %v6359_v5, -inf }
 0xc2d   :  { %v6363_v7 = vpop.f32.mrf.mxu0 }
 0xc32   :  { %v3304_v21 = vpop.f32.mrf.mxu2 }
 0xc33   :  { %v6361_v22 = vpop.f32.mrf.mxu3  ;;  %v3428_v1 = vsel %vm445_vm4, %v3304_v21, -inf }
 0xc34   :  { %v3431_v51 = vsel %vm445_vm4, %v6361_v22, -inf }
 0xc35   :  { %3432 = vmax.xlane.f32.xlu1 %v3431_v51  ;;  %v3248_v48 = vpop.f32.mrf.mxu0 }
 0xc36   :  { %v3422_v56 = vsel %vm445_vm4, %v3248_v48, -inf }
 0xc3a   :  { %v3416_v34 = vpop.f32.mrf.mxu2 }
 0xc3b   :  { %v3388_v2 = vpop.f32.mrf.mxu1  ;;  %v3440_v41 = vsel %vm445_vm4, %v3416_v34, -inf }
 0xc3c   :  { %3441 = vmax.xlane.f32.xlu0 %v3440_v41  ;;  %v3437_v53 = vsel %vm445_vm4, %v3388_v2, -inf }
 0xc3d   :  { %3438 = vmax.xlane.f32.xlu2 %v3437_v53  ;;  %v3360_v61 = vpop.f32.mrf.mxu0 }
 0xc3e   :  { %v3434_v8 = vsel %vm445_vm4, %v3360_v61, -inf }
 0xc44   :  { %3420 = vmax.xlane.f32.xlu0 %v3419_v26 }
 0xc45   :  { %3429 = vmax.xlane.f32.xlu2 %v3428_v1 }
 0xc4c   :  { %3435 = vmax.xlane.f32.xlu0 %v3434_v8 }
 0xc4d   :  { %3423 = vmax.xlane.f32.xlu2 %v3422_v56 }
 0xc4e   :  { %3919 = vrot.lane.b32.xlu1 %v6158_v30, %s5194_s28 }
 0xc60   :  { %3835 = vrot.lane.b32.xlu0 %v6122_v44, %s5194_s28  ;;  %v6392_v44 = vpop.permute.xlu0 %3921 }
 0xc65   :  { %3751 = vrot.lane.b32.xlu2 %v6151_v32, %s5194_s28  ;;  %v6394_v32 = vpop.permute.xlu2 %3781 }
 0xc91   :  { %v3427_v0 = vpop.xlane.xlu1 %3426 }
 0xc92   :  { %v3445_v12 = vsub.f32 %v3276_v52, %v3427_v0 }
 0xc94   :  { %v3455_v14 = vmul.f32 1.442695, %v3445_v12 }
 0xc96   :  { %5089 = vpow2.f32 %v3455_v14 }
 0xc9c   :  { %v6384_v47 = vpop.eup %5089 }
 0xc9d   :  { %v3473_v30 = vsel %vm445_vm4, %v6384_v47, 0.0 }
 0xc9e   :  { %3474 = vadd.xlane.f32.xlu1 %v3473_v30 }
 0xcaf   :  { %v3442_v18 = vpop.xlane.xlu0 %3441 }
 0xcb0   :  { %v3450_v40 = vsub.f32 %v3416_v34, %v3442_v18  ;;  %v3439_v11 = vpop.xlane.xlu2 %3438  ;;  %v3433_v34 = vpop.xlane.xlu1 %3432 }
 0xcb1   :  { %v3449_v38 = vsub.f32 %v3388_v2, %v3439_v11  ;;  %v3447_v8 = vsub.f32 %v6361_v22, %v3433_v34 }
 0xcb2   :  { %v3465_v9 = vmul.f32 1.442695, %v3450_v40 }
 0xcb3   :  { %v3463_v28 = vmul.f32 1.442695, %v3449_v38  ;;  %v3459_v30 = vmul.f32 1.442695, %v3447_v8 }
 0xcb4   :  { %5091 = vpow2.f32 %v3465_v9 }
 0xcb5   :  { %5093 = vpow2.f32 %v3463_v28 }
 0xcb7   :  { %v3421_v33 = vpop.xlane.xlu0 %3420 }
 0xcb8   :  { %v3430_v15 = vpop.xlane.xlu2 %3429  ;;  %v3443_v0 = vsub.f32 %v6359_v5, %v3421_v33 }
 0xcb9   :  { %v3446_v55 = vsub.f32 %v3304_v21, %v3430_v15 }
 0xcba   :  { %v6396_v24 = vpop.eup %5091  ;;  %v3451_v18 = vmul.f32 1.442695, %v3443_v0 }
 0xcbb   :  { %v5094_v52 = vpop.eup %5093  ;;  %v3457_v57 = vmul.f32 1.442695, %v3446_v55  ;;  %v3488_v51 = vsel %vm445_vm4, %v6396_v24, 0.0 }
 0xcbc   :  { %3489 = vadd.xlane.f32.xlu1 %v3488_v51  ;;  %v3485_v41 = vsel %vm445_vm4, %v5094_v52, 0.0 }
 0xcbd   :  { %5095 = vpow2.f32 %v3457_v57  ;;  %3486 = vadd.xlane.f32.xlu0 %v3485_v41 }
 0xcbf   :  { %v3436_v2 = vpop.xlane.xlu0 %3435 }
 0xcc0   :  { %v3448_v53 = vsub.f32 %v3360_v61, %v3436_v2  ;;  %v3424_v26 = vpop.xlane.xlu2 %3423 }
 0xcc1   :  { %v3444_v1 = vsub.f32 %v3248_v48, %v3424_v26 }
 0xcc2   :  { %v3461_v21 = vmul.f32 1.442695, %v3448_v53 }
 0xcc3   :  { %v5096_v56 = vpop.eup %5095  ;;  %v3453_v12 = vmul.f32 1.442695, %v3444_v1 }
 0xcc4   :  { %5097 = vpow2.f32 %v3461_v21  ;;  %v3476_v14 = vsel %vm445_vm4, %v5096_v56, 0.0 }
 0xcc5   :  { %5099 = vpow2.f32 %v3453_v12  ;;  %3477 = vadd.xlane.f32.xlu0 %v3476_v14 }
 0xcc6   :  { %5101 = vpow2.f32 %v3459_v30 }
 0xcc7   :  { %5103 = vpow2.f32 %v3451_v18 }
 0xcc8   :  { %v3752_v55 = vpop.permute.xlu2 %3751 }
 0xcca   :  { %v6404_v40 = vpop.eup %5097 }
 0xccb   :  { %v5100_v61 = vpop.eup %5099  ;;  %v3482_v22 = vsel %vm445_vm4, %v6404_v40, 0.0 }
 0xccc   :  { %3483 = vadd.xlane.f32.xlu2 %v3482_v22  ;;  %v3470_v48 = vsel %vm445_vm4, %v5100_v61, 0.0  ;;  %v6409_v5 = vpop.eup %5101 }
 0xccd   :  { %3471 = vadd.xlane.f32.xlu1 %v3470_v48  ;;  %v5104_v11 = vpop.eup %5103  ;;  %v3479_v38 = vsel %vm445_vm4, %v6409_v5, 0.0 }
 0xcce   :  { %v3467_v9 = vsel %vm445_vm4, %v5104_v11, 0.0 }
 0xcd2   :  { %v3836_v33 = vpop.permute.xlu0 %3835 }
 0xcd4   :  { %3480 = vadd.xlane.f32.xlu2 %v3479_v38 }
 0xcd5   :  { %3468 = vadd.xlane.f32.xlu1 %v3467_v9 }
 0xcd9   :  { %3779 = vrot.lane.b32.xlu0 %v6155_v29, %s5194_s28  ;;  %v3920_v29 = vpop.permute.xlu1 %3919 }
 0xce1   :  { %3863 = vrot.lane.b32.xlu0 %v6137_v54, %s5194_s28 }
 0xce9   :  { %4062 = vrot.lane.b32.xlu0 %v6069_v36, %s5198_s12 }
 0xcec   :  { %3893 = vrot.lane.b32.xlu2 %v6089_v16, %s5207_s9 }
 0xcee   :  { %3865 = vrot.lane.b32.xlu1 %v6085_v39, %s5207_s9  ;;  %s5214_s9 = smov 16  }
 0xcf4   :  { %4116 = vrot.lane.b32.xlu2 %v6066_v6, %s5198_s12 }
 0xcf6   :  { %3891 = vrot.lane.b32.xlu1 %v6169_v23, %s5194_s28  ;;  %s5208_s28 = smov 7  }
 0xcfe   :  { %4035 = vrot.lane.b32.xlu1 %v6062_v63, %s5198_s12 }
 0xd11   :  { %v3475_v54 = vpop.xlane.xlu1 %3474 }
 0xd12   :  { %5105 = vrcp.f32 %v3475_v54 }
 0xd18   :  { %v5106_v28 = vpop.eup %5105 }
 0xd19   :  { %v3501_v36 = vmul.f32 %v5106_v28, %v6384_v47 }
 0xd1b   :  { %4834 = vmatmul.msk.f32.vlgmr.msrb.gmra.mxu1 %vm230_vm3, %v3501_v36 }
 0xd1c   :  { %4849 = vmatpush.xpose.msk.msrb.mxu1 %vm2676_vm12, %v6394_v32 }
 0xd2f   :  { %v3490_v23 = vpop.xlane.xlu1 %3489 }
 0xd30   :  { %v3487_v15 = vpop.xlane.xlu0 %3486 }
 0xd31   :  { %5107 = vrcp.f32 %v3487_v15 }
 0xd37   :  { %v5108_v6 = vpop.eup %5107 }
 0xd38   :  { %v3505_v57 = vmul.f32 %v5108_v6, %v5094_v52  ;;  %v3478_v51 = vpop.xlane.xlu0 %3477 }
 0xd39   :  { %5109 = vrcp.f32 %v3478_v51 }
 0xd3a   :  { %4842 = vmatmul.msk.f32.vlgmr.msra.gmra.mxu1 %vm230_vm3, %v3505_v57  ;;  %5111 = vrcp.f32 %v3490_v23 }
 0xd3f   :  { %v5110_v63 = vpop.eup %5109  ;;  %v3484_v41 = vpop.xlane.xlu2 %3483 }
 0xd40   :  { %v3502_v47 = vmul.f32 %v5110_v63, %v5096_v56  ;;  %v3472_v34 = vpop.xlane.xlu1 %3471  ;;  %v5112_v32 = vpop.eup %5111 }
 0xd41   :  { %5113 = vrcp.f32 %v3472_v34  ;;  %v3506_v52 = vmul.f32 %v5112_v32, %v6396_v24 }
 0xd42   :  { %4836 = vmatmul.msk.f32.vlgmr.msrb.gmra.mxu2 %vm230_vm3, %v3502_v47  ;;  %5115 = vrcp.f32 %v3484_v41 }
 0xd43   :  { %4851 = vmatpush.xpose.msk.msrb.mxu2 %vm2676_vm12, %v6382_v17 }
 0xd47   :  { %v5114_v2 = vpop.eup %5113  ;;  %v3481_v53 = vpop.xlane.xlu2 %3480 }
 0xd48   :  { %v3500_v26 = vmul.f32 %v5114_v2, %v5100_v61  ;;  %v3469_v1 = vpop.xlane.xlu1 %3468  ;;  %v5116_v8 = vpop.eup %5115 }
 0xd49   :  { %5117 = vrcp.f32 %v3469_v1  ;;  %v3504_v56 = vmul.f32 %v5116_v8, %v6404_v40 }
 0xd4a   :  { %4832 = vmatmul.msk.f32.vlgmr.msrb.gmra.mxu0 %vm230_vm3, %v3500_v26  ;;  %4844 = vmatmul.msk.f32.vlgmr.msra.gmra.mxu2 %vm230_vm3, %v3506_v52  ;;  %5119 = vrcp.f32 %v3481_v53 }
 0xd4b   :  { %4847 = vmatpush.xpose.msk.msrb.mxu0 %vm2676_vm12, %v6380_v42  ;;  %4859 = vmatpush.xpose.msk.msra.mxu2 %vm2676_vm12, %v6392_v44  ;;  %v3780_v17 = vpop.permute.xlu0 %3779 }
 0xd4c   :  { %4850 = vmatmul.msk.f32.vlgmr.msrb.gmra.mxu1 %vm2676_vm12, %v3780_v17 }
 0xd4f   :  { %v5118_v21 = vpop.eup %5117  ;;  %v3894_v24 = vpop.permute.xlu2 %3893 }
 0xd50   :  { %v3499_v0 = vmul.f32 %v5118_v21, %v5104_v11  ;;  %4857 = vmatpush.xpose.msk.msra.mxu1 %vm2676_vm12, %v3894_v24  ;;  %v5120_v42 = vpop.eup %5119 }
 0xd51   :  { %v3503_v14 = vmul.f32 %v5120_v42, %v6409_v5 }
 0xd52   :  { %4830 = vmatmul.msk.f32.vlgmr.msra.gmra.mxu3 %vm230_vm3, %v3499_v0  ;;  %4840 = vmatmul.msk.f32.vlgmr.msra.gmra.mxu0 %vm230_vm3, %v3504_v56 }
 0xd53   :  { %4845 = vmatpush.xpose.msk.msra.mxu3 %vm2676_vm12, %v6338_v20  ;;  %4852 = vmatmul.msk.f32.vlgmr.msrb.gmra.mxu2 %vm2676_vm12, %v6340_v46  ;;  %v3864_v44 = vpop.permute.xlu0 %3863 }
 0xd57   :  { %v4117_v12 = vpop.permute.xlu2 %4116 }
 0xd58   :  { %4867 = vmatpush.msk.msrb.mxu2 %vm73_vm1, %v4117_v12 }
 0xd5a   :  { %4838 = vmatmul.msk.f32.vlgmr.msrb.gmra.mxu3 %vm230_vm3, %v3503_v14  ;;  %4848 = vmatmul.msk.f32.vlgmr.msrb.gmra.mxu0 %vm2676_vm12, %v3752_v55 }
 0xd5b   :  { %4853 = vmatpush.xpose.msk.msrb.mxu3 %vm2676_vm12, %v6390_v35  ;;  %4860 = vmatmul.msk.f32.vlgmr.msra.gmra.mxu2 %vm2676_vm12, %v3920_v29  ;;  %v4063_v30 = vpop.permute.xlu0 %4062 }
 0xd60   :  { %v3866_v20 = vpop.permute.xlu1 %3865 }
 0xd61   :  { %4855 = vmatpush.xpose.msk.msra.mxu0 %vm2676_vm12, %v3866_v20 }
 0xd62   :  { %4846 = vmatmul.msk.f32.vlgmr.msra.gmra.mxu3 %vm2676_vm12, %v6386_v45 }
 0xd64   :  { %4856 = vmatmul.msk.f32.vlgmr.msra.gmra.mxu0 %vm2676_vm12, %v3864_v44 }
 0xd65   :  { %4863 = vmatpush.msk.msrb.mxu0 %vm73_vm1, %v4063_v30 }
 0xd68   :  { %v3892_v46 = vpop.permute.xlu1 %3891 }
 0xd69   :  { %4858 = vmatmul.msk.f32.vlgmr.msra.gmra.mxu1 %vm2676_vm12, %v3892_v46 }
 0xd6a   :  { %4854 = vmatmul.msk.f32.vlgmr.msrb.gmra.mxu3 %vm2676_vm12, %v3836_v33 }
 0xd70   :  { %v4036_v18 = vpop.permute.xlu1 %4035 }
 0xd71   :  { %4861 = vmatpush.msk.msra.mxu3 %vm73_vm1, %v4036_v18 }
 0xd98   :  { %v6469_v35 = vpop.f32.mrf.mxu1 }
 0xdb7   :  { %v6471_v40 = vpop.f32.mrf.mxu1 }
 0xdc5   :  { %v6473_v61 = vpop.f32.mrf.mxu2 }
 0xdc7   :  { %v6475_v22 = vpop.f32.mrf.mxu0 }
 0xdc9   :  { %v3804_v45 = vpop.f32.mrf.mxu1 }
 0xdca   :  { %v3953_v48 = vsel %vm445_vm4, %v3804_v45, -inf }
 0xdcb   :  { %3954 = vmax.xlane.f32.xlu2 %v3953_v48 }
 0xdcd   :  { %v6478_v5 = vpop.f32.mrf.mxu2 }
 0xdcf   :  { %v6480_v11 = vpop.f32.mrf.mxu0 }
 0xdd5   :  { %v6482_v38 = vpop.f32.mrf.mxu3 }
 0xdd6   :  { %v3832_v9 = vpop.f32.mrf.mxu2 }
 0xdd7   :  { %v3776_v29 = vpop.f32.mrf.mxu0  ;;  %v3956_v63 = vsel %vm445_vm4, %v3832_v9, -inf }
 0xdd8   :  { %v3950_v23 = vsel %vm445_vm4, %v3776_v29, -inf }
 0xddd   :  { %v6484_v54 = vpop.f32.mrf.mxu3 }
 0xdde   :  { %v3944_v28 = vpop.f32.mrf.mxu2 }
 0xddf   :  { %v3968_v36 = vsel %vm445_vm4, %v3944_v28, -inf }
 0xde0   :  { %3969 = vmax.xlane.f32.xlu1 %v3968_v36 }
 0xde1   :  { %v6487_v33 = vpop.f32.mrf.mxu0 }
 0xde2   :  { %v3962_v15 = vsel %vm445_vm4, %v6487_v33, -inf }
 0xde3   :  { %3963 = vmax.xlane.f32.xlu2 %v3962_v15 }
 0xde5   :  { %v3748_v55 = vpop.f32.mrf.mxu3 }
 0xde6   :  { %v3916_v6 = vpop.f32.mrf.mxu1  ;;  %v3947_v51 = vsel %vm445_vm4, %v3748_v55, -inf }
 0xde7   :  { %v3965_v57 = vsel %vm445_vm4, %v3916_v6, -inf }
 0xde8   :  { %3951 = vmax.xlane.f32.xlu1 %v3950_v23  ;;  %3966 = vmax.xlane.f32.xlu0 %v3965_v57 }
 0xdeb   :  { %3948 = vmax.xlane.f32.xlu2 %v3947_v51 }
 0xded   :  { %v3860_v41 = vpop.f32.mrf.mxu3 }
 0xdee   :  { %v3959_v47 = vsel %vm445_vm4, %v3860_v41, -inf }
 0xdf0   :  { %3957 = vmax.xlane.f32.xlu0 %v3956_v63 }
 0xdf8   :  { %3960 = vmax.xlane.f32.xlu0 %v3959_v47 }
 0xe01   :  { %4089 = vrot.lane.b32.xlu1 %v6077_v49, %s5198_s12 }
 0xe03   :  { %4143 = vrot.lane.b32.xlu2 %v6073_v27, %s5198_s12 }
 0xe3e   :  { %v3955_v34 = vpop.xlane.xlu2 %3954 }
 0xe3f   :  { %v3973_v32 = vsub.f32 %v3804_v45, %v3955_v34 }
 0xe41   :  { %v3983_v2 = vmul.f32 1.442695, %v3973_v32 }
 0xe43   :  { %5121 = vpow2.f32 %v3983_v2 }
 0xe49   :  { %v6500_v53 = vpop.eup %5121 }
 0xe4a   :  { %v4001_v52 = vsel %vm445_vm4, %v6500_v53, 0.0 }
 0xe4b   :  { %4002 = vadd.xlane.f32.xlu1 %v4001_v52 }
 0xe53   :  { %v3970_v1 = vpop.xlane.xlu1 %3969 }
 0xe54   :  { %v3978_v49 = vsub.f32 %v3944_v28, %v3970_v1 }
 0xe56   :  { %v3964_v26 = vpop.xlane.xlu2 %3963  ;;  %v3993_v0 = vmul.f32 1.442695, %v3978_v49 }
 0xe5b   :  { %v3967_v17 = vpop.xlane.xlu0 %3966  ;;  %v3952_v44 = vpop.xlane.xlu1 %3951 }
 0xe5c   :  { %v3977_v8 = vsub.f32 %v3916_v6, %v3967_v17  ;;  %v3972_v46 = vsub.f32 %v3776_v29, %v3952_v44  ;;  %v3976_v29 = vsub.f32 %v6487_v33, %v3964_v26 }
 0xe5e   :  { %v3991_v21 = vmul.f32 1.442695, %v3977_v8  ;;  %v3949_v24 = vpop.xlane.xlu2 %3948  ;;  %v3981_v28 = vmul.f32 1.442695, %v3972_v46  ;;  %v3989_v51 = vmul.f32 1.442695, %v3976_v29 }
 0xe5f   :  { %v3971_v56 = vsub.f32 %v3748_v55, %v3949_v24 }
 0xe60   :  { %5123 = vpow2.f32 %v3991_v21 }
 0xe61   :  { %v3979_v27 = vmul.f32 1.442695, %v3971_v56 }
 0xe63   :  { %5125 = vpow2.f32 %v3979_v27  ;;  %v3958_v42 = vpop.xlane.xlu0 %3957 }
 0xe64   :  { %v3974_v12 = vsub.f32 %v3832_v9, %v3958_v42  ;;  %5127 = vpow2.f32 %v3993_v0 }
 0xe66   :  { %v3985_v14 = vmul.f32 1.442695, %v3974_v12  ;;  %v4144_v20 = vpop.permute.xlu2 %4143  ;;  %v6504_v30 = vpop.eup %5123 }
 0xe67   :  { %4869 = vmatpush.msk.msrb.mxu3 %vm73_vm1, %v4144_v20  ;;  %v4013_v18 = vsel %vm445_vm4, %v6504_v30, 0.0 }
 0xe68   :  { %5129 = vpow2.f32 %v3985_v14  ;;  %4014 = vadd.xlane.f32.xlu0 %v4013_v18 }
 0xe69   :  { %v5126_v45 = vpop.eup %5125  ;;  %5131 = vpow2.f32 %v3981_v28 }
 0xe6a   :  { %v3995_v48 = vsel %vm445_vm4, %v5126_v45, 0.0  ;;  %v6510_v15 = vpop.eup %5127 }
 0xe6b   :  { %3996 = vadd.xlane.f32.xlu1 %v3995_v48  ;;  %v3961_v36 = vpop.xlane.xlu0 %3960  ;;  %v4016_v57 = vsel %vm445_vm4, %v6510_v15, 0.0 }
 0xe6c   :  { %v3975_v9 = vsub.f32 %v3860_v41, %v3961_v36 }
 0xe6e   :  { %v5130_v6 = vpop.eup %5129  ;;  %v3987_v55 = vmul.f32 1.442695, %v3975_v9 }
 0xe6f   :  { %v4004_v23 = vsel %vm445_vm4, %v5130_v6, 0.0  ;;  %v5132_v41 = vpop.eup %5131 }
 0xe70   :  { %5133 = vpow2.f32 %v3987_v55  ;;  %4005 = vadd.xlane.f32.xlu2 %v4004_v23  ;;  %4017 = vadd.xlane.f32.xlu0 %v4016_v57  ;;  %v3998_v33 = vsel %vm445_vm4, %v5132_v41, 0.0  ;;  %v2606_v55 = vld [vmem:[%s6677_s3 + $0x46] sm:$0x1f]  ;;  %v2604_v23 = vld [vmem:[%s6677_s3 + $0x36] sm:$0xff] }
 0xe71   :  { %5135 = vpow2.f32 %v3989_v51 }
 0xe73   :  { %v4090_v63 = vpop.permute.xlu1 %4089 }
 0xe74   :  { %4865 = vmatpush.msk.msrb.mxu1 %vm73_vm1, %v4090_v63 }
 0xe76   :  { %v5134_v47 = vpop.eup %5133 }
 0xe77   :  { %v4007_v34 = vsel %vm445_vm4, %v5134_v47, 0.0  ;;  %v5136_v32 = vpop.eup %5135 }
 0xe78   :  { %4008 = vadd.xlane.f32.xlu2 %v4007_v34  ;;  %3999 = vadd.xlane.f32.xlu0 %v3998_v33  ;;  %v4010_v2 = vsel %vm445_vm4, %v5136_v32, 0.0  ;;  %vm4554_vm4 = vcmask 457728  }
 0xe80   :  { %4011 = vadd.xlane.f32.xlu0 %v4010_v2 }
 0xe84   :  { %4224 = vrot.lane.b32.xlu1 %v6080_v10, %s5198_s12 }
 0xe8c   :  { %4261 = vrot.lane.b32.xlu1 %v6475_v22, %s5208_s28 }
 0xe90   :  { %4170 = vrot.lane.b32.xlu2 %v6085_v39, %s5198_s12 }
 0xe94   :  { %4259 = vrot.lane.b32.xlu1 %v6482_v38, %s5208_s28  ;;  %4197 = vrot.lane.b32.xlu0 %v6089_v16, %s5198_s12  ;;  %s5209_s12 = smov 14  }
 0xe98   :  { %4263 = vrot.lane.b32.xlu2 %v6469_v35, %s5208_s28 }
 0xe9c   :  { %4271 = vrot.lane.b32.xlu1 %v6471_v40, %s5208_s28  ;;  %4269 = vrot.lane.b32.xlu0 %v6480_v11, %s5208_s28 }
 0xea0   :  { %4265 = vrot.lane.b32.xlu2 %v6473_v61, %s5208_s28 }
 0xea4   :  { %4273 = vrot.lane.b32.xlu1 %v6478_v5, %s5208_s28 }
 0xebe   :  { %v4003_v10 = vpop.xlane.xlu1 %4002 }
 0xebf   :  { %5137 = vrcp.f32 %v4003_v10 }
 0xec5   :  { %v5138_v39 = vpop.eup %5137 }
 0xec6   :  { %v4029_v16 = vmul.f32 %v5138_v39, %v6500_v53 }
 0xec8   :  { %4866 = vmatmul.msk.f32.vlgmr.msrb.gmra.mxu1 %vm230_vm3, %v4029_v16 }
 0xedb   :  { %v4015_v35 = vpop.xlane.xlu0 %4014 }
 0xede   :  { %v3997_v22 = vpop.xlane.xlu1 %3996 }
 0xedf   :  { %5139 = vrcp.f32 %v3997_v22 }
 0xee3   :  { %v4006_v40 = vpop.xlane.xlu2 %4005  ;;  %v4018_v38 = vpop.xlane.xlu0 %4017 }
 0xee4   :  { %5141 = vrcp.f32 %v4006_v40 }
 0xee5   :  { %v5140_v11 = vpop.eup %5139  ;;  %5143 = vrcp.f32 %v4018_v38 }
 0xee6   :  { %v4027_v52 = vmul.f32 %v5140_v11, %v5126_v45 }
 0xee8   :  { %4862 = vmatmul.msk.f32.vlgmr.msra.gmra.mxu3 %vm230_vm3, %v4027_v52 }
 0xee9   :  { %4877 = vmatpush.msk.msra.mxu3 %vm2625_vm6, %v2606_v55 }
 0xeea   :  { %v5142_v61 = vpop.eup %5141 }
 0xeeb   :  { %v4030_v26 = vmul.f32 %v5142_v61, %v5130_v6  ;;  %v4009_v5 = vpop.xlane.xlu2 %4008  ;;  %v4000_v1 = vpop.xlane.xlu0 %3999 }
 0xeec   :  { %5145 = vrcp.f32 %v4009_v5  ;;  %v5144_v53 = vpop.eup %5143 }
 0xeed   :  { %5147 = vrcp.f32 %v4000_v1  ;;  %4868 = vmatmul.msk.f32.vlgmr.msrb.gmra.mxu2 %vm230_vm3, %v4030_v26  ;;  %v4034_v27 = vmul.f32 %v5144_v53, %v6510_v15  ;;  %v5158_v15 = vld [vmem:[%s6681_s7] ss:$0 sm:$0xff] }
 0xef2   :  { %v5146_v17 = vpop.eup %5145 }
 0xef3   :  { %v5148_v8 = vpop.eup %5147  ;;  %v4031_v21 = vmul.f32 %v5146_v17, %v5134_v47  ;;  %v4171_v24 = vpop.permute.xlu2 %4170 }
 0xef4   :  { %v4028_v49 = vmul.f32 %v5148_v8, %v5132_v41  ;;  %v4012_v56 = vpop.xlane.xlu0 %4011  ;;  %4871 = vmatpush.msk.msra.mxu0 %vm73_vm1, %v4171_v24 }
 0xef5   :  { %5149 = vrcp.f32 %v4012_v56  ;;  %4870 = vmatmul.msk.f32.vlgmr.msrb.gmra.mxu3 %vm230_vm3, %v4031_v21 }
 0xef6   :  { %4864 = vmatmul.msk.f32.vlgmr.msrb.gmra.mxu0 %vm230_vm3, %v4028_v49  ;;  %v4225_v0 = vpop.permute.xlu1 %4224  ;;  %5151 = vrcp.f32 %v4015_v35 }
 0xef7   :  { %4875 = vmatpush.msk.msra.mxu2 %vm73_vm1, %v4225_v0 }
 0xef8   :  { %4876 = vmatmul.msk.f32.vlgmr.msra.gmra.mxu2 %vm230_vm3, %v4034_v27 }
 0xefb   :  { %v5150_v42 = vpop.eup %5149  ;;  %v4264_v57 = vpop.permute.xlu2 %4263 }
 0xefc   :  { %v4032_v44 = vmul.f32 %v5150_v42, %v5136_v32  ;;  %v5152_v12 = vpop.eup %5151  ;;  %v4927_v32 = vld [vmem:[%s6681_s7 + $0x1] ss:$0 sm:$0xff]  ;;  %v4317_v2 = vsel %vm2676_vm12, %v6344_v3, %v4264_v57 }
 0xefd   :  { %v4033_v14 = vmul.f32 %v5152_v12, %v6504_v30 }
 0xefe   :  { %4872 = vmatmul.msk.f32.vlgmr.msra.gmra.mxu0 %vm230_vm3, %v4032_v44  ;;  %v4262_v6 = vpop.permute.xlu1 %4261 }
 0xeff   :  { %v4316_v10 = vsel %vm2676_vm12, %v6355_v31, %v4262_v6 }
 0xf03   :  { %v4266_v41 = vpop.permute.xlu2 %4265 }
 0xf04   :  { %v4318_v39 = vsel %vm2676_vm12, %v6351_v58, %v4266_v41 }
 0xf06   :  { %v4198_v20 = vpop.permute.xlu0 %4197  ;;  %v4260_v29 = vpop.permute.xlu1 %4259 }
 0xf07   :  { %4873 = vmatpush.msk.msra.mxu1 %vm73_vm1, %v4198_v20  ;;  %v4315_v11 = vsel %vm2676_vm12, %v6348_v25, %v4260_v29 }
 0xf08   :  { %4874 = vmatmul.msk.f32.vlgmr.msra.gmra.mxu1 %vm230_vm3, %v4033_v14  ;;  %vm4552_vm3 = vcmask 392192  }
 0xf0e   :  { %v4272_v51 = vpop.permute.xlu1 %4271  ;;  %v4270_v63 = vpop.permute.xlu0 %4269 }
 0xf0f   :  { %v4320_v8 = vsel %vm2676_vm12, %v6363_v7, %v4270_v63  ;;  %v4321_v21 = vsel %vm2676_vm12, %v6346_v50, %v4272_v51 }
 0xf16   :  { %v4274_v47 = vpop.permute.xlu1 %4273 }
 0xf17   :  { %v4322_v49 = vsel %vm2676_vm12, %v6357_v37, %v4274_v47  ;;  %v4399_v37 = vld [vmem:[%s6676_s2 + $0x50] sm:$0x1f] }
 0xf18   :  { %4880 = vmatpush.msk.msrb.mxu0 %vm2625_vm6, %v4399_v37 }
 0xf45   :  { %v4113_v46 = vpop.f32.mrf.mxu1 }
 0xf46   :  { %4295 = vrot.lane.b32.xlu0 %v4113_v46, %s5209_s12 }
 0xf6b   :  { %v4059_v18 = vpop.f32.mrf.mxu3 }
 0xf6c   :  { %4291 = vrot.lane.b32.xlu1 %v4059_v18, %s5209_s12  ;;  %v4397_v18 = vld [vmem:[%s6676_s2 + $0x40] sm:$0xff] }
 0xf70   :  { %v4140_v45 = vpop.f32.mrf.mxu2 }
 0xf71   :  { %4297 = vrot.lane.b32.xlu2 %v4140_v45, %s5209_s12  ;;  %v6618_v45 = vld [vmem:[%s6681_s7 + $0x1] ss:$0 sm:$0xff]  ;;  %s5212_s7 = smov 87  }
 0xf73   :  { %v4086_v48 = vpop.f32.mrf.mxu0 }
 0xf74   :  { %4293 = vrot.lane.b32.xlu0 %v4086_v48, %s5209_s12 }
 0xf78   :  { %v4167_v30 = vpop.f32.mrf.mxu3 }
 0xf7b   :  { %v4194_v28 = vpop.f32.mrf.mxu0  ;;  %v4248_v36 = vpop.f32.mrf.mxu2 }
 0xf7c   :  { %4301 = vrot.lane.b32.xlu2 %v4194_v28, %s5209_s12  ;;  %4267 = vrot.lane.b32.xlu0 %v6484_v54, %s5208_s28  ;;  %v2605_v54 = vld [vmem:[%s6677_s3 + $0x3e] sm:$0xff]  ;;  %s5215_s28 = smov 8  }
 0xf7d   :  { %4305 = vrot.lane.b32.xlu1 %v4248_v36, %s5209_s12  ;;  %4384 = vmatpush.msra.mxu3 %v2605_v54  ;;  %v4444_v54 = vld [vmem:[%s6676_s2 + $0x30] sm:$0xff] }
 0xf7e   :  { %4469 = vmatpush.msrb.mxu1 %v4444_v54 }
 0xf7f   :  { %4385 = vmatpush.msra.mxu3 %v2604_v23 }
 0xf84   :  { %4299 = vrot.lane.b32.xlu0 %v4167_v30, %s5209_s12 }
 0xf85   :  { %v4221_v9 = vpop.f32.mrf.mxu1  ;;  %4403 = vrot.lane.b32.xlu1 %v6618_v45, %s5211_s24 }
 0xf86   :  { %4303 = vrot.lane.b32.xlu2 %v4221_v9, %s5209_s12  ;;  %s5216_s12 = smov 32  }
 0xf8c   :  { %2521 = vrot.lane.b32.xlu0 %v5158_v15, %s5210_s13  ;;  %s5219_s13 = smov 56  }
 0xf8e   :  { %4358 = vrot.lane.b32.xlu2 %v4927_v32, %s5191_s25 }
 0xf94   :  { %4480 = vrot.lane.b32.xlu0 %v6618_v45, %s5206_s30 }
 0xf96   :  { %4445 = vrot.lane.b32.xlu2 %v6618_v45, %s5212_s7 }
 0xfb8   :  { %v4296_v34 = vpop.permute.xlu0 %4295 }
 0xfb9   :  { %v4326_v16 = vsel %vm4323_vm13, %v4317_v2, %v4296_v34 }
 0xfba   :  { %v4336_v61 = vrot.slane %v4326_v16, 4 }
 0xfcb   :  { %v4298_v33 = vpop.permute.xlu2 %4297 }
 0xfcc   :  { %v4327_v40 = vsel %vm4323_vm13, %v4318_v39, %v4298_v33 }
 0xfcd   :  { %v4339_v31 = vrot.slane %v4327_v40, 2 }
 0xfd6   :  { %v4302_v3 = vpop.permute.xlu2 %4301 }
 0xfd7   :  { %v4329_v24 = vsel %vm4323_vm13, %v4320_v8, %v4302_v3 }
 0xfd8   :  { %v4342_v0 = vrot.slane %v4329_v24, 6  ;;  %v4563_v24 = vld [vmem:[%s6680_s6 + $0x38] sm:$0xff] }
 0xfd9   :  { %4579 = vmatpush.msrb.mxu3 %v4563_v24 }
 0xfde   :  { %v4292_v35 = vpop.permute.xlu1 %4291 }
 0xfdf   :  { %v4324_v26 = vsel %vm4323_vm13, %v4315_v11, %v4292_v35 }
 0xfe0   :  { %v4304_v17 = vpop.permute.xlu2 %4303 }
 0xfe1   :  { %v4330_v56 = vsel %vm4323_vm13, %v4321_v21, %v4304_v17 }
 0xfe2   :  { %v4345_v12 = vrot.slane %v4330_v56, 4  ;;  %v4561_v56 = vld [vmem:[%s6680_s6 + $0x28] sm:$0xff] }
 0xfe6   :  { %v4294_v22 = vpop.permute.xlu0 %4293 }
 0xfe7   :  { %v4325_v38 = vsel %vm4323_vm13, %v4316_v10, %v4294_v22 }
 0xfe8   :  { %v4333_v52 = vrot.slane %v4325_v38, 6  ;;  %v4359_v48 = vpop.permute.xlu2 %4358 }
 0xfea   :  { %v4350_v5 = vsel %vm73_vm1, %v4324_v26, %v4333_v52 }
 0xfeb   :  { %v4351_v58 = vsel %vm2475_vm10, %v4350_v5, %v4336_v61 }
 0xfec   :  { %v4352_v1 = vsel %vm79_vm2, %v4351_v58, %v4339_v31 }
 0xfed   :  { %4878 = vmatmul.msk.f32.vlgmr.msra.gmra.mxu3 %vm2618_vm7, %v4352_v1 }
 0xfee   :  { %v4268_v53 = vpop.permute.xlu0 %4267 }
 0xfef   :  { %v4306_v25 = vpop.permute.xlu1 %4305  ;;  %v4319_v42 = vsel %vm2676_vm12, %v6353_v59, %v4268_v53  ;;  %v4398_v59 = vld [vmem:[%s6676_s2 + $0x48] sm:$0xff] }
 0xff0   :  { %v4331_v27 = vsel %vm4323_vm13, %v4322_v49, %v4306_v25  ;;  %4429 = vmatpush.msrb.mxu0 %v4398_v59  ;;  %v4446_v16 = vpop.permute.xlu2 %4445  ;;  %v4562_v49 = vld [vmem:[%s6680_s6 + $0x30] sm:$0xff] }
 0xff1   :  { %v4348_v14 = vrot.slane %v4331_v27, 2  ;;  %4580 = vmatpush.msrb.mxu3 %v4562_v49  ;;  %v4560_v27 = vld [vmem:[%s6680_s6 + $0x20] sm:$0xff] }
 0xff2   :  { %4430 = vmatpush.msrb.mxu0 %v4397_v18 }
 0xff3   :  { %4581 = vmatpush.msrb.mxu3 %v4561_v56 }
 0xff5   :  { %4582 = vmatpush.msrb.mxu3 %v4560_v27 }
 0xff6   :  { %v4300_v44 = vpop.permute.xlu0 %4299 }
 0xff7   :  { %v4328_v7 = vsel %vm4323_vm13, %v4319_v42, %v4300_v44  ;;  %v4558_v42 = vld [vmem:[%s6680_s6 + $0x10] sm:$0xff]  ;;  %v4557_v44 = vld [vmem:[%s6680_s6 + $0x8] sm:$0xff] }
 0xff8   :  { %v4353_v50 = vsel %vm73_vm1, %v4328_v7, %v4342_v0  ;;  %v4559_v0 = vld [vmem:[%s6680_s6 + $0x18] sm:$0xff]  ;;  %vm4548_vm1 = vcmask 261120  }
 0xff9   :  { %v4354_v20 = vsel %vm2475_vm10, %v4353_v50, %v4345_v12  ;;  %4583 = vmatpush.msrb.mxu3 %v4559_v0  ;;  %v4556_v12 = vld [vmem:[%s6680_s6] sm:$0xff]  ;;  %s5221_s6 = smov [#allocation2]  }
 0xffa   :  { %v4355_v46 = vsel %vm79_vm2, %v4354_v20, %v4348_v14  ;;  %vm4550_vm2 = vcmask 326656   ;;  %s4622_s7 = sshll.u32 %s5221_s6, 4  ;;  %s4623_s7 = int_to_ptr.vmem [resolvable:$true] %s4622_s7 }
 0xffb   :  { %4879 = vmatmul.msk.f32.gmra.mxu3 %vm2618_vm7, %v4355_v46 }
 0xffc   :  { %4584 = vmatpush.msrb.mxu3 %v4558_v42 }
 0xffe   :  { %v2522_v13 = vpop.permute.xlu0 %2521  ;;  %4585 = vmatpush.msrb.mxu3 %v4557_v44 }
 0xfff   :  { %v2548_v23 = vadd.f32 %v6187_v4, %v2522_v13  ;;  %v2551_v47 = vadd.f32 %v6189_v19, %v2522_v13  ;;  %v4479_v4 = vld [vmem:[%s6676_s2 + $0x38] sm:$0xff]  ;;  %s5213_s2 = smov 24  }
0x1000   :  { %4504 = vmatpush.msrb.mxu2 %v4479_v4  ;;  %4586 = vmatpush.msrb.mxu3 %v4556_v12 }
0x1001   :  { %v2553_v63 = vmax.f32 %v2548_v23, 0.0  ;;  %v2554_v32 = vmax.f32 %v2551_v47, 0.0 }
0x1006   :  { %v4481_v52 = vpop.permute.xlu0 %4480 }
0x1070   :  { %v4387_v28 = vpop.f32.mrf.mxu3 }
0x1071   :  { %v4388_v36 = vadd.f32 %v4387_v28, %v4359_v48 }
0x1073   :  { %v4393_v30 = vadd.f32 %v4388_v36, %v2598_v60  ;;  %v4404_v60 = vpop.permute.xlu1 %4403 }
0x1075   :  { %v4395_v9 = vmax.f32 %v4393_v30, 0.0 }
0x1077   :  { %4881 = vmatmul.msk.f32.vlgmr.msrb.gmra.mxu0 %vm2618_vm7, %v4395_v9 }
0x107e   :  { %v4390_v15 = vpop.f32.mrf.mxu3 }
0x107f   :  { %v4391_v6 = vadd.f32 %v4390_v15, %v4359_v48 }
0x1081   :  { %v4394_v55 = vadd.f32 %v4391_v6, %v2599_v62 }
0x1083   :  { %v4396_v29 = vmax.f32 %v4394_v55, 0.0 }
0x1085   :  { %4882 = vmatmul.msk.f32.gmra.mxu0 %vm2618_vm7, %v4396_v29 }
0x10f4   :  { %v4432_v57 = vpop.f32.mrf.mxu0 }
0x10f5   :  { %v4433_v51 = vadd.f32 %v4432_v57, %v4404_v60 }
0x10f7   :  { %v4438_v43 = vmax.f32 %v4433_v51, 0.0 }
0x10f9   :  { %v4440_v62 = vmul.f32 %v4438_v43, %v2553_v63 }
0x10fb   :  { %v4442_v41 = vmax.f32 %v4440_v62, 0.0 }
0x10fd   :  { %4883 = vmatmul.msk.f32.vlgmr.msrb.gmra.mxu1 %vm39_vm0, %v4442_v41 }
0x1102   :  { %v4435_v34 = vpop.f32.mrf.mxu0 }
0x1103   :  { %v4436_v33 = vadd.f32 %v4435_v34, %v4404_v60 }
0x1105   :  { %v4439_v2 = vmax.f32 %v4436_v33, 0.0 }
0x1107   :  { %v4441_v10 = vmul.f32 %v4439_v2, %v2554_v32 }
0x1109   :  { %v4443_v39 = vmax.f32 %v4441_v10, 0.0 }
0x110b   :  { %4884 = vmatmul.msk.f32.gmra.mxu1 %vm39_vm0, %v4443_v39 }
0x117a   :  { %v4471_v35 = vpop.f32.mrf.mxu1 }
0x117b   :  { %v4472_v22 = vadd.f32 %v4471_v35, %v4446_v16 }
0x117d   :  { %v4477_v40 = vmax.f32 %v4472_v22, 0.0 }
0x117f   :  { %4885 = vmatmul.msk.f32.vlgmr.msrb.gmra.mxu2 %vm39_vm0, %v4477_v40 }
0x1188   :  { %v4474_v19 = vpop.f32.mrf.mxu1 }
0x1189   :  { %v4475_v38 = vadd.f32 %v4474_v19, %v4446_v16 }
0x118b   :  { %v4478_v11 = vmax.f32 %v4475_v38, 0.0 }
0x118d   :  { %4886 = vmatmul.msk.f32.gmra.mxu2 %vm39_vm0, %v4478_v11 }
0x1202   :  { %v4506_v61 = vpop.f32.mrf.mxu2 }
0x1203   :  { %v4507_v3 = vadd.f32 %v4506_v61, %v4481_v52 }
0x1205   :  { %v4512_v26 = vmax.f32 %v4507_v3, 0.0 }
0x1207   :  { %v4523_v31 = vrot.slane %v4512_v26, 6  ;;  %v4519_v5 = vrot.slane %v4512_v26, 4  ;;  %v4515_v58 = vrot.slane %v4512_v26, 2 }
0x1209   :  { %4524 = vrot.lane.b32.xlu0 %v4523_v31, %s5213_s2  ;;  %4520 = vrot.lane.b32.xlu2 %v4519_v5, %s5214_s9 }
0x120a   :  { %4516 = vrot.lane.b32.xlu1 %v4515_v58, %s5215_s28 }
0x1210   :  { %v4509_v1 = vpop.f32.mrf.mxu2 }
0x1211   :  { %v4510_v53 = vadd.f32 %v4509_v1, %v4481_v52 }
0x1213   :  { %v4513_v17 = vmax.f32 %v4510_v53, 0.0 }
0x1215   :  { %4528 = vrot.lane.b32.xlu1 %v4513_v17, %s5216_s12  ;;  %v4535_v8 = vrot.slane %v4513_v17, 4  ;;  %v4531_v25 = vrot.slane %v4513_v17, 2  ;;  %v4539_v21 = vrot.slane %v4513_v17, 6 }
0x1217   :  { %4536 = vrot.lane.b32.xlu0 %v4535_v8, %s5217_s10  ;;  %4532 = vrot.lane.b32.xlu2 %v4531_v25, %s5218_s11 }
0x121d   :  { %4540 = vrot.lane.b32.xlu1 %v4539_v21, %s5219_s13 }
0x121f   :  { %4564 = vrot.lane.b32.xlu2 %v6618_v45, %s5220_s14 }
0x1263   :  { %v4521_v50 = vpop.permute.xlu2 %4520 }
0x1271   :  { %v4533_v45 = vpop.permute.xlu2 %4532 }
0x1279   :  { %v4565_v15 = vpop.permute.xlu2 %4564 }
0x127b   :  { %v4525_v20 = vpop.permute.xlu0 %4524 }
0x127c   :  { %v4517_v7 = vpop.permute.xlu1 %4516 }
0x127d   :  { %v4543_v14 = vsel %vm39_vm0, %v4512_v26, %v4517_v7  ;;  %vm4591_vm0 = vcmask 517120  }
0x127e   :  { %v4545_v46 = vsel %vm4544_vm14, %v4543_v14, %v4521_v50 }
0x127f   :  { %v4547_v59 = vsel %vm4546_vm15, %v4545_v46, %v4525_v20 }
0x1287   :  { %v4529_v37 = vpop.permute.xlu1 %4528 }
0x1288   :  { %v4549_v18 = vsel %vm4548_vm1, %v4547_v59, %v4529_v37 }
0x1289   :  { %v4537_v48 = vpop.permute.xlu0 %4536  ;;  %v4551_v28 = vsel %vm4550_vm2, %v4549_v18, %v4533_v45 }
0x128a   :  { %v4553_v36 = vsel %vm4552_vm3, %v4551_v28, %v4537_v48 }
0x128f   :  { %v4541_v30 = vpop.permute.xlu1 %4540 }
0x1290   :  { %v4555_v9 = vsel %vm4554_vm4, %v4553_v36, %v4541_v30 }
0x1291   :  { %4887 = vmatmul.msk.f32.vlgmr.msrb.gmra.mxu3 %vm4567_vm5, %v4555_v9 }
0x1314   :  { %v4588_v6 = vpop.f32.mrf.mxu3 }
0x1315   :  { %v4589_v55 = vadd.f32 %v4588_v6, %v4565_v15 }
0x1317   :  { %v4592_v29 = vsel %vm4591_vm0, %v4589_v55, -inf }
0x1318   :  { %4593 = vmax.xlane.f32.xlu0 %v4592_v29 }
0x138b   :  { %v4594_v54 = vpop.xlane.xlu0 %4593 }
0x138c   :  { %v4595_v13 = vsub.f32 %v4589_v55, %v4594_v54 }
0x138e   :  { %v4596_v60 = vmul.f32 1.442695, %v4595_v13 }
0x1390   :  { %5153 = vpow2.f32 %v4596_v60 }
0x1396   :  { %v5154_v23 = vpop.eup %5153 }
0x1397   :  { %v4598_v57 = vsel %vm4591_vm0, %v5154_v23, 0.0 }
0x1398   :  { %4599 = vadd.xlane.f32.xlu1 %v4598_v57 }
0x140b   :  { %v4600_v51 = vpop.xlane.xlu1 %4599 }
0x140c   :  { %5155 = vrcp.f32 %v4600_v51  ;;  %v4612_v41 = vand.u32 2147483648, %v4600_v51  ;;  %v4610_v34 = vand.u32 2147483647, %v4600_v51  ;;  %vm4606_vm7 = vweird.f32 %v4600_v51 }
0x140e   :  { %v4613_v32 = vor.u32 1.1754944e-38, %v4612_v41  ;;  %vm4611_vm9 = vcmp.eq.f32.partialorder %v4610_v34, 8.507059e+37 }
0x1412   :  { %v5156_v63 = vpop.eup %5155 }
0x1413   :  { %v4602_v43 = vmul.f32 %v5156_v63, %v4600_v51  ;;  %vm4607_vm6 = vweird.f32 %v5156_v63 }
0x1414   :  { %vm4608_vm8 = vmor %vm4606_vm7, %vm4607_vm6 }
0x1415   :  { %v4603_v62 = vsub.f32 1.0, %v4602_v43 }
0x1417   :  { %v4604_v47 = vmul.f32 %v5156_v63, %v4603_v62 }
0x1419   :  { %v4605_v33 = vadd.f32 %v5156_v63, %v4604_v47 }
0x141b   :  { %v4609_v2 = vsel %vm4608_vm8, %v5156_v63, %v4605_v33 }
0x141c   :  { %v4614_v10 = vsel %vm4611_vm9, %v4613_v32, %v4609_v2 }
0x141d   :  { %v4615_v39 = vmul.f32 %v5154_v23, %v4614_v10 }
0x141f   :  { %4616 = vst.msk [vmem:[#allocation2] sm:$0x3] %vm4591_vm0, %v4615_v39 }
0x1420   :  { %4627 = dma.vmem_to_hbm [thread:$0]  %s4623_s7, 32, %s4625_s29, [#allocation3]  }
0x1421   :  { %5183 = dma.done.wait [#allocation3], 32  }
0x1422   :  { %5184 = vsyncadd [#allocation3], 4294967264 }
0x1423   :  { %4632 = vsyncpa [#allocation3], 1 }

</bundles_post_ra>
